<compile_context>
chip_gen: v7x
topology: tpu7x:2x2x1
jax: 0.10.0
libtpu: 0.0.40
codegen_flags: <defaults>
</compile_context>

<pallas_src>
from typing import NamedTuple

import jax
import jax.numpy as jnp
from jax.experimental import pallas as pl
from jax.experimental.pallas import tpu as pltpu

# ------------------------------ hyper-params -------------------------------
T, B = 4, 2                      # leading dims [T, B]
TB = T * B
IMG_C, IMG_H, IMG_W = 3, 8, 8    # image shape (C, H, W)
CONV_C = 16                      # conv output channels
CONV_FLAT = CONV_C * IMG_H * IMG_W          # 1024
MISSION_LEN = 6
VOCAB = 16
EMBED = 32                       # word embedding dim
GRU_H = 16                       # per-direction GRU hidden
TEXT = 2 * GRU_H                 # text_embed_size (bigru concat)
FC = 64                          # fc_size
LSTM_H = 32                      # per-body LSTM size (dual body)
HEAD = 64                        # head_size
NUM_ACTIONS = 7                  # output_size
EXTRA_IN = NUM_ACTIONS + 1       # prev-action one-hot + prev-reward
HEAD_IN = 2 * LSTM_H + TEXT      # DQN head input (96)


class RnnState(NamedTuple):
    hmod: jnp.ndarray
    cmod: jnp.ndarray
    hreg: jnp.ndarray
    creg: jnp.ndarray


# ------------------------------ Pallas kernels ------------------------------
def _matmul_bias_relu_kernel(x_ref, w_ref, b_ref, o_ref):
    o_ref[...] = jnp.maximum(
        jnp.dot(x_ref[...], w_ref[...], preferred_element_type=jnp.float32)
        + b_ref[...], 0.0)


def pallas_matmul_relu(x, w, b):
    """ReLU(x @ w + b), single VMEM block (shapes are tiny)."""
    M = x.shape[0]
    N = w.shape[1]
    return pl.pallas_call(
        _matmul_bias_relu_kernel,
        out_shape=jax.ShapeDtypeStruct((M, N), jnp.float32),
        in_specs=[pl.BlockSpec(memory_space=pltpu.MemorySpace.VMEM)
                  for _ in range(3)],
        out_specs=pl.BlockSpec(memory_space=pltpu.MemorySpace.VMEM),
    )(x, w, b)


def _mega_kernel(conv_ref, emb_ref, extra_ref, init_ref,
                 gru_wx_ref, gru_bx_ref, gru_wh_ref,
                 film_w_ref, film_b_ref, film_R_ref,
                 fcm_w_ref, fcm_b_ref, fcrc_w_ref, fcre_w_ref, fcr_b_ref,
                 lstm_wx_ref, lstm_wh_ref, lstm_b_ref,
                 head1_w_ref, head1_b_ref, head2_w_ref, head2_b_ref,
                 q_ref, hc_ref, xg_scr):
    """BiGRU language model + FiLM + body fc layers + dual-body LSTM + DQN
    head, fully fused (no grid; recurrences statically unrolled)."""
    f32 = jnp.float32
    conv = conv_ref[...]                                   # [TB, 1024]

    # ---- language model ('bigru'): both directions fused block-diagonally.
    # emb_ref[l] = [fwd token l | bwd (reversed) token l]; gate layout in the
    # 6*GRU_H axis is [r_f, r_b, z_f, z_b, n_f, n_b].
    wx = gru_wx_ref[...]
    bx = gru_bx_ref[...]
    wh = gru_wh_ref[...]
    G2 = 2 * GRU_H
    h = jnp.zeros((TB, TEXT), f32)
    for l in range(MISSION_LEN):                           # static unroll (L=6)
        x = emb_ref[l]                                     # [TB, 2E]
        xp = jnp.dot(x, wx, preferred_element_type=f32) + bx
        hp = jnp.dot(h, wh, preferred_element_type=f32)
        r = jax.nn.sigmoid(xp[:, 0:G2] + hp[:, 0:G2])
        z = jax.nn.sigmoid(xp[:, G2:2 * G2] + hp[:, G2:2 * G2])
        n = jnp.tanh(xp[:, 2 * G2:3 * G2] + r * hp[:, 2 * G2:3 * G2])
        h = (1.0 - z) * n + z * h
    mission_emb = h                                        # [TB, TEXT]

    # ---- FiLM generator + modulation + both body fc layers.
    gb = jnp.dot(mission_emb, film_w_ref[...],
                 preferred_element_type=f32) + film_b_ref[...]
    gamma = gb[:, :CONV_C]
    beta = gb[:, CONV_C:2 * CONV_C]
    # per-channel gamma/beta broadcast over spatial positions via a fixed 0/1
    # matrix (MXU does the broadcast; avoids in-kernel relayouts).
    gamma_b = jnp.dot(gamma, film_R_ref[...], preferred_element_type=f32)
    beta_b = jnp.dot(beta, film_R_ref[...], preferred_element_type=f32)
    # TODO(synk): exact sfgen FiLM block (batch-norm / pooling variants) not
    # available; residual ReLU-affine modulation used instead.
    mod = conv + jnp.maximum(gamma_b * conv + beta_b, 0.0)
    mod_in = jnp.maximum(
        jnp.dot(mod, fcm_w_ref[...], preferred_element_type=f32)
        + fcm_b_ref[...], 0.0)
    reg_in = jnp.maximum(
        jnp.dot(conv, fcrc_w_ref[...], preferred_element_type=f32)
        + jnp.dot(extra_ref[...], fcre_w_ref[...], preferred_element_type=f32)
        + fcr_b_ref[...], 0.0)
    xin = jnp.concatenate([mod_in, reg_in], axis=1)        # [TB, 2*FC]

    # ---- LSTM input projection for ALL timesteps in one matmul; park it in
    # VMEM scratch so the recurrence only does static-offset ref row-reads.
    xg_scr[...] = (jnp.dot(xin, lstm_wx_ref[...], preferred_element_type=f32)
                   + lstm_b_ref[...])                      # [TB, 8*LSTM_H]

    # ---- dual-body LSTM recurrence (mod + reg bodies fused block-diagonally).
    # h/c layout: [h_mod | h_reg] / [c_mod | c_reg]; fused gate layout:
    # [i_m, i_r, f_m, f_r, g_m, g_r, o_m, o_r].
    H2 = 2 * LSTM_H
    lwh = lstm_wh_ref[...]
    hc0 = init_ref[...]                                    # [B, 4*LSTM_H]
    h_lstm = hc0[:, 0:H2]
    c_lstm = hc0[:, H2:2 * H2]
    h_steps = []
    for t in range(T):                                     # static unroll (T=4)
        gates = (xg_scr[pl.ds(t * B, B), :]
                 + jnp.dot(h_lstm, lwh, preferred_element_type=f32))
        i = jax.nn.sigmoid(gates[:, 0:H2])
        f = jax.nn.sigmoid(gates[:, H2:2 * H2])
        g = jnp.tanh(gates[:, 2 * H2:3 * H2])
        o = jax.nn.sigmoid(gates[:, 3 * H2:4 * H2])
        c_lstm = f * c_lstm + i * g
        h_lstm = o * jnp.tanh(c_lstm)
        h_steps.append(h_lstm)
    hc_ref[...] = jnp.concatenate([h_lstm, c_lstm], axis=1)

    # ---- DQN head (dueling=False) batched over all T*B rows at once.
    h_all = jnp.concatenate(h_steps, axis=0)               # [TB, 2*LSTM_H]
    state = jnp.concatenate([h_all, mission_emb], axis=1)  # [TB, HEAD_IN]
    hh = jnp.maximum(
        jnp.dot(state, head1_w_ref[...], preferred_element_type=f32)
        + head1_b_ref[...], 0.0)
    q_ref[...] = (jnp.dot(hh, head2_w_ref[...], preferred_element_type=f32)
                  + head2_b_ref[...])


def pallas_babyai_core(conv_flat, emb_cat, extra, init_hc, p):
    vmem = lambda: pl.BlockSpec(memory_space=pltpu.MemorySpace.VMEM)
    return pl.pallas_call(
        _mega_kernel,
        out_shape=(jax.ShapeDtypeStruct((TB, NUM_ACTIONS), jnp.float32),
                   jax.ShapeDtypeStruct((B, 4 * LSTM_H), jnp.float32)),
        in_specs=[vmem() for _ in range(22)],
        out_specs=(vmem(), vmem()),
        scratch_shapes=[pltpu.VMEM((TB, 8 * LSTM_H), jnp.float32)],
    )(conv_flat, emb_cat, extra, init_hc,
      p["gru_wx"], p["gru_bx"], p["gru_wh"],
      p["film_w"], p["film_b"], p["film_R"],
      p["fcm_w"], p["fcm_b"], p["fcrc_w"], p["fcre_w"], p["fcr_b"],
      p["lstm_wx"], p["lstm_wh"], p["lstm_b"],
      p["head1_w"], p["head1_b"], p["head2_w"], p["head2_b"])


# ------------------------------ params (built once, fused layouts) ----------
def init_params(key):
    ks = jax.random.split(key, 20)
    it = iter(ks)

    def dense(k, fan_in, shape):
        return jax.random.normal(k, shape, jnp.float32) / jnp.sqrt(float(fan_in))

    p = {}
    # vision: 3x3 convs in im2col/matmul layout; 1/255 scale folded into conv1.
    p["conv1_w"] = dense(next(it), IMG_C * 9, (IMG_C * 9, CONV_C)) * (1.0 / 255.0)
    p["conv1_b"] = jnp.zeros((1, CONV_C), jnp.float32)
    p["conv2_w"] = dense(next(it), CONV_C * 9, (CONV_C * 9, CONV_C))
    p["conv2_b"] = jnp.zeros((1, CONV_C), jnp.float32)
    # language model ('bigru'): embedding + fused bidirectional GRU weights
    # (block-diagonal so the two directions stay independent).
    p["embed"] = dense(next(it), 1, (VOCAB, EMBED))
    wxf = dense(next(it), EMBED, (EMBED, 3 * GRU_H))
    wxb = dense(next(it), EMBED, (EMBED, 3 * GRU_H))
    whf = dense(next(it), GRU_H, (GRU_H, 3 * GRU_H))
    whb = dense(next(it), GRU_H, (GRU_H, 3 * GRU_H))
    gwx = jnp.zeros((2 * EMBED, 6 * GRU_H), jnp.float32)
    gwh = jnp.zeros((2 * GRU_H, 6 * GRU_H), jnp.float32)
    for gi in range(3):                                   # r, z, n
        c0 = gi * 2 * GRU_H
        gwx = gwx.at[:EMBED, c0:c0 + GRU_H].set(wxf[:, gi * GRU_H:(gi + 1) * GRU_H])
        gwx = gwx.at[EMBED:, c0 + GRU_H:c0 + 2 * GRU_H].set(wxb[:, gi * GRU_H:(gi + 1) * GRU_H])
        gwh = gwh.at[:GRU_H, c0:c0 + GRU_H].set(whf[:, gi * GRU_H:(gi + 1) * GRU_H])
        gwh = gwh.at[GRU_H:, c0 + GRU_H:c0 + 2 * GRU_H].set(whb[:, gi * GRU_H:(gi + 1) * GRU_H])
    p["gru_wx"], p["gru_wh"] = gwx, gwh
    p["gru_bx"] = jnp.zeros((1, 6 * GRU_H), jnp.float32)
    # FiLM generator + fixed channel->feature broadcast matrix (NHWC flatten:
    # feature j belongs to channel j % CONV_C).
    p["film_w"] = dense(next(it), TEXT, (TEXT, 2 * CONV_C))
    p["film_b"] = jnp.zeros((1, 2 * CONV_C), jnp.float32)
    feat_chan = jnp.arange(CONV_FLAT) % CONV_C
    p["film_R"] = (feat_chan[None, :] == jnp.arange(CONV_C)[:, None]).astype(jnp.float32)
    # body fc layers (regular body fc split into conv / action+reward chunks).
    p["fcm_w"] = dense(next(it), CONV_FLAT, (CONV_FLAT, FC))
    p["fcm_b"] = jnp.zeros((1, FC), jnp.float32)
    p["fcrc_w"] = dense(next(it), CONV_FLAT + EXTRA_IN, (CONV_FLAT, FC))
    p["fcre_w"] = dense(next(it), CONV_FLAT + EXTRA_IN, (EXTRA_IN, FC))
    p["fcr_b"] = jnp.zeros((1, FC), jnp.float32)
    # fused dual-body LSTM (block-diagonal; bodies stay independent).
    # TODO(synk): PyTorch LSTM has b_ih + b_hh biases; both are zero here.
    wxm = dense(next(it), FC, (FC, 4 * LSTM_H))
    wxr = dense(next(it), FC, (FC, 4 * LSTM_H))
    whm = dense(next(it), LSTM_H, (LSTM_H, 4 * LSTM_H))
    whr = dense(next(it), LSTM_H, (LSTM_H, 4 * LSTM_H))
    lwx = jnp.zeros((2 * FC, 8 * LSTM_H), jnp.float32)
    lwh = jnp.zeros((2 * LSTM_H, 8 * LSTM_H), jnp.float32)
    for gi in range(4):                                   # i, f, g, o
        c0 = gi * 2 * LSTM_H
        lwx = lwx.at[:FC, c0:c0 + LSTM_H].set(wxm[:, gi * LSTM_H:(gi + 1) * LSTM_H])
        lwx = lwx.at[FC:, c0 + LSTM_H:c0 + 2 * LSTM_H].set(wxr[:, gi * LSTM_H:(gi + 1) * LSTM_H])
        lwh = lwh.at[:LSTM_H, c0:c0 + LSTM_H].set(whm[:, gi * LSTM_H:(gi + 1) * LSTM_H])
        lwh = lwh.at[LSTM_H:, c0 + LSTM_H:c0 + 2 * LSTM_H].set(whr[:, gi * LSTM_H:(gi + 1) * LSTM_H])
    p["lstm_wx"], p["lstm_wh"] = lwx, lwh
    p["lstm_b"] = jnp.zeros((1, 8 * LSTM_H), jnp.float32)
    # DQN head (dueling=False)
    p["head1_w"] = dense(next(it), HEAD_IN, (HEAD_IN, HEAD))
    p["head1_b"] = jnp.zeros((1, HEAD), jnp.float32)
    p["head2_w"] = dense(next(it), HEAD, (HEAD, NUM_ACTIONS))
    p["head2_b"] = jnp.zeros((1, NUM_ACTIONS), jnp.float32)
    return p


# ------------------------------ XLA glue ------------------------------------
def _im2col_nhwc(x, k=3):
    """3x3 stride-1 'same' patches.  x:[N,H,W,C] -> [N*H*W, k*k*C]."""
    N, H, W, C = x.shape
    pad = k // 2
    xp = jnp.pad(x, ((0, 0), (pad, pad), (pad, pad), (0, 0)))
    cols = [xp[:, di:di + H, dj:dj + W, :] for di in range(k) for dj in range(k)]
    return jnp.concatenate(cols, axis=-1).reshape(N * H * W, k * k * C)


def babyai_rl_forward(params, observation, prev_action, prev_reward, init_rnn_state):
    image = observation["image"]      # [T, B, C, H, W] uint8
    mission = observation["mission"]  # [T, B, L] int32

    # --- vision (BabyAIConv equivalent): two conv+ReLU layers as Pallas
    # matmuls; 1/255 scale folded into conv1_w; features channel-minor (NHWC).
    img = image.astype(jnp.float32).reshape(TB, IMG_C, IMG_H, IMG_W)
    img = img.transpose(0, 2, 3, 1)                                   # [TB,H,W,C]
    h1 = pallas_matmul_relu(_im2col_nhwc(img),
                            params["conv1_w"], params["conv1_b"])     # [TB*H*W,16]
    conv = pallas_matmul_relu(_im2col_nhwc(h1.reshape(TB, IMG_H, IMG_W, CONV_C)),
                              params["conv2_w"], params["conv2_b"])   # [TB*H*W,16]
    conv_flat = conv.reshape(TB, CONV_FLAT)                           # [TB,1024]

    # --- language tokens -> embeddings (gather stays in XLA); forward and
    # reversed sequences concatenated so the kernel runs both GRU directions.
    toks = mission.reshape(TB, MISSION_LEN)
    emb = jnp.take(params["embed"], toks, axis=0)                     # [TB, L, E]
    emb_f = emb.transpose(1, 0, 2)                                    # [L, TB, E]
    emb_cat = jnp.concatenate([emb_f, emb_f[::-1]], axis=-1)          # [L, TB, 2E]

    # --- prev action / reward features for the regular body.
    pa = jax.nn.one_hot(prev_action.reshape(TB), NUM_ACTIONS, dtype=jnp.float32)
    pr = prev_reward.reshape(TB, 1).astype(jnp.float32)
    extra = jnp.concatenate([pa, pr], axis=-1)                        # [TB, 8]

    init_hc = jnp.concatenate([init_rnn_state.hmod, init_rnn_state.hreg,
                               init_rnn_state.cmod, init_rnn_state.creg],
                              axis=-1)                                # [B, 128]

    # --- fused BiGRU + FiLM + body fc + dual-body LSTM + DQN head.
    q, hc = pallas_babyai_core(conv_flat, emb_cat, extra, init_hc, params)
    q = q.reshape(T, B, NUM_ACTIONS)
    next_rnn_state = RnnState(hmod=hc[:, 0:LSTM_H],
                              cmod=hc[:, 2 * LSTM_H:3 * LSTM_H],
                              hreg=hc[:, LSTM_H:2 * LSTM_H],
                              creg=hc[:, 3 * LSTM_H:4 * LSTM_H])
    return q, next_rnn_state                                          # q: [T,B,A]


# ----------------------------------- main -----------------------------------
if __name__ == "__main__":
    key = jax.random.PRNGKey(0)
    pkey, ikey, mkey, akey, rkey, skey = jax.random.split(key, 6)

    params = init_params(pkey)

    image = jax.random.randint(ikey, (T, B, IMG_C, IMG_H, IMG_W), 0, 256,
                               dtype=jnp.int32).astype(jnp.uint8)
    mission = jax.random.randint(mkey, (T, B, MISSION_LEN), 0, VOCAB, dtype=jnp.int32)
    prev_action = jax.random.randint(akey, (T, B), 0, NUM_ACTIONS, dtype=jnp.int32)
    prev_reward = jax.random.uniform(rkey, (T, B), jnp.float32)
    sk = jax.random.split(skey, 4)
    init_state = RnnState(*[0.1 * jax.random.normal(sk[i], (B, LSTM_H), jnp.float32)
                            for i in range(4)])

    obs = {"image": image, "mission": mission}
    fwd = jax.jit(babyai_rl_forward)
    q, next_state = fwd(params, obs, prev_action, prev_reward, init_state)
    jax.block_until_ready((q, next_state))
    assert q.shape == (T, B, NUM_ACTIONS)
    assert next_state.hmod.shape == (B, LSTM_H)
    assert next_state.creg.shape == (B, LSTM_H)
    print("KERNEL_OK")
</pallas_src>

<mosaic_0001>
module attributes {stable_mosaic.version = 11 : i64} {
  func.func @_matmul_bias_relu_kernel(%arg0: memref<512x27xf32, #tpu.memory_space<vmem>>, %arg1: memref<27x16xf32, #tpu.memory_space<vmem>>, %arg2: memref<1x16xf32, #tpu.memory_space<vmem>>, %arg3: memref<512x16xf32, #tpu.memory_space<vmem>>) attributes {dimension_semantics = [], scalar_prefetch = 0 : i64, scratch_operands = 0 : i64, tpu.core_type = #tpu.core_type<tc>} {
    %c0 = arith.constant 0 : index
    %c0_0 = arith.constant 0 : index
    %0 = vector.load %arg0[%c0, %c0_0] : memref<512x27xf32, #tpu.memory_space<vmem>>, vector<512x27xf32>
    %c0_1 = arith.constant 0 : index
    %c0_2 = arith.constant 0 : index
    %1 = vector.load %arg1[%c0_1, %c0_2] : memref<27x16xf32, #tpu.memory_space<vmem>>, vector<27x16xf32>
    %cst = arith.constant dense<0.000000e+00> : vector<512x16xf32>
    %2 = tpu.matmul %0, %1, %cst {dimension_numbers = #tpu.dot_dimension_numbers<[1], [0], [0], [1], [0, 0, 1, 1], [], []>} : vector<512x27xf32>, vector<27x16xf32>, vector<512x16xf32> -> vector<512x16xf32>
    %c0_3 = arith.constant 0 : index
    %c0_4 = arith.constant 0 : index
    %3 = vector.load %arg2[%c0_3, %c0_4] : memref<1x16xf32, #tpu.memory_space<vmem>>, vector<1x16xf32>
    %4 = vector.broadcast %3 : vector<1x16xf32> to vector<512x16xf32>
    %5 = arith.addf %2, %4 : vector<512x16xf32>
    %cst_5 = arith.constant 0.000000e+00 : f32
    %6 = vector.broadcast %cst_5 : f32 to vector<512x16xf32>
    %7 = arith.maximumf %5, %6 : vector<512x16xf32>
    %c0_6 = arith.constant 0 : index
    %c0_7 = arith.constant 0 : index
    %8 = vector.load %arg3[%c0_6, %c0_7] : memref<512x16xf32, #tpu.memory_space<vmem>>, vector<512x16xf32>
    tpu.vector_store %arg3[%c0_6, %c0_7], %7 {strides = array<i32>} : memref<512x16xf32, #tpu.memory_space<vmem>>, vector<512x16xf32>,
    return
  }
}

module attributes {stable_mosaic.version = 11 : i64} {
  func.func @_matmul_bias_relu_kernel(%arg0: memref<512x144xf32, #tpu.memory_space<vmem>>, %arg1: memref<144x16xf32, #tpu.memory_space<vmem>>, %arg2: memref<1x16xf32, #tpu.memory_space<vmem>>, %arg3: memref<512x16xf32, #tpu.memory_space<vmem>>) attributes {dimension_semantics = [], scalar_prefetch = 0 : i64, scratch_operands = 0 : i64, tpu.core_type = #tpu.core_type<tc>} {
    %c0 = arith.constant 0 : index
    %c0_0 = arith.constant 0 : index
    %0 = vector.load %arg0[%c0, %c0_0] : memref<512x144xf32, #tpu.memory_space<vmem>>, vector<512x144xf32>
    %c0_1 = arith.constant 0 : index
    %c0_2 = arith.constant 0 : index
    %1 = vector.load %arg1[%c0_1, %c0_2] : memref<144x16xf32, #tpu.memory_space<vmem>>, vector<144x16xf32>
    %cst = arith.constant dense<0.000000e+00> : vector<512x16xf32>
    %2 = tpu.matmul %0, %1, %cst {dimension_numbers = #tpu.dot_dimension_numbers<[1], [0], [0], [1], [0, 0, 1, 1], [], []>} : vector<512x144xf32>, vector<144x16xf32>, vector<512x16xf32> -> vector<512x16xf32>
    %c0_3 = arith.constant 0 : index
    %c0_4 = arith.constant 0 : index
    %3 = vector.load %arg2[%c0_3, %c0_4] : memref<1x16xf32, #tpu.memory_space<vmem>>, vector<1x16xf32>
    %4 = vector.broadcast %3 : vector<1x16xf32> to vector<512x16xf32>
    %5 = arith.addf %2, %4 : vector<512x16xf32>
    %cst_5 = arith.constant 0.000000e+00 : f32
    %6 = vector.broadcast %cst_5 : f32 to vector<512x16xf32>
    %7 = arith.maximumf %5, %6 : vector<512x16xf32>
    %c0_6 = arith.constant 0 : index
    %c0_7 = arith.constant 0 : index
    %8 = vector.load %arg3[%c0_6, %c0_7] : memref<512x16xf32, #tpu.memory_space<vmem>>, vector<512x16xf32>
    tpu.vector_store %arg3[%c0_6, %c0_7], %7 {strides = array<i32>} : memref<512x16xf32, #tpu.memory_space<vmem>>, vector<512x16xf32>,
    return
  }
}

module attributes {stable_mosaic.version = 11 : i64} {
  func.func @_mega_kernel(%arg0: memref<8x1024xf32, #tpu.memory_space<vmem>>, %arg1: memref<6x8x64xf32, #tpu.memory_space<vmem>>, %arg2: memref<8x8xf32, #tpu.memory_space<vmem>>, %arg3: memref<2x128xf32, #tpu.memory_space<vmem>>, %arg4: memref<64x96xf32, #tpu.memory_space<vmem>>, %arg5: memref<1x96xf32, #tpu.memory_space<vmem>>, %arg6: memref<32x96xf32, #tpu.memory_space<vmem>>, %arg7: memref<32x32xf32, #tpu.memory_space<vmem>>, %arg8: memref<1x32xf32, #tpu.memory_space<vmem>>, %arg9: memref<16x1024xf32, #tpu.memory_space<vmem>>, %arg10: memref<1024x64xf32, #tpu.memory_space<vmem>>, %arg11: memref<1x64xf32, #tpu.memory_space<vmem>>, %arg12: memref<1024x64xf32, #tpu.memory_space<vmem>>, %arg13: memref<8x64xf32, #tpu.memory_space<vmem>>, %arg14: memref<1x64xf32, #tpu.memory_space<vmem>>, %arg15: memref<128x256xf32, #tpu.memory_space<vmem>>, %arg16: memref<64x256xf32, #tpu.memory_space<vmem>>, %arg17: memref<1x256xf32, #tpu.memory_space<vmem>>, %arg18: memref<96x64xf32, #tpu.memory_space<vmem>>, %arg19: memref<1x64xf32, #tpu.memory_space<vmem>>, %arg20: memref<64x7xf32, #tpu.memory_space<vmem>>, %arg21: memref<1x7xf32, #tpu.memory_space<vmem>>, %arg22: memref<8x7xf32, #tpu.memory_space<vmem>>, %arg23: memref<2x128xf32, #tpu.memory_space<vmem>>, %arg24: memref<8x256xf32, #tpu.memory_space<vmem>>) attributes {dimension_semantics = [], scalar_prefetch = 0 : i64, scratch_operands = 1 : i64, tpu.core_type = #tpu.core_type<tc>} {
    %c0 = arith.constant 0 : index
    %c0_0 = arith.constant 0 : index
    %0 = vector.load %arg0[%c0, %c0_0] : memref<8x1024xf32, #tpu.memory_space<vmem>>, vector<8x1024xf32>
    %c0_1 = arith.constant 0 : index
    %c0_2 = arith.constant 0 : index
    %1 = vector.load %arg4[%c0_1, %c0_2] : memref<64x96xf32, #tpu.memory_space<vmem>>, vector<64x96xf32>
    %c0_3 = arith.constant 0 : index
    %c0_4 = arith.constant 0 : index
    %2 = vector.load %arg5[%c0_3, %c0_4] : memref<1x96xf32, #tpu.memory_space<vmem>>, vector<1x96xf32>
    %c0_5 = arith.constant 0 : index
    %c0_6 = arith.constant 0 : index
    %3 = vector.load %arg6[%c0_5, %c0_6] : memref<32x96xf32, #tpu.memory_space<vmem>>, vector<32x96xf32>
    %cst = arith.constant 0.000000e+00 : f32
    %4 = vector.broadcast %cst : f32 to vector<8x32xf32>
    %c0_7 = arith.constant 0 : index
    %c0_8 = arith.constant 0 : index
    %c0_9 = arith.constant 0 : index
    %5 = vector.load %arg1[%c0_7, %c0_8, %c0_9] : memref<6x8x64xf32, #tpu.memory_space<vmem>>, vector<1x8x64xf32>
    %6 = vector.shape_cast %5 : vector<1x8x64xf32> to vector<8x64xf32>
    %cst_10 = arith.constant dense<0.000000e+00> : vector<8x96xf32>
    %7 = tpu.matmul %6, %1, %cst_10 {dimension_numbers = #tpu.dot_dimension_numbers<[1], [0], [0], [1], [0, 0, 1, 1], [], []>} : vector<8x64xf32>, vector<64x96xf32>, vector<8x96xf32> -> vector<8x96xf32>
    %8 = vector.broadcast %2 : vector<1x96xf32> to vector<8x96xf32>
    %9 = arith.addf %7, %8 : vector<8x96xf32>
    %cst_11 = arith.constant dense<0.000000e+00> : vector<8x96xf32>
    %10 = tpu.matmul %4, %3, %cst_11 {dimension_numbers = #tpu.dot_dimension_numbers<[1], [0], [0], [1], [0, 0, 1, 1], [], []>} : vector<8x32xf32>, vector<32x96xf32>, vector<8x96xf32> -> vector<8x96xf32>
    %11 = vector.extract_strided_slice %9 {offsets = [0, 0], sizes = [8, 32], strides = [1, 1]} : vector<8x96xf32> to vector<8x32xf32>
    %12 = vector.extract_strided_slice %10 {offsets = [0, 0], sizes = [8, 32], strides = [1, 1]} : vector<8x96xf32> to vector<8x32xf32>
    %13 = arith.addf %11, %12 : vector<8x32xf32>
    %14 = arith.negf %13 : vector<8x32xf32>
    %15 = math.exp %14 : vector<8x32xf32>
    %cst_12 = arith.constant 1.000000e+00 : f32
    %16 = vector.broadcast %cst_12 : f32 to vector<8x32xf32>
    %17 = arith.addf %16, %15 : vector<8x32xf32>
    %18 = arith.divf %16, %17 : vector<8x32xf32>
    %19 = vector.extract_strided_slice %9 {offsets = [0, 32], sizes = [8, 32], strides = [1, 1]} : vector<8x96xf32> to vector<8x32xf32>
    %20 = vector.extract_strided_slice %10 {offsets = [0, 32], sizes = [8, 32], strides = [1, 1]} : vector<8x96xf32> to vector<8x32xf32>
    %21 = arith.addf %19, %20 : vector<8x32xf32>
    %22 = arith.negf %21 : vector<8x32xf32>
    %23 = math.exp %22 : vector<8x32xf32>
    %cst_13 = arith.constant 1.000000e+00 : f32
    %24 = vector.broadcast %cst_13 : f32 to vector<8x32xf32>
    %25 = arith.addf %24, %23 : vector<8x32xf32>
    %26 = arith.divf %24, %25 : vector<8x32xf32>
    %27 = vector.extract_strided_slice %9 {offsets = [0, 64], sizes = [8, 32], strides = [1, 1]} : vector<8x96xf32> to vector<8x32xf32>
    %28 = vector.extract_strided_slice %10 {offsets = [0, 64], sizes = [8, 32], strides = [1, 1]} : vector<8x96xf32> to vector<8x32xf32>
    %29 = arith.mulf %18, %28 : vector<8x32xf32>
    %30 = arith.addf %27, %29 : vector<8x32xf32>
    %31 = math.tanh %30 : vector<8x32xf32>
    %cst_14 = arith.constant 1.000000e+00 : f32
    %32 = vector.broadcast %cst_14 : f32 to vector<8x32xf32>
    %33 = arith.subf %32, %26 : vector<8x32xf32>
    %34 = arith.mulf %33, %31 : vector<8x32xf32>
    %35 = arith.mulf %26, %4 : vector<8x32xf32>
    %36 = arith.addf %34, %35 : vector<8x32xf32>
    %c1 = arith.constant 1 : index
    %c0_15 = arith.constant 0 : index
    %c0_16 = arith.constant 0 : index
    %37 = vector.load %arg1[%c1, %c0_15, %c0_16] : memref<6x8x64xf32, #tpu.memory_space<vmem>>, vector<1x8x64xf32>
    %38 = vector.shape_cast %37 : vector<1x8x64xf32> to vector<8x64xf32>
    %cst_17 = arith.constant dense<0.000000e+00> : vector<8x96xf32>
    %39 = tpu.matmul %38, %1, %cst_17 {dimension_numbers = #tpu.dot_dimension_numbers<[1], [0], [0], [1], [0, 0, 1, 1], [], []>} : vector<8x64xf32>, vector<64x96xf32>, vector<8x96xf32> -> vector<8x96xf32>
    %40 = vector.broadcast %2 : vector<1x96xf32> to vector<8x96xf32>
    %41 = arith.addf %39, %40 : vector<8x96xf32>
    %cst_18 = arith.constant dense<0.000000e+00> : vector<8x96xf32>
    %42 = tpu.matmul %36, %3, %cst_18 {dimension_numbers = #tpu.dot_dimension_numbers<[1], [0], [0], [1], [0, 0, 1, 1], [], []>} : vector<8x32xf32>, vector<32x96xf32>, vector<8x96xf32> -> vector<8x96xf32>
    %43 = vector.extract_strided_slice %41 {offsets = [0, 0], sizes = [8, 32], strides = [1, 1]} : vector<8x96xf32> to vector<8x32xf32>
    %44 = vector.extract_strided_slice %42 {offsets = [0, 0], sizes = [8, 32], strides = [1, 1]} : vector<8x96xf32> to vector<8x32xf32>
    %45 = arith.addf %43, %44 : vector<8x32xf32>
    %46 = arith.negf %45 : vector<8x32xf32>
    %47 = math.exp %46 : vector<8x32xf32>
    %cst_19 = arith.constant 1.000000e+00 : f32
    %48 = vector.broadcast %cst_19 : f32 to vector<8x32xf32>
    %49 = arith.addf %48, %47 : vector<8x32xf32>
    %50 = arith.divf %48, %49 : vector<8x32xf32>
    %51 = vector.extract_strided_slice %41 {offsets = [0, 32], sizes = [8, 32], strides = [1, 1]} : vector<8x96xf32> to vector<8x32xf32>
    %52 = vector.extract_strided_slice %42 {offsets = [0, 32], sizes = [8, 32], strides = [1, 1]} : vector<8x96xf32> to vector<8x32xf32>
    %53 = arith.addf %51, %52 : vector<8x32xf32>
    %54 = arith.negf %53 : vector<8x32xf32>
    %55 = math.exp %54 : vector<8x32xf32>
    %cst_20 = arith.constant 1.000000e+00 : f32
    %56 = vector.broadcast %cst_20 : f32 to vector<8x32xf32>
    %57 = arith.addf %56, %55 : vector<8x32xf32>
    %58 = arith.divf %56, %57 : vector<8x32xf32>
    %59 = vector.extract_strided_slice %41 {offsets = [0, 64], sizes = [8, 32], strides = [1, 1]} : vector<8x96xf32> to vector<8x32xf32>
    %60 = vector.extract_strided_slice %42 {offsets = [0, 64], sizes = [8, 32], strides = [1, 1]} : vector<8x96xf32> to vector<8x32xf32>
    %61 = arith.mulf %50, %60 : vector<8x32xf32>
    %62 = arith.addf %59, %61 : vector<8x32xf32>
    %63 = math.tanh %62 : vector<8x32xf32>
    %cst_21 = arith.constant 1.000000e+00 : f32
    %64 = vector.broadcast %cst_21 : f32 to vector<8x32xf32>
    %65 = arith.subf %64, %58 : vector<8x32xf32>
    %66 = arith.mulf %65, %63 : vector<8x32xf32>
    %67 = arith.mulf %58, %36 : vector<8x32xf32>
    %68 = arith.addf %66, %67 : vector<8x32xf32>
    %c2 = arith.constant 2 : index
    %c0_22 = arith.constant 0 : index
    %c0_23 = arith.constant 0 : index
    %69 = vector.load %arg1[%c2, %c0_22, %c0_23] : memref<6x8x64xf32, #tpu.memory_space<vmem>>, vector<1x8x64xf32>
    %70 = vector.shape_cast %69 : vector<1x8x64xf32> to vector<8x64xf32>
    %cst_24 = arith.constant dense<0.000000e+00> : vector<8x96xf32>
    %71 = tpu.matmul %70, %1, %cst_24 {dimension_numbers = #tpu.dot_dimension_numbers<[1], [0], [0], [1], [0, 0, 1, 1], [], []>} : vector<8x64xf32>, vector<64x96xf32>, vector<8x96xf32> -> vector<8x96xf32>
    %72 = vector.broadcast %2 : vector<1x96xf32> to vector<8x96xf32>
    %73 = arith.addf %71, %72 : vector<8x96xf32>
    %cst_25 = arith.constant dense<0.000000e+00> : vector<8x96xf32>
    %74 = tpu.matmul %68, %3, %cst_25 {dimension_numbers = #tpu.dot_dimension_numbers<[1], [0], [0], [1], [0, 0, 1, 1], [], []>} : vector<8x32xf32>, vector<32x96xf32>, vector<8x96xf32> -> vector<8x96xf32>
    %75 = vector.extract_strided_slice %73 {offsets = [0, 0], sizes = [8, 32], strides = [1, 1]} : vector<8x96xf32> to vector<8x32xf32>
    %76 = vector.extract_strided_slice %74 {offsets = [0, 0], sizes = [8, 32], strides = [1, 1]} : vector<8x96xf32> to vector<8x32xf32>
    %77 = arith.addf %75, %76 : vector<8x32xf32>
    %78 = arith.negf %77 : vector<8x32xf32>
    %79 = math.exp %78 : vector<8x32xf32>
    %cst_26 = arith.constant 1.000000e+00 : f32
    %80 = vector.broadcast %cst_26 : f32 to vector<8x32xf32>
    %81 = arith.addf %80, %79 : vector<8x32xf32>
    %82 = arith.divf %80, %81 : vector<8x32xf32>
    %83 = vector.extract_strided_slice %73 {offsets = [0, 32], sizes = [8, 32], strides = [1, 1]} : vector<8x96xf32> to vector<8x32xf32>
    %84 = vector.extract_strided_slice %74 {offsets = [0, 32], sizes = [8, 32], strides = [1, 1]} : vector<8x96xf32> to vector<8x32xf32>
    %85 = arith.addf %83, %84 : vector<8x32xf32>
    %86 = arith.negf %85 : vector<8x32xf32>
    %87 = math.exp %86 : vector<8x32xf32>
    %cst_27 = arith.constant 1.000000e+00 : f32
    %88 = vector.broadcast %cst_27 : f32 to vector<8x32xf32>
    %89 = arith.addf %88, %87 : vector<8x32xf32>
    %90 = arith.divf %88, %89 : vector<8x32xf32>
    %91 = vector.extract_strided_slice %73 {offsets = [0, 64], sizes = [8, 32], strides = [1, 1]} : vector<8x96xf32> to vector<8x32xf32>
    %92 = vector.extract_strided_slice %74 {offsets = [0, 64], sizes = [8, 32], strides = [1, 1]} : vector<8x96xf32> to vector<8x32xf32>
    %93 = arith.mulf %82, %92 : vector<8x32xf32>
    %94 = arith.addf %91, %93 : vector<8x32xf32>
    %95 = math.tanh %94 : vector<8x32xf32>
    %cst_28 = arith.constant 1.000000e+00 : f32
    %96 = vector.broadcast %cst_28 : f32 to vector<8x32xf32>
    %97 = arith.subf %96, %90 : vector<8x32xf32>
    %98 = arith.mulf %97, %95 : vector<8x32xf32>
    %99 = arith.mulf %90, %68 : vector<8x32xf32>
    %100 = arith.addf %98, %99 : vector<8x32xf32>
    %c3 = arith.constant 3 : index
    %c0_29 = arith.constant 0 : index
    %c0_30 = arith.constant 0 : index
    %101 = vector.load %arg1[%c3, %c0_29, %c0_30] : memref<6x8x64xf32, #tpu.memory_space<vmem>>, vector<1x8x64xf32>
    %102 = vector.shape_cast %101 : vector<1x8x64xf32> to vector<8x64xf32>
    %cst_31 = arith.constant dense<0.000000e+00> : vector<8x96xf32>
    %103 = tpu.matmul %102, %1, %cst_31 {dimension_numbers = #tpu.dot_dimension_numbers<[1], [0], [0], [1], [0, 0, 1, 1], [], []>} : vector<8x64xf32>, vector<64x96xf32>, vector<8x96xf32> -> vector<8x96xf32>
    %104 = vector.broadcast %2 : vector<1x96xf32> to vector<8x96xf32>
    %105 = arith.addf %103, %104 : vector<8x96xf32>
    %cst_32 = arith.constant dense<0.000000e+00> : vector<8x96xf32>
    %106 = tpu.matmul %100, %3, %cst_32 {dimension_numbers = #tpu.dot_dimension_numbers<[1], [0], [0], [1], [0, 0, 1, 1], [], []>} : vector<8x32xf32>, vector<32x96xf32>, vector<8x96xf32> -> vector<8x96xf32>
    %107 = vector.extract_strided_slice %105 {offsets = [0, 0], sizes = [8, 32], strides = [1, 1]} : vector<8x96xf32> to vector<8x32xf32>
    %108 = vector.extract_strided_slice %106 {offsets = [0, 0], sizes = [8, 32], strides = [1, 1]} : vector<8x96xf32> to vector<8x32xf32>
    %109 = arith.addf %107, %108 : vector<8x32xf32>
    %110 = arith.negf %109 : vector<8x32xf32>
    %111 = math.exp %110 : vector<8x32xf32>
    %cst_33 = arith.constant 1.000000e+00 : f32
    %112 = vector.broadcast %cst_33 : f32 to vector<8x32xf32>
    %113 = arith.addf %112, %111 : vector<8x32xf32>
    %114 = arith.divf %112, %113 : vector<8x32xf32>
    %115 = vector.extract_strided_slice %105 {offsets = [0, 32], sizes = [8, 32], strides = [1, 1]} : vector<8x96xf32> to vector<8x32xf32>
    %116 = vector.extract_strided_slice %106 {offsets = [0, 32], sizes = [8, 32], strides = [1, 1]} : vector<8x96xf32> to vector<8x32xf32>
    %117 = arith.addf %115, %116 : vector<8x32xf32>
    %118 = arith.negf %117 : vector<8x32xf32>
    %119 = math.exp %118 : vector<8x32xf32>
    %cst_34 = arith.constant 1.000000e+00 : f32
    %120 = vector.broadcast %cst_34 : f32 to vector<8x32xf32>
    %121 = arith.addf %120, %119 : vector<8x32xf32>
    %122 = arith.divf %120, %121 : vector<8x32xf32>
    %123 = vector.extract_strided_slice %105 {offsets = [0, 64], sizes = [8, 32], strides = [1, 1]} : vector<8x96xf32> to vector<8x32xf32>
    %124 = vector.extract_strided_slice %106 {offsets = [0, 64], sizes = [8, 32], strides = [1, 1]} : vector<8x96xf32> to vector<8x32xf32>
    %125 = arith.mulf %114, %124 : vector<8x32xf32>
    %126 = arith.addf %123, %125 : vector<8x32xf32>
    %127 = math.tanh %126 : vector<8x32xf32>
    %cst_35 = arith.constant 1.000000e+00 : f32
    %128 = vector.broadcast %cst_35 : f32 to vector<8x32xf32>
    %129 = arith.subf %128, %122 : vector<8x32xf32>
    %130 = arith.mulf %129, %127 : vector<8x32xf32>
    %131 = arith.mulf %122, %100 : vector<8x32xf32>
    %132 = arith.addf %130, %131 : vector<8x32xf32>
    %c4 = arith.constant 4 : index
    %c0_36 = arith.constant 0 : index
    %c0_37 = arith.constant 0 : index
    %133 = vector.load %arg1[%c4, %c0_36, %c0_37] : memref<6x8x64xf32, #tpu.memory_space<vmem>>, vector<1x8x64xf32>
    %134 = vector.shape_cast %133 : vector<1x8x64xf32> to vector<8x64xf32>
    %cst_38 = arith.constant dense<0.000000e+00> : vector<8x96xf32>
    %135 = tpu.matmul %134, %1, %cst_38 {dimension_numbers = #tpu.dot_dimension_numbers<[1], [0], [0], [1], [0, 0, 1, 1], [], []>} : vector<8x64xf32>, vector<64x96xf32>, vector<8x96xf32> -> vector<8x96xf32>
    %136 = vector.broadcast %2 : vector<1x96xf32> to vector<8x96xf32>
    %137 = arith.addf %135, %136 : vector<8x96xf32>
    %cst_39 = arith.constant dense<0.000000e+00> : vector<8x96xf32>
    %138 = tpu.matmul %132, %3, %cst_39 {dimension_numbers = #tpu.dot_dimension_numbers<[1], [0], [0], [1], [0, 0, 1, 1], [], []>} : vector<8x32xf32>, vector<32x96xf32>, vector<8x96xf32> -> vector<8x96xf32>
    %139 = vector.extract_strided_slice %137 {offsets = [0, 0], sizes = [8, 32], strides = [1, 1]} : vector<8x96xf32> to vector<8x32xf32>
    %140 = vector.extract_strided_slice %138 {offsets = [0, 0], sizes = [8, 32], strides = [1, 1]} : vector<8x96xf32> to vector<8x32xf32>
    %141 = arith.addf %139, %140 : vector<8x32xf32>
    %142 = arith.negf %141 : vector<8x32xf32>
    %143 = math.exp %142 : vector<8x32xf32>
    %cst_40 = arith.constant 1.000000e+00 : f32
    %144 = vector.broadcast %cst_40 : f32 to vector<8x32xf32>
    %145 = arith.addf %144, %143 : vector<8x32xf32>
    %146 = arith.divf %144, %145 : vector<8x32xf32>
    %147 = vector.extract_strided_slice %137 {offsets = [0, 32], sizes = [8, 32], strides = [1, 1]} : vector<8x96xf32> to vector<8x32xf32>
    %148 = vector.extract_strided_slice %138 {offsets = [0, 32], sizes = [8, 32], strides = [1, 1]} : vector<8x96xf32> to vector<8x32xf32>
    %149 = arith.addf %147, %148 : vector<8x32xf32>
    %150 = arith.negf %149 : vector<8x32xf32>
    %151 = math.exp %150 : vector<8x32xf32>
    %cst_41 = arith.constant 1.000000e+00 : f32
    %152 = vector.broadcast %cst_41 : f32 to vector<8x32xf32>
    %153 = arith.addf %152, %151 : vector<8x32xf32>
    %154 = arith.divf %152, %153 : vector<8x32xf32>
    %155 = vector.extract_strided_slice %137 {offsets = [0, 64], sizes = [8, 32], strides = [1, 1]} : vector<8x96xf32> to vector<8x32xf32>
    %156 = vector.extract_strided_slice %138 {offsets = [0, 64], sizes = [8, 32], strides = [1, 1]} : vector<8x96xf32> to vector<8x32xf32>
    %157 = arith.mulf %146, %156 : vector<8x32xf32>
    %158 = arith.addf %155, %157 : vector<8x32xf32>
    %159 = math.tanh %158 : vector<8x32xf32>
    %cst_42 = arith.constant 1.000000e+00 : f32
    %160 = vector.broadcast %cst_42 : f32 to vector<8x32xf32>
    %161 = arith.subf %160, %154 : vector<8x32xf32>
    %162 = arith.mulf %161, %159 : vector<8x32xf32>
    %163 = arith.mulf %154, %132 : vector<8x32xf32>
    %164 = arith.addf %162, %163 : vector<8x32xf32>
    %c5 = arith.constant 5 : index
    %c0_43 = arith.constant 0 : index
    %c0_44 = arith.constant 0 : index
    %165 = vector.load %arg1[%c5, %c0_43, %c0_44] : memref<6x8x64xf32, #tpu.memory_space<vmem>>, vector<1x8x64xf32>
    %166 = vector.shape_cast %165 : vector<1x8x64xf32> to vector<8x64xf32>
    %cst_45 = arith.constant dense<0.000000e+00> : vector<8x96xf32>
    %167 = tpu.matmul %166, %1, %cst_45 {dimension_numbers = #tpu.dot_dimension_numbers<[1], [0], [0], [1], [0, 0, 1, 1], [], []>} : vector<8x64xf32>, vector<64x96xf32>, vector<8x96xf32> -> vector<8x96xf32>
    %168 = vector.broadcast %2 : vector<1x96xf32> to vector<8x96xf32>
    %169 = arith.addf %167, %168 : vector<8x96xf32>
    %cst_46 = arith.constant dense<0.000000e+00> : vector<8x96xf32>
    %170 = tpu.matmul %164, %3, %cst_46 {dimension_numbers = #tpu.dot_dimension_numbers<[1], [0], [0], [1], [0, 0, 1, 1], [], []>} : vector<8x32xf32>, vector<32x96xf32>, vector<8x96xf32> -> vector<8x96xf32>
    %171 = vector.extract_strided_slice %169 {offsets = [0, 0], sizes = [8, 32], strides = [1, 1]} : vector<8x96xf32> to vector<8x32xf32>
    %172 = vector.extract_strided_slice %170 {offsets = [0, 0], sizes = [8, 32], strides = [1, 1]} : vector<8x96xf32> to vector<8x32xf32>
    %173 = arith.addf %171, %172 : vector<8x32xf32>
    %174 = arith.negf %173 : vector<8x32xf32>
    %175 = math.exp %174 : vector<8x32xf32>
    %cst_47 = arith.constant 1.000000e+00 : f32
    %176 = vector.broadcast %cst_47 : f32 to vector<8x32xf32>
    %177 = arith.addf %176, %175 : vector<8x32xf32>
    %178 = arith.divf %176, %177 : vector<8x32xf32>
    %179 = vector.extract_strided_slice %169 {offsets = [0, 32], sizes = [8, 32], strides = [1, 1]} : vector<8x96xf32> to vector<8x32xf32>
    %180 = vector.extract_strided_slice %170 {offsets = [0, 32], sizes = [8, 32], strides = [1, 1]} : vector<8x96xf32> to vector<8x32xf32>
    %181 = arith.addf %179, %180 : vector<8x32xf32>
    %182 = arith.negf %181 : vector<8x32xf32>
    %183 = math.exp %182 : vector<8x32xf32>
    %cst_48 = arith.constant 1.000000e+00 : f32
    %184 = vector.broadcast %cst_48 : f32 to vector<8x32xf32>
    %185 = arith.addf %184, %183 : vector<8x32xf32>
    %186 = arith.divf %184, %185 : vector<8x32xf32>
    %187 = vector.extract_strided_slice %169 {offsets = [0, 64], sizes = [8, 32], strides = [1, 1]} : vector<8x96xf32> to vector<8x32xf32>
    %188 = vector.extract_strided_slice %170 {offsets = [0, 64], sizes = [8, 32], strides = [1, 1]} : vector<8x96xf32> to vector<8x32xf32>
    %189 = arith.mulf %178, %188 : vector<8x32xf32>
    %190 = arith.addf %187, %189 : vector<8x32xf32>
    %191 = math.tanh %190 : vector<8x32xf32>
    %cst_49 = arith.constant 1.000000e+00 : f32
    %192 = vector.broadcast %cst_49 : f32 to vector<8x32xf32>
    %193 = arith.subf %192, %186 : vector<8x32xf32>
    %194 = arith.mulf %193, %191 : vector<8x32xf32>
    %195 = arith.mulf %186, %164 : vector<8x32xf32>
    %196 = arith.addf %194, %195 : vector<8x32xf32>
    %c0_50 = arith.constant 0 : index
    %c0_51 = arith.constant 0 : index
    %197 = vector.load %arg7[%c0_50, %c0_51] : memref<32x32xf32, #tpu.memory_space<vmem>>, vector<32x32xf32>
    %cst_52 = arith.constant dense<0.000000e+00> : vector<8x32xf32>
    %198 = tpu.matmul %196, %197, %cst_52 {dimension_numbers = #tpu.dot_dimension_numbers<[1], [0], [0], [1], [0, 0, 1, 1], [], []>} : vector<8x32xf32>, vector<32x32xf32>, vector<8x32xf32> -> vector<8x32xf32>
    %c0_53 = arith.constant 0 : index
    %c0_54 = arith.constant 0 : index
    %199 = vector.load %arg8[%c0_53, %c0_54] : memref<1x32xf32, #tpu.memory_space<vmem>>, vector<1x32xf32>
    %200 = vector.broadcast %199 : vector<1x32xf32> to vector<8x32xf32>
    %201 = arith.addf %198, %200 : vector<8x32xf32>
    %202 = vector.extract_strided_slice %201 {offsets = [0, 0], sizes = [8, 16], strides = [1, 1]} : vector<8x32xf32> to vector<8x16xf32>
    %203 = vector.extract_strided_slice %201 {offsets = [0, 16], sizes = [8, 16], strides = [1, 1]} : vector<8x32xf32> to vector<8x16xf32>
    %c0_55 = arith.constant 0 : index
    %c0_56 = arith.constant 0 : index
    %204 = vector.load %arg9[%c0_55, %c0_56] : memref<16x1024xf32, #tpu.memory_space<vmem>>, vector<16x1024xf32>
    %cst_57 = arith.constant dense<0.000000e+00> : vector<8x1024xf32>
    %205 = tpu.matmul %202, %204, %cst_57 {dimension_numbers = #tpu.dot_dimension_numbers<[1], [0], [0], [1], [0, 0, 1, 1], [], []>} : vector<8x16xf32>, vector<16x1024xf32>, vector<8x1024xf32> -> vector<8x1024xf32>
    %c0_58 = arith.constant 0 : index
    %c0_59 = arith.constant 0 : index
    %206 = vector.load %arg9[%c0_58, %c0_59] : memref<16x1024xf32, #tpu.memory_space<vmem>>, vector<16x1024xf32>
    %cst_60 = arith.constant dense<0.000000e+00> : vector<8x1024xf32>
    %207 = tpu.matmul %203, %206, %cst_60 {dimension_numbers = #tpu.dot_dimension_numbers<[1], [0], [0], [1], [0, 0, 1, 1], [], []>} : vector<8x16xf32>, vector<16x1024xf32>, vector<8x1024xf32> -> vector<8x1024xf32>
    %208 = arith.mulf %205, %0 : vector<8x1024xf32>
    %209 = arith.addf %208, %207 : vector<8x1024xf32>
    %cst_61 = arith.constant 0.000000e+00 : f32
    %210 = vector.broadcast %cst_61 : f32 to vector<8x1024xf32>
    %211 = arith.maximumf %209, %210 : vector<8x1024xf32>
    %212 = arith.addf %0, %211 : vector<8x1024xf32>
    %c0_62 = arith.constant 0 : index
    %c0_63 = arith.constant 0 : index
    %213 = vector.load %arg10[%c0_62, %c0_63] : memref<1024x64xf32, #tpu.memory_space<vmem>>, vector<1024x64xf32>
    %cst_64 = arith.constant dense<0.000000e+00> : vector<8x64xf32>
    %214 = tpu.matmul %212, %213, %cst_64 {dimension_numbers = #tpu.dot_dimension_numbers<[1], [0], [0], [1], [0, 0, 1, 1], [], []>} : vector<8x1024xf32>, vector<1024x64xf32>, vector<8x64xf32> -> vector<8x64xf32>
    %c0_65 = arith.constant 0 : index
    %c0_66 = arith.constant 0 : index
    %215 = vector.load %arg11[%c0_65, %c0_66] : memref<1x64xf32, #tpu.memory_space<vmem>>, vector<1x64xf32>
    %216 = vector.broadcast %215 : vector<1x64xf32> to vector<8x64xf32>
    %217 = arith.addf %214, %216 : vector<8x64xf32>
    %cst_67 = arith.constant 0.000000e+00 : f32
    %218 = vector.broadcast %cst_67 : f32 to vector<8x64xf32>
    %219 = arith.maximumf %217, %218 : vector<8x64xf32>
    %c0_68 = arith.constant 0 : index
    %c0_69 = arith.constant 0 : index
    %220 = vector.load %arg12[%c0_68, %c0_69] : memref<1024x64xf32, #tpu.memory_space<vmem>>, vector<1024x64xf32>
    %cst_70 = arith.constant dense<0.000000e+00> : vector<8x64xf32>
    %221 = tpu.matmul %0, %220, %cst_70 {dimension_numbers = #tpu.dot_dimension_numbers<[1], [0], [0], [1], [0, 0, 1, 1], [], []>} : vector<8x1024xf32>, vector<1024x64xf32>, vector<8x64xf32> -> vector<8x64xf32>
    %c0_71 = arith.constant 0 : index
    %c0_72 = arith.constant 0 : index
    %222 = vector.load %arg2[%c0_71, %c0_72] : memref<8x8xf32, #tpu.memory_space<vmem>>, vector<8x8xf32>
    %c0_73 = arith.constant 0 : index
    %c0_74 = arith.constant 0 : index
    %223 = vector.load %arg13[%c0_73, %c0_74] : memref<8x64xf32, #tpu.memory_space<vmem>>, vector<8x64xf32>
    %cst_75 = arith.constant dense<0.000000e+00> : vector<8x64xf32>
    %224 = tpu.matmul %222, %223, %cst_75 {dimension_numbers = #tpu.dot_dimension_numbers<[1], [0], [0], [1], [0, 0, 1, 1], [], []>} : vector<8x8xf32>, vector<8x64xf32>, vector<8x64xf32> -> vector<8x64xf32>
    %225 = arith.addf %221, %224 : vector<8x64xf32>
    %c0_76 = arith.constant 0 : index
    %c0_77 = arith.constant 0 : index
    %226 = vector.load %arg14[%c0_76, %c0_77] : memref<1x64xf32, #tpu.memory_space<vmem>>, vector<1x64xf32>
    %227 = vector.broadcast %226 : vector<1x64xf32> to vector<8x64xf32>
    %228 = arith.addf %225, %227 : vector<8x64xf32>
    %cst_78 = arith.constant 0.000000e+00 : f32
    %229 = vector.broadcast %cst_78 : f32 to vector<8x64xf32>
    %230 = arith.maximumf %228, %229 : vector<8x64xf32>
    %231 = tpu.concatenate %219, %230 in 1 : vector<8x64xf32>, vector<8x64xf32> -> vector<8x128xf32>
    %c0_79 = arith.constant 0 : index
    %c0_80 = arith.constant 0 : index
    %232 = vector.load %arg15[%c0_79, %c0_80] : memref<128x256xf32, #tpu.memory_space<vmem>>, vector<128x256xf32>
    %cst_81 = arith.constant dense<0.000000e+00> : vector<8x256xf32>
    %233 = tpu.matmul %231, %232, %cst_81 {dimension_numbers = #tpu.dot_dimension_numbers<[1], [0], [0], [1], [0, 0, 1, 1], [], []>} : vector<8x128xf32>, vector<128x256xf32>, vector<8x256xf32> -> vector<8x256xf32>
    %c0_82 = arith.constant 0 : index
    %c0_83 = arith.constant 0 : index
    %234 = vector.load %arg17[%c0_82, %c0_83] : memref<1x256xf32, #tpu.memory_space<vmem>>, vector<1x256xf32>
    %235 = vector.broadcast %234 : vector<1x256xf32> to vector<8x256xf32>
    %236 = arith.addf %233, %235 : vector<8x256xf32>
    %c0_84 = arith.constant 0 : index
    %c0_85 = arith.constant 0 : index
    %237 = vector.load %arg24[%c0_84, %c0_85] : memref<8x256xf32, #tpu.memory_space<vmem>>, vector<8x256xf32>
    tpu.vector_store %arg24[%c0_84, %c0_85], %236 {strides = array<i32>} : memref<8x256xf32, #tpu.memory_space<vmem>>, vector<8x256xf32>,
    %c0_86 = arith.constant 0 : index
    %c0_87 = arith.constant 0 : index
    %238 = vector.load %arg16[%c0_86, %c0_87] : memref<64x256xf32, #tpu.memory_space<vmem>>, vector<64x256xf32>
    %c0_88 = arith.constant 0 : index
    %c0_89 = arith.constant 0 : index
    %239 = vector.load %arg3[%c0_88, %c0_89] : memref<2x128xf32, #tpu.memory_space<vmem>>, vector<2x128xf32>
    %240 = vector.extract_strided_slice %239 {offsets = [0, 0], sizes = [2, 64], strides = [1, 1]} : vector<2x128xf32> to vector<2x64xf32>
    %241 = vector.extract_strided_slice %239 {offsets = [0, 64], sizes = [2, 64], strides = [1, 1]} : vector<2x128xf32> to vector<2x64xf32>
    %c0_90 = arith.constant 0 : index
    %c0_91 = arith.constant 0 : index
    %242 = vector.load %arg24[%c0_90, %c0_91] : memref<8x256xf32, #tpu.memory_space<vmem>>, vector<2x256xf32>
    %cst_92 = arith.constant dense<0.000000e+00> : vector<2x256xf32>
    %243 = tpu.matmul %240, %238, %cst_92 {dimension_numbers = #tpu.dot_dimension_numbers<[1], [0], [0], [1], [0, 0, 1, 1], [], []>} : vector<2x64xf32>, vector<64x256xf32>, vector<2x256xf32> -> vector<2x256xf32>
    %244 = arith.addf %242, %243 : vector<2x256xf32>
    %245 = vector.extract_strided_slice %244 {offsets = [0, 0], sizes = [2, 64], strides = [1, 1]} : vector<2x256xf32> to vector<2x64xf32>
    %246 = arith.negf %245 : vector<2x64xf32>
    %247 = math.exp %246 : vector<2x64xf32>
    %cst_93 = arith.constant 1.000000e+00 : f32
    %248 = vector.broadcast %cst_93 : f32 to vector<2x64xf32>
    %249 = arith.addf %248, %247 : vector<2x64xf32>
    %250 = arith.divf %248, %249 : vector<2x64xf32>
    %251 = vector.extract_strided_slice %244 {offsets = [0, 64], sizes = [2, 64], strides = [1, 1]} : vector<2x256xf32> to vector<2x64xf32>
    %252 = arith.negf %251 : vector<2x64xf32>
    %253 = math.exp %252 : vector<2x64xf32>
    %cst_94 = arith.constant 1.000000e+00 : f32
    %254 = vector.broadcast %cst_94 : f32 to vector<2x64xf32>
    %255 = arith.addf %254, %253 : vector<2x64xf32>
    %256 = arith.divf %254, %255 : vector<2x64xf32>
    %257 = vector.extract_strided_slice %244 {offsets = [0, 128], sizes = [2, 64], strides = [1, 1]} : vector<2x256xf32> to vector<2x64xf32>
    %258 = math.tanh %257 : vector<2x64xf32>
    %259 = vector.extract_strided_slice %244 {offsets = [0, 192], sizes = [2, 64], strides = [1, 1]} : vector<2x256xf32> to vector<2x64xf32>
    %260 = arith.negf %259 : vector<2x64xf32>
    %261 = math.exp %260 : vector<2x64xf32>
    %cst_95 = arith.constant 1.000000e+00 : f32
    %262 = vector.broadcast %cst_95 : f32 to vector<2x64xf32>
    %263 = arith.addf %262, %261 : vector<2x64xf32>
    %264 = arith.divf %262, %263 : vector<2x64xf32>
    %265 = arith.mulf %256, %241 : vector<2x64xf32>
    %266 = arith.mulf %250, %258 : vector<2x64xf32>
    %267 = arith.addf %265, %266 : vector<2x64xf32>
    %268 = math.tanh %267 : vector<2x64xf32>
    %269 = arith.mulf %264, %268 : vector<2x64xf32>
    %c2_96 = arith.constant 2 : index
    %c0_97 = arith.constant 0 : index
    %270 = vector.load %arg24[%c2_96, %c0_97] : memref<8x256xf32, #tpu.memory_space<vmem>>, vector<2x256xf32>
    %cst_98 = arith.constant dense<0.000000e+00> : vector<2x256xf32>
    %271 = tpu.matmul %269, %238, %cst_98 {dimension_numbers = #tpu.dot_dimension_numbers<[1], [0], [0], [1], [0, 0, 1, 1], [], []>} : vector<2x64xf32>, vector<64x256xf32>, vector<2x256xf32> -> vector<2x256xf32>
    %272 = arith.addf %270, %271 : vector<2x256xf32>
    %273 = vector.extract_strided_slice %272 {offsets = [0, 0], sizes = [2, 64], strides = [1, 1]} : vector<2x256xf32> to vector<2x64xf32>
    %274 = arith.negf %273 : vector<2x64xf32>
    %275 = math.exp %274 : vector<2x64xf32>
    %cst_99 = arith.constant 1.000000e+00 : f32
    %276 = vector.broadcast %cst_99 : f32 to vector<2x64xf32>
    %277 = arith.addf %276, %275 : vector<2x64xf32>
    %278 = arith.divf %276, %277 : vector<2x64xf32>
    %279 = vector.extract_strided_slice %272 {offsets = [0, 64], sizes = [2, 64], strides = [1, 1]} : vector<2x256xf32> to vector<2x64xf32>
    %280 = arith.negf %279 : vector<2x64xf32>
    %281 = math.exp %280 : vector<2x64xf32>
    %cst_100 = arith.constant 1.000000e+00 : f32
    %282 = vector.broadcast %cst_100 : f32 to vector<2x64xf32>
    %283 = arith.addf %282, %281 : vector<2x64xf32>
    %284 = arith.divf %282, %283 : vector<2x64xf32>
    %285 = vector.extract_strided_slice %272 {offsets = [0, 128], sizes = [2, 64], strides = [1, 1]} : vector<2x256xf32> to vector<2x64xf32>
    %286 = math.tanh %285 : vector<2x64xf32>
    %287 = vector.extract_strided_slice %272 {offsets = [0, 192], sizes = [2, 64], strides = [1, 1]} : vector<2x256xf32> to vector<2x64xf32>
    %288 = arith.negf %287 : vector<2x64xf32>
    %289 = math.exp %288 : vector<2x64xf32>
    %cst_101 = arith.constant 1.000000e+00 : f32
    %290 = vector.broadcast %cst_101 : f32 to vector<2x64xf32>
    %291 = arith.addf %290, %289 : vector<2x64xf32>
    %292 = arith.divf %290, %291 : vector<2x64xf32>
    %293 = arith.mulf %284, %267 : vector<2x64xf32>
    %294 = arith.mulf %278, %286 : vector<2x64xf32>
    %295 = arith.addf %293, %294 : vector<2x64xf32>
    %296 = math.tanh %295 : vector<2x64xf32>
    %297 = arith.mulf %292, %296 : vector<2x64xf32>
    %c4_102 = arith.constant 4 : index
    %c0_103 = arith.constant 0 : index
    %298 = vector.load %arg24[%c4_102, %c0_103] : memref<8x256xf32, #tpu.memory_space<vmem>>, vector<2x256xf32>
    %cst_104 = arith.constant dense<0.000000e+00> : vector<2x256xf32>
    %299 = tpu.matmul %297, %238, %cst_104 {dimension_numbers = #tpu.dot_dimension_numbers<[1], [0], [0], [1], [0, 0, 1, 1], [], []>} : vector<2x64xf32>, vector<64x256xf32>, vector<2x256xf32> -> vector<2x256xf32>
    %300 = arith.addf %298, %299 : vector<2x256xf32>
    %301 = vector.extract_strided_slice %300 {offsets = [0, 0], sizes = [2, 64], strides = [1, 1]} : vector<2x256xf32> to vector<2x64xf32>
    %302 = arith.negf %301 : vector<2x64xf32>
    %303 = math.exp %302 : vector<2x64xf32>
    %cst_105 = arith.constant 1.000000e+00 : f32
    %304 = vector.broadcast %cst_105 : f32 to vector<2x64xf32>
    %305 = arith.addf %304, %303 : vector<2x64xf32>
    %306 = arith.divf %304, %305 : vector<2x64xf32>
    %307 = vector.extract_strided_slice %300 {offsets = [0, 64], sizes = [2, 64], strides = [1, 1]} : vector<2x256xf32> to vector<2x64xf32>
    %308 = arith.negf %307 : vector<2x64xf32>
    %309 = math.exp %308 : vector<2x64xf32>
    %cst_106 = arith.constant 1.000000e+00 : f32
    %310 = vector.broadcast %cst_106 : f32 to vector<2x64xf32>
    %311 = arith.addf %310, %309 : vector<2x64xf32>
    %312 = arith.divf %310, %311 : vector<2x64xf32>
    %313 = vector.extract_strided_slice %300 {offsets = [0, 128], sizes = [2, 64], strides = [1, 1]} : vector<2x256xf32> to vector<2x64xf32>
    %314 = math.tanh %313 : vector<2x64xf32>
    %315 = vector.extract_strided_slice %300 {offsets = [0, 192], sizes = [2, 64], strides = [1, 1]} : vector<2x256xf32> to vector<2x64xf32>
    %316 = arith.negf %315 : vector<2x64xf32>
    %317 = math.exp %316 : vector<2x64xf32>
    %cst_107 = arith.constant 1.000000e+00 : f32
    %318 = vector.broadcast %cst_107 : f32 to vector<2x64xf32>
    %319 = arith.addf %318, %317 : vector<2x64xf32>
    %320 = arith.divf %318, %319 : vector<2x64xf32>
    %321 = arith.mulf %312, %295 : vector<2x64xf32>
    %322 = arith.mulf %306, %314 : vector<2x64xf32>
    %323 = arith.addf %321, %322 : vector<2x64xf32>
    %324 = math.tanh %323 : vector<2x64xf32>
    %325 = arith.mulf %320, %324 : vector<2x64xf32>
    %c6 = arith.constant 6 : index
    %c0_108 = arith.constant 0 : index
    %326 = vector.load %arg24[%c6, %c0_108] : memref<8x256xf32, #tpu.memory_space<vmem>>, vector<2x256xf32>
    %cst_109 = arith.constant dense<0.000000e+00> : vector<2x256xf32>
    %327 = tpu.matmul %325, %238, %cst_109 {dimension_numbers = #tpu.dot_dimension_numbers<[1], [0], [0], [1], [0, 0, 1, 1], [], []>} : vector<2x64xf32>, vector<64x256xf32>, vector<2x256xf32> -> vector<2x256xf32>
    %328 = arith.addf %326, %327 : vector<2x256xf32>
    %329 = vector.extract_strided_slice %328 {offsets = [0, 0], sizes = [2, 64], strides = [1, 1]} : vector<2x256xf32> to vector<2x64xf32>
    %330 = arith.negf %329 : vector<2x64xf32>
    %331 = math.exp %330 : vector<2x64xf32>
    %cst_110 = arith.constant 1.000000e+00 : f32
    %332 = vector.broadcast %cst_110 : f32 to vector<2x64xf32>
    %333 = arith.addf %332, %331 : vector<2x64xf32>
    %334 = arith.divf %332, %333 : vector<2x64xf32>
    %335 = vector.extract_strided_slice %328 {offsets = [0, 64], sizes = [2, 64], strides = [1, 1]} : vector<2x256xf32> to vector<2x64xf32>
    %336 = arith.negf %335 : vector<2x64xf32>
    %337 = math.exp %336 : vector<2x64xf32>
    %cst_111 = arith.constant 1.000000e+00 : f32
    %338 = vector.broadcast %cst_111 : f32 to vector<2x64xf32>
    %339 = arith.addf %338, %337 : vector<2x64xf32>
    %340 = arith.divf %338, %339 : vector<2x64xf32>
    %341 = vector.extract_strided_slice %328 {offsets = [0, 128], sizes = [2, 64], strides = [1, 1]} : vector<2x256xf32> to vector<2x64xf32>
    %342 = math.tanh %341 : vector<2x64xf32>
    %343 = vector.extract_strided_slice %328 {offsets = [0, 192], sizes = [2, 64], strides = [1, 1]} : vector<2x256xf32> to vector<2x64xf32>
    %344 = arith.negf %343 : vector<2x64xf32>
    %345 = math.exp %344 : vector<2x64xf32>
    %cst_112 = arith.constant 1.000000e+00 : f32
    %346 = vector.broadcast %cst_112 : f32 to vector<2x64xf32>
    %347 = arith.addf %346, %345 : vector<2x64xf32>
    %348 = arith.divf %346, %347 : vector<2x64xf32>
    %349 = arith.mulf %340, %323 : vector<2x64xf32>
    %350 = arith.mulf %334, %342 : vector<2x64xf32>
    %351 = arith.addf %349, %350 : vector<2x64xf32>
    %352 = math.tanh %351 : vector<2x64xf32>
    %353 = arith.mulf %348, %352 : vector<2x64xf32>
    %354 = tpu.concatenate %353, %351 in 1 : vector<2x64xf32>, vector<2x64xf32> -> vector<2x128xf32>
    %c0_113 = arith.constant 0 : index
    %c0_114 = arith.constant 0 : index
    %355 = vector.load %arg23[%c0_113, %c0_114] : memref<2x128xf32, #tpu.memory_space<vmem>>, vector<2x128xf32>
    tpu.vector_store %arg23[%c0_113, %c0_114], %354 {strides = array<i32>} : memref<2x128xf32, #tpu.memory_space<vmem>>, vector<2x128xf32>,
    %356 = tpu.concatenate %269, %297, %325, %353 in 0 : vector<2x64xf32>, vector<2x64xf32>, vector<2x64xf32>, vector<2x64xf32> -> vector<8x64xf32>
    %357 = tpu.concatenate %356, %196 in 1 : vector<8x64xf32>, vector<8x32xf32> -> vector<8x96xf32>
    %c0_115 = arith.constant 0 : index
    %c0_116 = arith.constant 0 : index
    %358 = vector.load %arg18[%c0_115, %c0_116] : memref<96x64xf32, #tpu.memory_space<vmem>>, vector<96x64xf32>
    %cst_117 = arith.constant dense<0.000000e+00> : vector<8x64xf32>
    %359 = tpu.matmul %357, %358, %cst_117 {dimension_numbers = #tpu.dot_dimension_numbers<[1], [0], [0], [1], [0, 0, 1, 1], [], []>} : vector<8x96xf32>, vector<96x64xf32>, vector<8x64xf32> -> vector<8x64xf32>
    %c0_118 = arith.constant 0 : index
    %c0_119 = arith.constant 0 : index
    %360 = vector.load %arg19[%c0_118, %c0_119] : memref<1x64xf32, #tpu.memory_space<vmem>>, vector<1x64xf32>
    %361 = vector.broadcast %360 : vector<1x64xf32> to vector<8x64xf32>
    %362 = arith.addf %359, %361 : vector<8x64xf32>
    %cst_120 = arith.constant 0.000000e+00 : f32
    %363 = vector.broadcast %cst_120 : f32 to vector<8x64xf32>
    %364 = arith.maximumf %362, %363 : vector<8x64xf32>
    %c0_121 = arith.constant 0 : index
    %c0_122 = arith.constant 0 : index
    %365 = vector.load %arg20[%c0_121, %c0_122] : memref<64x7xf32, #tpu.memory_space<vmem>>, vector<64x7xf32>
    %cst_123 = arith.constant dense<0.000000e+00> : vector<8x7xf32>
    %366 = tpu.matmul %364, %365, %cst_123 {dimension_numbers = #tpu.dot_dimension_numbers<[1], [0], [0], [1], [0, 0, 1, 1], [], []>} : vector<8x64xf32>, vector<64x7xf32>, vector<8x7xf32> -> vector<8x7xf32>
    %c0_124 = arith.constant 0 : index
    %c0_125 = arith.constant 0 : index
    %367 = vector.load %arg21[%c0_124, %c0_125] : memref<1x7xf32, #tpu.memory_space<vmem>>, vector<1x7xf32>
    %368 = vector.broadcast %367 : vector<1x7xf32> to vector<8x7xf32>
    %369 = arith.addf %366, %368 : vector<8x7xf32>
    %c0_126 = arith.constant 0 : index
    %c0_127 = arith.constant 0 : index
    %370 = vector.load %arg22[%c0_126, %c0_127] : memref<8x7xf32, #tpu.memory_space<vmem>>, vector<8x7xf32>
    tpu.vector_store %arg22[%c0_126, %c0_127], %369 {strides = array<i32>} : memref<8x7xf32, #tpu.memory_space<vmem>>, vector<8x7xf32>,
    return
  }
}

</mosaic_0001>

<bundles_post_ra>
// kernel: eq.1
= control target key start
LH: loop header
LB: loop body
LE: loop exit
PB: predicated region body
PF: predicated region fallthrough
CT: control target
= control target key end

     0   :  { %vm7_vm0 = vcmask 15360   ;;  %s37_s8 = smov 2   ;;  %s38_s9 = smov 4   ;;  %vm13_vm1 = vcmask 64560   ;;  %vm19_vm2 = vcmask 48160   ;;  %vm25_vm3 = vcmask 31760   ;;  %s55_s0 = inlined_call_operand.vmem [shape: s32[4,2], index: 0, kind: input, shape index: {}]   ;;  %s56_s1 = inlined_call_operand.vmem [shape: s32[8], index: 1, kind: output, shape index: {}]  }
   0x1   :  { %v4_v0 = vld [vmem:[%s55_s0] sm:$0xf]  ;;  %s36_s0 = smov 6  }
   0x2   :  { %5 = vst [vmem:[#allocation1] sm:$0xf] %v4_v0 }
   0x9   :  { %v10_v1 = vld [vmem:[#allocation1 + $0x3] sm:$0x1]   ;;  %v22_v2 = vld [vmem:[#allocation1 + $0x1] sm:$0x1]   ;;  %v6_v3 = vld [vmem:[#allocation1] sm:$0x1]  }
   0xa   :  { %11 = vrot.lane.b32.xlu0 %v10_v1, %s36_s0  ;;  %23 = vrot.lane.b32.xlu1 %v22_v2, %s37_s8  ;;  %v16_v4 = vld [vmem:[#allocation1 + $0x2] sm:$0x1]   ;;  %8 = vst.msk [vmem:[#allocation0] sm:$0x1] %vm7_vm0, %v6_v3  }
   0xe   :  { %17 = vrot.lane.b32.xlu0 %v16_v4, %s38_s9 }
  0x7c   :  { %v12_v5 = vpop.permute.xlu0 %11   ;;  %v24_v6 = vpop.permute.xlu1 %23  }
  0x7d   :  { %14 = vst.msk [vmem:[#allocation0] sm:$0x1] %vm13_vm1, %v12_v5  }
  0x80   :  { %v18_v7 = vpop.permute.xlu0 %17  }
  0x81   :  { %20 = vst.msk [vmem:[#allocation0] sm:$0x1] %vm19_vm2, %v18_v7  }
  0x82   :  { %26 = vst.msk [vmem:[#allocation0] sm:$0x1] %vm25_vm3, %v24_v6  }
  0x89   :  { %v30_v8 = vld [vmem:[#allocation0] sm:$0x1] }
  0x8a   :  { %32 = vst [vmem:[%s56_s1] sm:$0x1] %v30_v8 }

// kernel: babyai_rl_forward.3
= control target key start
LH: loop header
LB: loop body
LE: loop exit
PB: predicated region body
PF: predicated region fallthrough
CT: control target
= control target key end

     0   :  { %vm282_vm0 = vcmask 1042432   ;;  %vm89_vm1 = vcmask 220160   ;;  %vm1057_vm2 = vmmov 1   ;;  %vm735_vm4 = vcmask 130048   ;;  %s1671_s1 = inlined_call_operand.vmem [shape: f32[27,16], index: 1, kind: input, shape index: {}]   ;;  %s1672_s0 = inlined_call_operand.vmem [shape: f32[512,27], index: 0, kind: input, shape index: {}]   ;;  %s1673_s2 = inlined_call_operand.vmem [shape: f32[1,16], index: 2, kind: input, shape index: {}]   ;;  %s1674_s3 = inlined_call_operand.vmem [shape: f32[512,16], index: 3, kind: output, shape index: {}]  }
   0x1   :  { %v78_v0 = vld [vmem:[%s1671_s1] sm:$0xff]  ;;  %v79_v1 = vld [vmem:[%s1671_s1 + $0x8] sm:$0xff]  ;;  %v80_v2 = vld [vmem:[%s1671_s1 + $0x10] sm:$0xff] }
   0x2   :  { %v1042_v3 = vpack.c.bf16 %v79_v1, %v78_v0  ;;  %v81_v4 = vld [vmem:[%s1671_s1 + $0x18] sm:$0x7]  ;;  %v14_v5 = vld [vmem:[%s1672_s0] sm:$0xff]  ;;  %vm1047_vm3 = vmpackc.low %vm282_vm0, %vm1057_vm2 }
   0x3   :  { %v1046_v6 = vpack.c.bf16 %v81_v4, %v80_v2  ;;  %946 = vmatprep.mubr.msk.f32.mxu0 %vm89_vm1, %v14_v5  ;;  %v46_v7 = vld [vmem:[%s1672_s0 + $0x100] sm:$0xff]  ;;  %v15_v8 = vld [vmem:[%s1672_s0 + $0x8] sm:$0xff]  ;;  %v16_v10 = vld [vmem:[%s1672_s0 + $0x10] sm:$0xff] }
   0x4   :  { %1043 = vmatprep.subr.bf16.mxu0 %v1042_v3  ;;  %1052 = vmatprep.subr.bf16.mxu1 %v1042_v3  ;;  %v47_v9 = vld [vmem:[%s1672_s0 + $0x108] sm:$0xff]  ;;  %v48_v11 = vld [vmem:[%s1672_s0 + $0x110] sm:$0xff]  ;;  %v17_v12 = vld [vmem:[%s1672_s0 + $0x18] sm:$0xff] }
   0x5   :  { %1045 = vmatpush3.bf16.msra.mxu0 %v1042_v3  ;;  %1054 = vmatpush3.bf16.msra.mxu1 %v1042_v3  ;;  %v49_v13 = vld [vmem:[%s1672_s0 + $0x118] sm:$0xff]  ;;  %v18_v14 = vld [vmem:[%s1672_s0 + $0x20] sm:$0xff]  ;;  %v19_v16 = vld [vmem:[%s1672_s0 + $0x28] sm:$0xff] }
   0x6   :  { %1048 = vmatprep.subr.msk.bf16.mxu0 %vm1047_vm3, %v1046_v6  ;;  %1053 = vmatprep.subr.msk.bf16.mxu1 %vm1047_vm3, %v1046_v6  ;;  %v50_v15 = vld [vmem:[%s1672_s0 + $0x120] sm:$0xff]  ;;  %v51_v17 = vld [vmem:[%s1672_s0 + $0x128] sm:$0xff]  ;;  %v20_v18 = vld [vmem:[%s1672_s0 + $0x30] sm:$0xff] }
   0x7   :  { %994 = vmatprep.mubr.msk.f32.mxu1 %vm89_vm1, %v46_v7  ;;  %v52_v19 = vld [vmem:[%s1672_s0 + $0x130] sm:$0xff]  ;;  %v21_v20 = vld [vmem:[%s1672_s0 + $0x38] sm:$0xff]  ;;  %v22_v22 = vld [vmem:[%s1672_s0 + $0x40] sm:$0xff] }
   0x8   :  { %v53_v21 = vld [vmem:[%s1672_s0 + $0x138] sm:$0xff]  ;;  %v54_v23 = vld [vmem:[%s1672_s0 + $0x140] sm:$0xff]  ;;  %v23_v24 = vld [vmem:[%s1672_s0 + $0x48] sm:$0xff] }
   0x9   :  { %1051 = vmatpush3.bf16.msk.msra.mxu0 %vm1047_vm3, %v1046_v6  ;;  %1055 = vmatpush3.bf16.msk.msra.mxu1 %vm1047_vm3, %v1046_v6  ;;  %v55_v25 = vld [vmem:[%s1672_s0 + $0x148] sm:$0xff]  ;;  %v24_v26 = vld [vmem:[%s1672_s0 + $0x50] sm:$0xff]  ;;  %v25_v28 = vld [vmem:[%s1672_s0 + $0x58] sm:$0xff] }
   0xa   :  { %v56_v27 = vld [vmem:[%s1672_s0 + $0x150] sm:$0xff]  ;;  %v57_v29 = vld [vmem:[%s1672_s0 + $0x158] sm:$0xff]  ;;  %v26_v30 = vld [vmem:[%s1672_s0 + $0x60] sm:$0xff] }
   0xb   :  { %v58_v31 = vld [vmem:[%s1672_s0 + $0x160] sm:$0xff]  ;;  %v27_v32 = vld [vmem:[%s1672_s0 + $0x68] sm:$0xff]  ;;  %v28_v34 = vld [vmem:[%s1672_s0 + $0x70] sm:$0xff] }
   0xc   :  { %947 = vmatmul.mubr.msk.f32.vlgmr.msra.gmra.mrb[0].mxu0 %vm89_vm1, %v15_v8  ;;  %995 = vmatmul.mubr.msk.f32.vlgmr.msra.gmra.mrb[0].mxu1 %vm89_vm1, %v47_v9  ;;  %v59_v33 = vld [vmem:[%s1672_s0 + $0x168] sm:$0xff]  ;;  %v60_v35 = vld [vmem:[%s1672_s0 + $0x170] sm:$0xff]  ;;  %v29_v36 = vld [vmem:[%s1672_s0 + $0x78] sm:$0xff] }
   0xd   :  { %949 = vmatprep.mubr.msk.f32.mxu0 %vm89_vm1, %v16_v10  ;;  %997 = vmatprep.mubr.msk.f32.mxu1 %vm89_vm1, %v48_v11  ;;  %v61_v37 = vld [vmem:[%s1672_s0 + $0x178] sm:$0xff]  ;;  %v30_v38 = vld [vmem:[%s1672_s0 + $0x80] sm:$0xff]  ;;  %v31_v40 = vld [vmem:[%s1672_s0 + $0x88] sm:$0xff] }
   0xe   :  { %v62_v39 = vld [vmem:[%s1672_s0 + $0x180] sm:$0xff]  ;;  %v63_v41 = vld [vmem:[%s1672_s0 + $0x188] sm:$0xff]  ;;  %v32_v42 = vld [vmem:[%s1672_s0 + $0x90] sm:$0xff] }
   0xf   :  { %v64_v43 = vld [vmem:[%s1672_s0 + $0x190] sm:$0xff]  ;;  %v33_v44 = vld [vmem:[%s1672_s0 + $0x98] sm:$0xff]  ;;  %v34_v46 = vld [vmem:[%s1672_s0 + $0xa0] sm:$0xff] }
  0x10   :  { %950 = vmatmul.mubr.msk.f32.gmra.mrb[2].mxu0 %vm89_vm1, %v17_v12  ;;  %998 = vmatmul.mubr.msk.f32.gmra.mrb[2].mxu1 %vm89_vm1, %v49_v13  ;;  %v65_v45 = vld [vmem:[%s1672_s0 + $0x198] sm:$0xff]  ;;  %v66_v47 = vld [vmem:[%s1672_s0 + $0x1a0] sm:$0xff]  ;;  %v35_v48 = vld [vmem:[%s1672_s0 + $0xa8] sm:$0xff] }
  0x11   :  { %952 = vmatprep.mubr.msk.f32.mxu0 %vm89_vm1, %v18_v14  ;;  %1000 = vmatprep.mubr.msk.f32.mxu1 %vm89_vm1, %v50_v15  ;;  %v67_v49 = vld [vmem:[%s1672_s0 + $0x1a8] sm:$0xff]  ;;  %v36_v50 = vld [vmem:[%s1672_s0 + $0xb0] sm:$0xff]  ;;  %v37_v52 = vld [vmem:[%s1672_s0 + $0xb8] sm:$0xff] }
  0x12   :  { %v68_v51 = vld [vmem:[%s1672_s0 + $0x1b0] sm:$0xff]  ;;  %v69_v53 = vld [vmem:[%s1672_s0 + $0x1b8] sm:$0xff]  ;;  %v38_v54 = vld [vmem:[%s1672_s0 + $0xc0] sm:$0xff] }
  0x13   :  { %v70_v55 = vld [vmem:[%s1672_s0 + $0x1c0] sm:$0xff]  ;;  %v39_v56 = vld [vmem:[%s1672_s0 + $0xc8] sm:$0xff]  ;;  %v40_v58 = vld [vmem:[%s1672_s0 + $0xd0] sm:$0xff] }
  0x14   :  { %953 = vmatmul.mubr.msk.f32.gmra.mrb[4].mxu0 %vm89_vm1, %v19_v16  ;;  %1001 = vmatmul.mubr.msk.f32.gmra.mrb[4].mxu1 %vm89_vm1, %v51_v17  ;;  %v71_v57 = vld [vmem:[%s1672_s0 + $0x1c8] sm:$0xff]  ;;  %v72_v59 = vld [vmem:[%s1672_s0 + $0x1d0] sm:$0xff]  ;;  %v41_v60 = vld [vmem:[%s1672_s0 + $0xd8] sm:$0xff] }
  0x15   :  { %955 = vmatprep.mubr.msk.f32.mxu0 %vm89_vm1, %v20_v18  ;;  %1003 = vmatprep.mubr.msk.f32.mxu1 %vm89_vm1, %v52_v19  ;;  %v73_v61 = vld [vmem:[%s1672_s0 + $0x1d8] sm:$0xff]  ;;  %v42_v62 = vld [vmem:[%s1672_s0 + $0xe0] sm:$0xff]  ;;  %v43_v0 = vld [vmem:[%s1672_s0 + $0xe8] sm:$0xff] }
  0x16   :  { %v74_v63 = vld [vmem:[%s1672_s0 + $0x1e0] sm:$0xff]  ;;  %v75_v1 = vld [vmem:[%s1672_s0 + $0x1e8] sm:$0xff]  ;;  %v44_v2 = vld [vmem:[%s1672_s0 + $0xf0] sm:$0xff] }
  0x17   :  { %v76_v3 = vld [vmem:[%s1672_s0 + $0x1f0] sm:$0xff]  ;;  %v45_v4 = vld [vmem:[%s1672_s0 + $0xf8] sm:$0xff]  ;;  %v1349_v6 = vld [vmem:[%s1673_s2] ss:$0 sm:$0xff] }
  0x18   :  { %956 = vmatmul.mubr.msk.f32.gmra.mrb[6].mxu0 %vm89_vm1, %v21_v20  ;;  %1004 = vmatmul.mubr.msk.f32.gmra.mrb[6].mxu1 %vm89_vm1, %v53_v21  ;;  %v77_v5 = vld [vmem:[%s1672_s0 + $0x1f8] sm:$0xff] }
  0x19   :  { %958 = vmatprep.mubr.msk.f32.mxu0 %vm89_vm1, %v22_v22  ;;  %1006 = vmatprep.mubr.msk.f32.mxu1 %vm89_vm1, %v54_v23 }
  0x1c   :  { %959 = vmatmul.mubr.msk.f32.gmra.mrb[8].mxu0 %vm89_vm1, %v23_v24  ;;  %1007 = vmatmul.mubr.msk.f32.gmra.mrb[8].mxu1 %vm89_vm1, %v55_v25 }
  0x1d   :  { %961 = vmatprep.mubr.msk.f32.mxu0 %vm89_vm1, %v24_v26  ;;  %1009 = vmatprep.mubr.msk.f32.mxu1 %vm89_vm1, %v56_v27 }
  0x20   :  { %962 = vmatmul.mubr.msk.f32.gmra.mrb[10].mxu0 %vm89_vm1, %v25_v28  ;;  %1010 = vmatmul.mubr.msk.f32.gmra.mrb[10].mxu1 %vm89_vm1, %v57_v29 }
  0x21   :  { %964 = vmatprep.mubr.msk.f32.mxu0 %vm89_vm1, %v26_v30  ;;  %1012 = vmatprep.mubr.msk.f32.mxu1 %vm89_vm1, %v58_v31 }
  0x24   :  { %965 = vmatmul.mubr.msk.f32.gmra.mrb[12].mxu0 %vm89_vm1, %v27_v32  ;;  %1013 = vmatmul.mubr.msk.f32.gmra.mrb[12].mxu1 %vm89_vm1, %v59_v33 }
  0x25   :  { %967 = vmatprep.mubr.msk.f32.mxu0 %vm89_vm1, %v28_v34  ;;  %1015 = vmatprep.mubr.msk.f32.mxu1 %vm89_vm1, %v60_v35 }
  0x28   :  { %968 = vmatmul.mubr.msk.f32.gmra.mrb[14].mxu0 %vm89_vm1, %v29_v36  ;;  %1016 = vmatmul.mubr.msk.f32.gmra.mrb[14].mxu1 %vm89_vm1, %v61_v37 }
  0x29   :  { %970 = vmatprep.mubr.msk.f32.mxu0 %vm89_vm1, %v30_v38  ;;  %1018 = vmatprep.mubr.msk.f32.mxu1 %vm89_vm1, %v62_v39 }
  0x2c   :  { %971 = vmatmul.mubr.msk.f32.gmra.mrb[16].mxu0 %vm89_vm1, %v31_v40  ;;  %1019 = vmatmul.mubr.msk.f32.gmra.mrb[16].mxu1 %vm89_vm1, %v63_v41 }
  0x2d   :  { %973 = vmatprep.mubr.msk.f32.mxu0 %vm89_vm1, %v32_v42  ;;  %1021 = vmatprep.mubr.msk.f32.mxu1 %vm89_vm1, %v64_v43 }
  0x30   :  { %974 = vmatmul.mubr.msk.f32.gmra.mrb[18].mxu0 %vm89_vm1, %v33_v44  ;;  %1022 = vmatmul.mubr.msk.f32.gmra.mrb[18].mxu1 %vm89_vm1, %v65_v45 }
  0x31   :  { %976 = vmatprep.mubr.msk.f32.mxu0 %vm89_vm1, %v34_v46  ;;  %1024 = vmatprep.mubr.msk.f32.mxu1 %vm89_vm1, %v66_v47 }
  0x34   :  { %977 = vmatmul.mubr.msk.f32.gmra.mrb[20].mxu0 %vm89_vm1, %v35_v48  ;;  %1025 = vmatmul.mubr.msk.f32.gmra.mrb[20].mxu1 %vm89_vm1, %v67_v49 }
  0x35   :  { %979 = vmatprep.mubr.msk.f32.mxu0 %vm89_vm1, %v36_v50  ;;  %1027 = vmatprep.mubr.msk.f32.mxu1 %vm89_vm1, %v68_v51 }
  0x38   :  { %980 = vmatmul.mubr.msk.f32.gmra.mrb[22].mxu0 %vm89_vm1, %v37_v52  ;;  %1028 = vmatmul.mubr.msk.f32.gmra.mrb[22].mxu1 %vm89_vm1, %v69_v53 }
  0x39   :  { %982 = vmatprep.mubr.msk.f32.mxu0 %vm89_vm1, %v38_v54  ;;  %1030 = vmatprep.mubr.msk.f32.mxu1 %vm89_vm1, %v70_v55 }
  0x3c   :  { %983 = vmatmul.mubr.msk.f32.gmra.mrb[24].mxu0 %vm89_vm1, %v39_v56  ;;  %1031 = vmatmul.mubr.msk.f32.gmra.mrb[24].mxu1 %vm89_vm1, %v71_v57 }
  0x3d   :  { %985 = vmatprep.mubr.msk.f32.mxu0 %vm89_vm1, %v40_v58  ;;  %1033 = vmatprep.mubr.msk.f32.mxu1 %vm89_vm1, %v72_v59 }
  0x40   :  { %986 = vmatmul.mubr.msk.f32.gmra.mrb[26].mxu0 %vm89_vm1, %v41_v60  ;;  %1034 = vmatmul.mubr.msk.f32.gmra.mrb[26].mxu1 %vm89_vm1, %v73_v61 }
  0x41   :  { %988 = vmatprep.mubr.msk.f32.mxu0 %vm89_vm1, %v42_v62  ;;  %1036 = vmatprep.mubr.msk.f32.mxu1 %vm89_vm1, %v74_v63 }
  0x44   :  { %989 = vmatmul.mubr.msk.f32.gmra.mrb[28].mxu0 %vm89_vm1, %v43_v0  ;;  %1037 = vmatmul.mubr.msk.f32.gmra.mrb[28].mxu1 %vm89_vm1, %v75_v1 }
  0x45   :  { %991 = vmatprep.mubr.msk.f32.mxu0 %vm89_vm1, %v44_v2  ;;  %1039 = vmatprep.mubr.msk.f32.mxu1 %vm89_vm1, %v76_v3 }
  0x48   :  { %992 = vmatmul.mubr.msk.f32.gmra.mrb[30].mxu0 %vm89_vm1, %v45_v4  ;;  %1040 = vmatmul.mubr.msk.f32.gmra.mrb[30].mxu1 %vm89_vm1, %v77_v5 }
  0xdf   :  { %v948_v7 = vpop.f32.mrb[0].mxu0  ;;  %v996_v8 = vpop.f32.mrb[0].mxu1 }
  0xe0   :  { %v358_v9 = vadd.f32 %v948_v7, %v1349_v6  ;;  %v518_v10 = vadd.f32 %v996_v8, %v1349_v6  ;;  %v352_v11 = vpop.f32.mrb[1].mxu0  ;;  %v512_v12 = vpop.f32.mrb[1].mxu1 }
  0xe1   :  { %v353_v13 = vadd.f32 %v1349_v6, %v352_v11  ;;  %v513_v14 = vadd.f32 %v1349_v6, %v512_v12 }
  0xe2   :  { %v672_v15 = vmax.f32 %v358_v9, 0.0  ;;  %v704_v16 = vmax.f32 %v518_v10, 0.0 }
  0xe3   :  { %v671_v17 = vmax.f32 %v353_v13, 0.0  ;;  %v703_v18 = vmax.f32 %v513_v14, 0.0  ;;  %v951_v19 = vpop.f32.mrb[2].mxu0  ;;  %v999_v20 = vpop.f32.mrb[2].mxu1 }
  0xe4   :  { %737 = vst.msk [vmem:[%s1674_s3 + $0x8] sm:$0xff] %vm735_vm4, %v672_v15  ;;  %769 = vst.msk [vmem:[%s1674_s3 + $0x108] sm:$0xff] %vm735_vm4, %v704_v16  ;;  %v368_v21 = vadd.f32 %v951_v19, %v1349_v6  ;;  %v528_v22 = vadd.f32 %v999_v20, %v1349_v6  ;;  %v362_v23 = vpop.f32.mrb[3].mxu0  ;;  %v522_v24 = vpop.f32.mrb[3].mxu1 }
  0xe5   :  { %736 = vst.msk [vmem:[%s1674_s3] sm:$0xff] %vm735_vm4, %v671_v17  ;;  %768 = vst.msk [vmem:[%s1674_s3 + $0x100] sm:$0xff] %vm735_vm4, %v703_v18  ;;  %v363_v25 = vadd.f32 %v1349_v6, %v362_v23  ;;  %v523_v26 = vadd.f32 %v1349_v6, %v522_v24 }
  0xe6   :  { %v674_v27 = vmax.f32 %v368_v21, 0.0  ;;  %v706_v28 = vmax.f32 %v528_v22, 0.0 }
  0xe7   :  { %v673_v29 = vmax.f32 %v363_v25, 0.0  ;;  %v705_v30 = vmax.f32 %v523_v26, 0.0  ;;  %v954_v31 = vpop.f32.mrb[4].mxu0  ;;  %v1002_v32 = vpop.f32.mrb[4].mxu1 }
  0xe8   :  { %739 = vst.msk [vmem:[%s1674_s3 + $0x18] sm:$0xff] %vm735_vm4, %v674_v27  ;;  %771 = vst.msk [vmem:[%s1674_s3 + $0x118] sm:$0xff] %vm735_vm4, %v706_v28  ;;  %v378_v33 = vadd.f32 %v954_v31, %v1349_v6  ;;  %v538_v34 = vadd.f32 %v1002_v32, %v1349_v6  ;;  %v372_v35 = vpop.f32.mrb[5].mxu0  ;;  %v532_v36 = vpop.f32.mrb[5].mxu1 }
  0xe9   :  { %738 = vst.msk [vmem:[%s1674_s3 + $0x10] sm:$0xff] %vm735_vm4, %v673_v29  ;;  %770 = vst.msk [vmem:[%s1674_s3 + $0x110] sm:$0xff] %vm735_vm4, %v705_v30  ;;  %v373_v37 = vadd.f32 %v1349_v6, %v372_v35  ;;  %v533_v38 = vadd.f32 %v1349_v6, %v532_v36 }
  0xea   :  { %v676_v39 = vmax.f32 %v378_v33, 0.0  ;;  %v708_v40 = vmax.f32 %v538_v34, 0.0 }
  0xeb   :  { %v675_v41 = vmax.f32 %v373_v37, 0.0  ;;  %v707_v42 = vmax.f32 %v533_v38, 0.0  ;;  %v957_v43 = vpop.f32.mrb[6].mxu0  ;;  %v1005_v44 = vpop.f32.mrb[6].mxu1 }
  0xec   :  { %741 = vst.msk [vmem:[%s1674_s3 + $0x28] sm:$0xff] %vm735_vm4, %v676_v39  ;;  %773 = vst.msk [vmem:[%s1674_s3 + $0x128] sm:$0xff] %vm735_vm4, %v708_v40  ;;  %v388_v45 = vadd.f32 %v957_v43, %v1349_v6  ;;  %v548_v46 = vadd.f32 %v1005_v44, %v1349_v6  ;;  %v382_v47 = vpop.f32.mrb[7].mxu0  ;;  %v542_v48 = vpop.f32.mrb[7].mxu1 }
  0xed   :  { %740 = vst.msk [vmem:[%s1674_s3 + $0x20] sm:$0xff] %vm735_vm4, %v675_v41  ;;  %772 = vst.msk [vmem:[%s1674_s3 + $0x120] sm:$0xff] %vm735_vm4, %v707_v42  ;;  %v383_v49 = vadd.f32 %v1349_v6, %v382_v47  ;;  %v543_v50 = vadd.f32 %v1349_v6, %v542_v48 }
  0xee   :  { %v678_v51 = vmax.f32 %v388_v45, 0.0  ;;  %v710_v52 = vmax.f32 %v548_v46, 0.0 }
  0xef   :  { %v677_v53 = vmax.f32 %v383_v49, 0.0  ;;  %v709_v54 = vmax.f32 %v543_v50, 0.0  ;;  %v960_v55 = vpop.f32.mrb[8].mxu0  ;;  %v1008_v56 = vpop.f32.mrb[8].mxu1 }
  0xf0   :  { %743 = vst.msk [vmem:[%s1674_s3 + $0x38] sm:$0xff] %vm735_vm4, %v678_v51  ;;  %775 = vst.msk [vmem:[%s1674_s3 + $0x138] sm:$0xff] %vm735_vm4, %v710_v52  ;;  %v398_v57 = vadd.f32 %v960_v55, %v1349_v6  ;;  %v558_v58 = vadd.f32 %v1008_v56, %v1349_v6  ;;  %v392_v59 = vpop.f32.mrb[9].mxu0  ;;  %v552_v60 = vpop.f32.mrb[9].mxu1 }
  0xf1   :  { %742 = vst.msk [vmem:[%s1674_s3 + $0x30] sm:$0xff] %vm735_vm4, %v677_v53  ;;  %774 = vst.msk [vmem:[%s1674_s3 + $0x130] sm:$0xff] %vm735_vm4, %v709_v54  ;;  %v393_v61 = vadd.f32 %v1349_v6, %v392_v59  ;;  %v553_v62 = vadd.f32 %v1349_v6, %v552_v60 }
  0xf2   :  { %v680_v63 = vmax.f32 %v398_v57, 0.0  ;;  %v712_v0 = vmax.f32 %v558_v58, 0.0 }
  0xf3   :  { %v679_v1 = vmax.f32 %v393_v61, 0.0  ;;  %v711_v2 = vmax.f32 %v553_v62, 0.0  ;;  %v963_v3 = vpop.f32.mrb[10].mxu0  ;;  %v1011_v4 = vpop.f32.mrb[10].mxu1 }
  0xf4   :  { %745 = vst.msk [vmem:[%s1674_s3 + $0x48] sm:$0xff] %vm735_vm4, %v680_v63  ;;  %777 = vst.msk [vmem:[%s1674_s3 + $0x148] sm:$0xff] %vm735_vm4, %v712_v0  ;;  %v408_v5 = vadd.f32 %v963_v3, %v1349_v6  ;;  %v568_v7 = vadd.f32 %v1011_v4, %v1349_v6  ;;  %v402_v8 = vpop.f32.mrb[11].mxu0  ;;  %v562_v9 = vpop.f32.mrb[11].mxu1 }
  0xf5   :  { %744 = vst.msk [vmem:[%s1674_s3 + $0x40] sm:$0xff] %vm735_vm4, %v679_v1  ;;  %776 = vst.msk [vmem:[%s1674_s3 + $0x140] sm:$0xff] %vm735_vm4, %v711_v2  ;;  %v403_v10 = vadd.f32 %v1349_v6, %v402_v8  ;;  %v563_v11 = vadd.f32 %v1349_v6, %v562_v9 }
  0xf6   :  { %v682_v12 = vmax.f32 %v408_v5, 0.0  ;;  %v714_v13 = vmax.f32 %v568_v7, 0.0 }
  0xf7   :  { %v681_v14 = vmax.f32 %v403_v10, 0.0  ;;  %v713_v15 = vmax.f32 %v563_v11, 0.0  ;;  %v966_v16 = vpop.f32.mrb[12].mxu0  ;;  %v1014_v17 = vpop.f32.mrb[12].mxu1 }
  0xf8   :  { %747 = vst.msk [vmem:[%s1674_s3 + $0x58] sm:$0xff] %vm735_vm4, %v682_v12  ;;  %779 = vst.msk [vmem:[%s1674_s3 + $0x158] sm:$0xff] %vm735_vm4, %v714_v13  ;;  %v418_v18 = vadd.f32 %v966_v16, %v1349_v6  ;;  %v578_v19 = vadd.f32 %v1014_v17, %v1349_v6  ;;  %v412_v20 = vpop.f32.mrb[13].mxu0  ;;  %v572_v21 = vpop.f32.mrb[13].mxu1 }
  0xf9   :  { %746 = vst.msk [vmem:[%s1674_s3 + $0x50] sm:$0xff] %vm735_vm4, %v681_v14  ;;  %778 = vst.msk [vmem:[%s1674_s3 + $0x150] sm:$0xff] %vm735_vm4, %v713_v15  ;;  %v413_v22 = vadd.f32 %v1349_v6, %v412_v20  ;;  %v573_v23 = vadd.f32 %v1349_v6, %v572_v21 }
  0xfa   :  { %v684_v24 = vmax.f32 %v418_v18, 0.0  ;;  %v716_v25 = vmax.f32 %v578_v19, 0.0 }
  0xfb   :  { %v683_v26 = vmax.f32 %v413_v22, 0.0  ;;  %v715_v27 = vmax.f32 %v573_v23, 0.0  ;;  %v969_v28 = vpop.f32.mrb[14].mxu0  ;;  %v1017_v29 = vpop.f32.mrb[14].mxu1 }
  0xfc   :  { %749 = vst.msk [vmem:[%s1674_s3 + $0x68] sm:$0xff] %vm735_vm4, %v684_v24  ;;  %781 = vst.msk [vmem:[%s1674_s3 + $0x168] sm:$0xff] %vm735_vm4, %v716_v25  ;;  %v428_v30 = vadd.f32 %v969_v28, %v1349_v6  ;;  %v588_v31 = vadd.f32 %v1017_v29, %v1349_v6  ;;  %v422_v32 = vpop.f32.mrb[15].mxu0  ;;  %v582_v33 = vpop.f32.mrb[15].mxu1 }
  0xfd   :  { %748 = vst.msk [vmem:[%s1674_s3 + $0x60] sm:$0xff] %vm735_vm4, %v683_v26  ;;  %780 = vst.msk [vmem:[%s1674_s3 + $0x160] sm:$0xff] %vm735_vm4, %v715_v27  ;;  %v423_v34 = vadd.f32 %v1349_v6, %v422_v32  ;;  %v583_v35 = vadd.f32 %v1349_v6, %v582_v33 }
  0xfe   :  { %v686_v36 = vmax.f32 %v428_v30, 0.0  ;;  %v718_v37 = vmax.f32 %v588_v31, 0.0 }
  0xff   :  { %v685_v38 = vmax.f32 %v423_v34, 0.0  ;;  %v717_v39 = vmax.f32 %v583_v35, 0.0  ;;  %v972_v40 = vpop.f32.mrb[16].mxu0  ;;  %v1020_v41 = vpop.f32.mrb[16].mxu1 }
 0x100   :  { %751 = vst.msk [vmem:[%s1674_s3 + $0x78] sm:$0xff] %vm735_vm4, %v686_v36  ;;  %783 = vst.msk [vmem:[%s1674_s3 + $0x178] sm:$0xff] %vm735_vm4, %v718_v37  ;;  %v438_v42 = vadd.f32 %v972_v40, %v1349_v6  ;;  %v598_v43 = vadd.f32 %v1020_v41, %v1349_v6  ;;  %v432_v44 = vpop.f32.mrb[17].mxu0  ;;  %v592_v45 = vpop.f32.mrb[17].mxu1 }
 0x101   :  { %750 = vst.msk [vmem:[%s1674_s3 + $0x70] sm:$0xff] %vm735_vm4, %v685_v38  ;;  %782 = vst.msk [vmem:[%s1674_s3 + $0x170] sm:$0xff] %vm735_vm4, %v717_v39  ;;  %v433_v46 = vadd.f32 %v1349_v6, %v432_v44  ;;  %v593_v47 = vadd.f32 %v1349_v6, %v592_v45 }
 0x102   :  { %v688_v48 = vmax.f32 %v438_v42, 0.0  ;;  %v720_v49 = vmax.f32 %v598_v43, 0.0 }
 0x103   :  { %v687_v50 = vmax.f32 %v433_v46, 0.0  ;;  %v719_v51 = vmax.f32 %v593_v47, 0.0  ;;  %v975_v52 = vpop.f32.mrb[18].mxu0  ;;  %v1023_v53 = vpop.f32.mrb[18].mxu1 }
 0x104   :  { %753 = vst.msk [vmem:[%s1674_s3 + $0x88] sm:$0xff] %vm735_vm4, %v688_v48  ;;  %785 = vst.msk [vmem:[%s1674_s3 + $0x188] sm:$0xff] %vm735_vm4, %v720_v49  ;;  %v448_v54 = vadd.f32 %v975_v52, %v1349_v6  ;;  %v608_v55 = vadd.f32 %v1023_v53, %v1349_v6  ;;  %v442_v56 = vpop.f32.mrb[19].mxu0  ;;  %v602_v57 = vpop.f32.mrb[19].mxu1 }
 0x105   :  { %752 = vst.msk [vmem:[%s1674_s3 + $0x80] sm:$0xff] %vm735_vm4, %v687_v50  ;;  %784 = vst.msk [vmem:[%s1674_s3 + $0x180] sm:$0xff] %vm735_vm4, %v719_v51  ;;  %v443_v58 = vadd.f32 %v1349_v6, %v442_v56  ;;  %v603_v59 = vadd.f32 %v1349_v6, %v602_v57 }
 0x106   :  { %v690_v60 = vmax.f32 %v448_v54, 0.0  ;;  %v722_v61 = vmax.f32 %v608_v55, 0.0 }
 0x107   :  { %v689_v62 = vmax.f32 %v443_v58, 0.0  ;;  %v721_v63 = vmax.f32 %v603_v59, 0.0  ;;  %v978_v0 = vpop.f32.mrb[20].mxu0  ;;  %v1026_v1 = vpop.f32.mrb[20].mxu1 }
 0x108   :  { %755 = vst.msk [vmem:[%s1674_s3 + $0x98] sm:$0xff] %vm735_vm4, %v690_v60  ;;  %787 = vst.msk [vmem:[%s1674_s3 + $0x198] sm:$0xff] %vm735_vm4, %v722_v61  ;;  %v458_v2 = vadd.f32 %v978_v0, %v1349_v6  ;;  %v618_v3 = vadd.f32 %v1026_v1, %v1349_v6  ;;  %v452_v4 = vpop.f32.mrb[21].mxu0  ;;  %v612_v5 = vpop.f32.mrb[21].mxu1 }
 0x109   :  { %754 = vst.msk [vmem:[%s1674_s3 + $0x90] sm:$0xff] %vm735_vm4, %v689_v62  ;;  %786 = vst.msk [vmem:[%s1674_s3 + $0x190] sm:$0xff] %vm735_vm4, %v721_v63  ;;  %v453_v7 = vadd.f32 %v1349_v6, %v452_v4  ;;  %v613_v8 = vadd.f32 %v1349_v6, %v612_v5 }
 0x10a   :  { %v692_v9 = vmax.f32 %v458_v2, 0.0  ;;  %v724_v10 = vmax.f32 %v618_v3, 0.0 }
 0x10b   :  { %v691_v11 = vmax.f32 %v453_v7, 0.0  ;;  %v723_v12 = vmax.f32 %v613_v8, 0.0  ;;  %v981_v13 = vpop.f32.mrb[22].mxu0  ;;  %v1029_v14 = vpop.f32.mrb[22].mxu1 }
 0x10c   :  { %757 = vst.msk [vmem:[%s1674_s3 + $0xa8] sm:$0xff] %vm735_vm4, %v692_v9  ;;  %789 = vst.msk [vmem:[%s1674_s3 + $0x1a8] sm:$0xff] %vm735_vm4, %v724_v10  ;;  %v468_v15 = vadd.f32 %v981_v13, %v1349_v6  ;;  %v628_v16 = vadd.f32 %v1029_v14, %v1349_v6  ;;  %v462_v17 = vpop.f32.mrb[23].mxu0  ;;  %v622_v18 = vpop.f32.mrb[23].mxu1 }
 0x10d   :  { %756 = vst.msk [vmem:[%s1674_s3 + $0xa0] sm:$0xff] %vm735_vm4, %v691_v11  ;;  %788 = vst.msk [vmem:[%s1674_s3 + $0x1a0] sm:$0xff] %vm735_vm4, %v723_v12  ;;  %v463_v19 = vadd.f32 %v1349_v6, %v462_v17  ;;  %v623_v20 = vadd.f32 %v1349_v6, %v622_v18 }
 0x10e   :  { %v694_v21 = vmax.f32 %v468_v15, 0.0  ;;  %v726_v22 = vmax.f32 %v628_v16, 0.0 }
 0x10f   :  { %v693_v23 = vmax.f32 %v463_v19, 0.0  ;;  %v725_v24 = vmax.f32 %v623_v20, 0.0  ;;  %v984_v25 = vpop.f32.mrb[24].mxu0  ;;  %v1032_v26 = vpop.f32.mrb[24].mxu1 }
 0x110   :  { %759 = vst.msk [vmem:[%s1674_s3 + $0xb8] sm:$0xff] %vm735_vm4, %v694_v21  ;;  %791 = vst.msk [vmem:[%s1674_s3 + $0x1b8] sm:$0xff] %vm735_vm4, %v726_v22  ;;  %v478_v27 = vadd.f32 %v984_v25, %v1349_v6  ;;  %v638_v28 = vadd.f32 %v1032_v26, %v1349_v6  ;;  %v472_v29 = vpop.f32.mrb[25].mxu0  ;;  %v632_v30 = vpop.f32.mrb[25].mxu1 }
 0x111   :  { %758 = vst.msk [vmem:[%s1674_s3 + $0xb0] sm:$0xff] %vm735_vm4, %v693_v23  ;;  %790 = vst.msk [vmem:[%s1674_s3 + $0x1b0] sm:$0xff] %vm735_vm4, %v725_v24  ;;  %v473_v31 = vadd.f32 %v1349_v6, %v472_v29  ;;  %v633_v32 = vadd.f32 %v1349_v6, %v632_v30 }
 0x112   :  { %v696_v33 = vmax.f32 %v478_v27, 0.0  ;;  %v728_v34 = vmax.f32 %v638_v28, 0.0 }
 0x113   :  { %v695_v35 = vmax.f32 %v473_v31, 0.0  ;;  %v727_v36 = vmax.f32 %v633_v32, 0.0  ;;  %v987_v37 = vpop.f32.mrb[26].mxu0  ;;  %v1035_v38 = vpop.f32.mrb[26].mxu1 }
 0x114   :  { %761 = vst.msk [vmem:[%s1674_s3 + $0xc8] sm:$0xff] %vm735_vm4, %v696_v33  ;;  %793 = vst.msk [vmem:[%s1674_s3 + $0x1c8] sm:$0xff] %vm735_vm4, %v728_v34  ;;  %v488_v39 = vadd.f32 %v987_v37, %v1349_v6  ;;  %v648_v40 = vadd.f32 %v1035_v38, %v1349_v6  ;;  %v482_v41 = vpop.f32.mrb[27].mxu0  ;;  %v642_v42 = vpop.f32.mrb[27].mxu1 }
 0x115   :  { %760 = vst.msk [vmem:[%s1674_s3 + $0xc0] sm:$0xff] %vm735_vm4, %v695_v35  ;;  %792 = vst.msk [vmem:[%s1674_s3 + $0x1c0] sm:$0xff] %vm735_vm4, %v727_v36  ;;  %v483_v43 = vadd.f32 %v1349_v6, %v482_v41  ;;  %v643_v44 = vadd.f32 %v1349_v6, %v642_v42 }
 0x116   :  { %v698_v45 = vmax.f32 %v488_v39, 0.0  ;;  %v730_v46 = vmax.f32 %v648_v40, 0.0 }
 0x117   :  { %v697_v47 = vmax.f32 %v483_v43, 0.0  ;;  %v729_v48 = vmax.f32 %v643_v44, 0.0  ;;  %v990_v49 = vpop.f32.mrb[28].mxu0  ;;  %v1038_v50 = vpop.f32.mrb[28].mxu1 }
 0x118   :  { %763 = vst.msk [vmem:[%s1674_s3 + $0xd8] sm:$0xff] %vm735_vm4, %v698_v45  ;;  %795 = vst.msk [vmem:[%s1674_s3 + $0x1d8] sm:$0xff] %vm735_vm4, %v730_v46  ;;  %v498_v51 = vadd.f32 %v990_v49, %v1349_v6  ;;  %v658_v52 = vadd.f32 %v1038_v50, %v1349_v6  ;;  %v492_v53 = vpop.f32.mrb[29].mxu0  ;;  %v652_v54 = vpop.f32.mrb[29].mxu1 }
 0x119   :  { %762 = vst.msk [vmem:[%s1674_s3 + $0xd0] sm:$0xff] %vm735_vm4, %v697_v47  ;;  %794 = vst.msk [vmem:[%s1674_s3 + $0x1d0] sm:$0xff] %vm735_vm4, %v729_v48  ;;  %v493_v55 = vadd.f32 %v1349_v6, %v492_v53  ;;  %v653_v56 = vadd.f32 %v1349_v6, %v652_v54 }
 0x11a   :  { %v700_v57 = vmax.f32 %v498_v51, 0.0  ;;  %v732_v58 = vmax.f32 %v658_v52, 0.0 }
 0x11b   :  { %v699_v59 = vmax.f32 %v493_v55, 0.0  ;;  %v731_v60 = vmax.f32 %v653_v56, 0.0  ;;  %v993_v61 = vpop.f32.mrb[30].mxu0  ;;  %v1041_v62 = vpop.f32.mrb[30].mxu1 }
 0x11c   :  { %765 = vst.msk [vmem:[%s1674_s3 + $0xe8] sm:$0xff] %vm735_vm4, %v700_v57  ;;  %797 = vst.msk [vmem:[%s1674_s3 + $0x1e8] sm:$0xff] %vm735_vm4, %v732_v58  ;;  %v508_v63 = vadd.f32 %v993_v61, %v1349_v6  ;;  %v668_v0 = vadd.f32 %v1041_v62, %v1349_v6  ;;  %v502_v1 = vpop.f32.mrb[31].mxu0  ;;  %v662_v2 = vpop.f32.mrb[31].mxu1 }
 0x11d   :  { %764 = vst.msk [vmem:[%s1674_s3 + $0xe0] sm:$0xff] %vm735_vm4, %v699_v59  ;;  %796 = vst.msk [vmem:[%s1674_s3 + $0x1e0] sm:$0xff] %vm735_vm4, %v731_v60  ;;  %v503_v3 = vadd.f32 %v1349_v6, %v502_v1  ;;  %v663_v4 = vadd.f32 %v1349_v6, %v662_v2 }
 0x11e   :  { %v702_v5 = vmax.f32 %v508_v63, 0.0  ;;  %v734_v7 = vmax.f32 %v668_v0, 0.0 }
 0x11f   :  { %v701_v8 = vmax.f32 %v503_v3, 0.0  ;;  %v733_v9 = vmax.f32 %v663_v4, 0.0 }
 0x120   :  { %767 = vst.msk [vmem:[%s1674_s3 + $0xf8] sm:$0xff] %vm735_vm4, %v702_v5  ;;  %799 = vst.msk [vmem:[%s1674_s3 + $0x1f8] sm:$0xff] %vm735_vm4, %v734_v7 }
 0x121   :  { %766 = vst.msk [vmem:[%s1674_s3 + $0xf0] sm:$0xff] %vm735_vm4, %v701_v8  ;;  %798 = vst.msk [vmem:[%s1674_s3 + $0x1f0] sm:$0xff] %vm735_vm4, %v733_v9 }

// kernel: babyai_rl_forward.4
= control target key start
LH: loop header
LB: loop body
LE: loop exit
PB: predicated region body
PF: predicated region fallthrough
CT: control target
= control target key end

     0   :  { %v988_v0 = vmov 0.0|0.0   ;;  %vm167_vm0 = vcmask 130048   ;;  %s1854_s1 = inlined_call_operand.vmem [shape: f32[144,16], index: 1, kind: input, shape index: {}]   ;;  %s1855_s0 = inlined_call_operand.vmem [shape: f32[512,144], index: 0, kind: input, shape index: {}]   ;;  %s1856_s2 = inlined_call_operand.vmem [shape: f32[1,16], index: 2, kind: input, shape index: {}]   ;;  %s1857_s3 = inlined_call_operand.vmem [shape: f32[512,16], index: 3, kind: output, shape index: {}]  }
   0x1   :  { %942 = vmatprep.subr.bf16.mxu0 %v988_v0  ;;  %969 = vmatprep.subr.bf16.mxu1 %v988_v0  ;;  %v142_v1 = vld [vmem:[%s1854_s1] sm:$0xff]  ;;  %v143_v2 = vld [vmem:[%s1854_s1 + $0x8] sm:$0xff]  ;;  %v144_v3 = vld [vmem:[%s1854_s1 + $0x10] sm:$0xff] }
   0x2   :  { %v943_v4 = vpack.c.bf16 %v143_v2, %v142_v1  ;;  %v145_v5 = vld [vmem:[%s1854_s1 + $0x18] sm:$0xff]  ;;  %v146_v7 = vld [vmem:[%s1854_s1 + $0x20] sm:$0xff]  ;;  %v147_v8 = vld [vmem:[%s1854_s1 + $0x28] sm:$0xff] }
   0x3   :  { %v946_v6 = vpack.c.bf16 %v145_v5, %v144_v3  ;;  %v15_v9 = vld [vmem:[%s1855_s0 + $0x8] sm:$0xff]  ;;  %v949_v11 = vpack.c.bf16 %v147_v8, %v146_v7  ;;  %v148_v12 = vld [vmem:[%s1854_s1 + $0x30] sm:$0xff]  ;;  %v149_v13 = vld [vmem:[%s1854_s1 + $0x38] sm:$0xff] }
   0x4   :  { %944 = vmatpush1.bf16.msra.mxu0 %v943_v4  ;;  %978 = vmatpush1.bf16.msra.mxu1 %v943_v4  ;;  %v79_v10 = vld [vmem:[%s1855_s0 + $0x208] sm:$0xff]  ;;  %v952_v14 = vpack.c.bf16 %v149_v13, %v148_v12  ;;  %v150_v15 = vld [vmem:[%s1854_s1 + $0x40] sm:$0xff]  ;;  %v152_v18 = vld [vmem:[%s1854_s1 + $0x50] sm:$0xff] }
   0x5   :  { %945 = vmatprep.subr.bf16.mxu0 %v988_v0  ;;  %970 = vmatprep.subr.bf16.mxu1 %v988_v0  ;;  %v151_v16 = vld [vmem:[%s1854_s1 + $0x48] sm:$0xff]  ;;  %v153_v19 = vld [vmem:[%s1854_s1 + $0x58] sm:$0xff]  ;;  %v154_v21 = vld [vmem:[%s1854_s1 + $0x60] sm:$0xff] }
   0x6   :  { %878 = vmatprep.mubr.msk.f32.mxu0 %vm167_vm0, %v15_v9  ;;  %910 = vmatprep.mubr.msk.f32.mxu1 %vm167_vm0, %v79_v10  ;;  %v955_v17 = vpack.c.bf16 %v151_v16, %v150_v15  ;;  %v958_v20 = vpack.c.bf16 %v153_v19, %v152_v18  ;;  %v155_v22 = vld [vmem:[%s1854_s1 + $0x68] sm:$0xff]  ;;  %v156_v24 = vld [vmem:[%s1854_s1 + $0x70] sm:$0xff]  ;;  %v157_v25 = vld [vmem:[%s1854_s1 + $0x78] sm:$0xff] }
   0x7   :  { %v961_v23 = vpack.c.bf16 %v155_v22, %v154_v21  ;;  %v964_v26 = vpack.c.bf16 %v157_v25, %v156_v24  ;;  %v158_v27 = vld [vmem:[%s1854_s1 + $0x80] sm:$0xff]  ;;  %v159_v28 = vld [vmem:[%s1854_s1 + $0x88] sm:$0xff]  ;;  %v17_v32 = vld [vmem:[%s1855_s0 + $0x18] sm:$0xff] }
   0x8   :  { %947 = vmatpush1.bf16.msra.mxu0 %v946_v6  ;;  %979 = vmatpush1.bf16.msra.mxu1 %v946_v6  ;;  %v967_v29 = vpack.c.bf16 %v159_v28, %v158_v27  ;;  %v14_v30 = vld [vmem:[%s1855_s0] sm:$0xff]  ;;  %v81_v33 = vld [vmem:[%s1855_s0 + $0x218] sm:$0xff]  ;;  %v16_v34 = vld [vmem:[%s1855_s0 + $0x10] sm:$0xff] }
   0x9   :  { %948 = vmatprep.subr.bf16.mxu0 %v988_v0  ;;  %971 = vmatprep.subr.bf16.mxu1 %v988_v0  ;;  %v78_v31 = vld [vmem:[%s1855_s0 + $0x200] sm:$0xff]  ;;  %v80_v35 = vld [vmem:[%s1855_s0 + $0x210] sm:$0xff]  ;;  %v19_v36 = vld [vmem:[%s1855_s0 + $0x28] sm:$0xff] }
   0xa   :  { %v83_v37 = vld [vmem:[%s1855_s0 + $0x228] sm:$0xff]  ;;  %v18_v38 = vld [vmem:[%s1855_s0 + $0x20] sm:$0xff]  ;;  %v21_v40 = vld [vmem:[%s1855_s0 + $0x38] sm:$0xff] }
   0xb   :  { %v82_v39 = vld [vmem:[%s1855_s0 + $0x220] sm:$0xff]  ;;  %v85_v41 = vld [vmem:[%s1855_s0 + $0x238] sm:$0xff]  ;;  %v20_v42 = vld [vmem:[%s1855_s0 + $0x30] sm:$0xff] }
   0xc   :  { %950 = vmatpush1.bf16.msra.mxu0 %v949_v11  ;;  %980 = vmatpush1.bf16.msra.mxu1 %v949_v11  ;;  %v84_v43 = vld [vmem:[%s1855_s0 + $0x230] sm:$0xff]  ;;  %v23_v44 = vld [vmem:[%s1855_s0 + $0x48] sm:$0xff]  ;;  %v22_v46 = vld [vmem:[%s1855_s0 + $0x40] sm:$0xff] }
   0xd   :  { %951 = vmatprep.subr.bf16.mxu0 %v988_v0  ;;  %972 = vmatprep.subr.bf16.mxu1 %v988_v0  ;;  %v87_v45 = vld [vmem:[%s1855_s0 + $0x248] sm:$0xff]  ;;  %v86_v47 = vld [vmem:[%s1855_s0 + $0x240] sm:$0xff]  ;;  %v25_v48 = vld [vmem:[%s1855_s0 + $0x58] sm:$0xff] }
   0xe   :  { %v89_v49 = vld [vmem:[%s1855_s0 + $0x258] sm:$0xff]  ;;  %v24_v50 = vld [vmem:[%s1855_s0 + $0x50] sm:$0xff]  ;;  %v27_v52 = vld [vmem:[%s1855_s0 + $0x68] sm:$0xff] }
   0xf   :  { %v88_v51 = vld [vmem:[%s1855_s0 + $0x250] sm:$0xff]  ;;  %v91_v53 = vld [vmem:[%s1855_s0 + $0x268] sm:$0xff]  ;;  %v26_v54 = vld [vmem:[%s1855_s0 + $0x60] sm:$0xff] }
  0x10   :  { %953 = vmatpush1.bf16.msra.mxu0 %v952_v14  ;;  %981 = vmatpush1.bf16.msra.mxu1 %v952_v14  ;;  %v90_v55 = vld [vmem:[%s1855_s0 + $0x260] sm:$0xff]  ;;  %v29_v56 = vld [vmem:[%s1855_s0 + $0x78] sm:$0xff]  ;;  %v28_v58 = vld [vmem:[%s1855_s0 + $0x70] sm:$0xff] }
  0x11   :  { %954 = vmatprep.subr.bf16.mxu0 %v988_v0  ;;  %973 = vmatprep.subr.bf16.mxu1 %v988_v0  ;;  %v93_v57 = vld [vmem:[%s1855_s0 + $0x278] sm:$0xff]  ;;  %v92_v59 = vld [vmem:[%s1855_s0 + $0x270] sm:$0xff]  ;;  %v31_v60 = vld [vmem:[%s1855_s0 + $0x88] sm:$0xff] }
  0x12   :  { %v95_v61 = vld [vmem:[%s1855_s0 + $0x288] sm:$0xff]  ;;  %v30_v62 = vld [vmem:[%s1855_s0 + $0x80] sm:$0xff]  ;;  %v97_v1 = vld [vmem:[%s1855_s0 + $0x298] sm:$0xff] }
  0x13   :  { %v94_v63 = vld [vmem:[%s1855_s0 + $0x280] sm:$0xff]  ;;  %v32_v2 = vld [vmem:[%s1855_s0 + $0x90] sm:$0xff]  ;;  %v35_v4 = vld [vmem:[%s1855_s0 + $0xa8] sm:$0xff] }
  0x14   :  { %956 = vmatpush1.bf16.msra.mxu0 %v955_v17  ;;  %982 = vmatpush1.bf16.msra.mxu1 %v955_v17  ;;  %v96_v3 = vld [vmem:[%s1855_s0 + $0x290] sm:$0xff]  ;;  %v99_v5 = vld [vmem:[%s1855_s0 + $0x2a8] sm:$0xff]  ;;  %v34_v6 = vld [vmem:[%s1855_s0 + $0xa0] sm:$0xff] }
  0x15   :  { %957 = vmatprep.subr.bf16.mxu0 %v988_v0  ;;  %974 = vmatprep.subr.bf16.mxu1 %v988_v0  ;;  %v98_v7 = vld [vmem:[%s1855_s0 + $0x2a0] sm:$0xff]  ;;  %v37_v8 = vld [vmem:[%s1855_s0 + $0xb8] sm:$0xff]  ;;  %v36_v10 = vld [vmem:[%s1855_s0 + $0xb0] sm:$0xff] }
  0x16   :  { %v101_v9 = vld [vmem:[%s1855_s0 + $0x2b8] sm:$0xff]  ;;  %v100_v11 = vld [vmem:[%s1855_s0 + $0x2b0] sm:$0xff]  ;;  %v39_v12 = vld [vmem:[%s1855_s0 + $0xc8] sm:$0xff] }
  0x17   :  { %v103_v13 = vld [vmem:[%s1855_s0 + $0x2c8] sm:$0xff]  ;;  %v38_v14 = vld [vmem:[%s1855_s0 + $0xc0] sm:$0xff]  ;;  %v41_v16 = vld [vmem:[%s1855_s0 + $0xd8] sm:$0xff] }
  0x18   :  { %959 = vmatpush1.bf16.msra.mxu0 %v958_v20  ;;  %983 = vmatpush1.bf16.msra.mxu1 %v958_v20  ;;  %v102_v15 = vld [vmem:[%s1855_s0 + $0x2c0] sm:$0xff]  ;;  %v105_v17 = vld [vmem:[%s1855_s0 + $0x2d8] sm:$0xff]  ;;  %v40_v18 = vld [vmem:[%s1855_s0 + $0xd0] sm:$0xff] }
  0x19   :  { %960 = vmatprep.subr.bf16.mxu0 %v988_v0  ;;  %975 = vmatprep.subr.bf16.mxu1 %v988_v0  ;;  %v104_v19 = vld [vmem:[%s1855_s0 + $0x2d0] sm:$0xff]  ;;  %v43_v20 = vld [vmem:[%s1855_s0 + $0xe8] sm:$0xff]  ;;  %v42_v22 = vld [vmem:[%s1855_s0 + $0xe0] sm:$0xff] }
  0x1a   :  { %v107_v21 = vld [vmem:[%s1855_s0 + $0x2e8] sm:$0xff]  ;;  %v45_v24 = vld [vmem:[%s1855_s0 + $0xf8] sm:$0xff]  ;;  %v108_v27 = vld [vmem:[%s1855_s0 + $0x2f0] sm:$0xff] }
  0x1b   :  { %v109_v25 = vld [vmem:[%s1855_s0 + $0x2f8] sm:$0xff]  ;;  %v47_v28 = vld [vmem:[%s1855_s0 + $0x108] sm:$0xff] }
  0x1c   :  { %962 = vmatpush1.bf16.msra.mxu0 %v961_v23  ;;  %984 = vmatpush1.bf16.msra.mxu1 %v961_v23  ;;  %v106_v23 = vld [vmem:[%s1855_s0 + $0x2e0] sm:$0xff] }
  0x1d   :  { %963 = vmatprep.subr.bf16.mxu0 %v988_v0  ;;  %976 = vmatprep.subr.bf16.mxu1 %v988_v0 }
  0x20   :  { %965 = vmatpush1.bf16.msra.mxu0 %v964_v26  ;;  %985 = vmatpush1.bf16.msra.mxu1 %v964_v26  ;;  %v44_v26 = vld [vmem:[%s1855_s0 + $0xf0] sm:$0xff] }
  0x21   :  { %966 = vmatprep.subr.bf16.mxu0 %v988_v0  ;;  %977 = vmatprep.subr.bf16.mxu1 %v988_v0  ;;  %v33_v0 = vld [vmem:[%s1855_s0 + $0x98] sm:$0xff] }
  0x24   :  { %968 = vmatpush1.bf16.msra.mxu0 %v967_v29  ;;  %986 = vmatpush1.bf16.msra.mxu1 %v967_v29  ;;  %v111_v29 = vld [vmem:[%s1855_s0 + $0x308] sm:$0xff] }
  0x27   :  { %425 = vmatmul.mubr.f32.vlgmr.msra.gmra.mrb[0].mxu0 %v14_v30  ;;  %585 = vmatmul.mubr.f32.vlgmr.msra.gmra.mrb[0].mxu1 %v78_v31  ;;  %v46_v30 = vld [vmem:[%s1855_s0 + $0x100] sm:$0xff] }
  0x28   :  { %879 = vmatprep.mubr.msk.f32.mxu0 %vm167_vm0, %v17_v32  ;;  %911 = vmatprep.mubr.msk.f32.mxu1 %vm167_vm0, %v81_v33  ;;  %v110_v31 = vld [vmem:[%s1855_s0 + $0x300] sm:$0xff]  ;;  %v49_v32 = vld [vmem:[%s1855_s0 + $0x118] sm:$0xff] }
  0x29   :  { %v113_v33 = vld [vmem:[%s1855_s0 + $0x318] sm:$0xff] }
  0x2b   :  { %430 = vmatmul.mubr.f32.gmra.mrb[2].mxu0 %v16_v34  ;;  %590 = vmatmul.mubr.f32.gmra.mrb[2].mxu1 %v80_v35  ;;  %v48_v34 = vld [vmem:[%s1855_s0 + $0x110] sm:$0xff] }
  0x2c   :  { %880 = vmatprep.mubr.msk.f32.mxu0 %vm167_vm0, %v19_v36  ;;  %912 = vmatprep.mubr.msk.f32.mxu1 %vm167_vm0, %v83_v37  ;;  %v112_v35 = vld [vmem:[%s1855_s0 + $0x310] sm:$0xff]  ;;  %v51_v36 = vld [vmem:[%s1855_s0 + $0x128] sm:$0xff] }
  0x2d   :  { %v115_v37 = vld [vmem:[%s1855_s0 + $0x328] sm:$0xff] }
  0x2f   :  { %435 = vmatmul.mubr.f32.gmra.mrb[4].mxu0 %v18_v38  ;;  %595 = vmatmul.mubr.f32.gmra.mrb[4].mxu1 %v82_v39  ;;  %v50_v38 = vld [vmem:[%s1855_s0 + $0x120] sm:$0xff] }
  0x30   :  { %881 = vmatprep.mubr.msk.f32.mxu0 %vm167_vm0, %v21_v40  ;;  %913 = vmatprep.mubr.msk.f32.mxu1 %vm167_vm0, %v85_v41  ;;  %v114_v39 = vld [vmem:[%s1855_s0 + $0x320] sm:$0xff]  ;;  %v53_v40 = vld [vmem:[%s1855_s0 + $0x138] sm:$0xff] }
  0x31   :  { %v117_v41 = vld [vmem:[%s1855_s0 + $0x338] sm:$0xff] }
  0x33   :  { %440 = vmatmul.mubr.f32.gmra.mrb[6].mxu0 %v20_v42  ;;  %600 = vmatmul.mubr.f32.gmra.mrb[6].mxu1 %v84_v43  ;;  %v52_v42 = vld [vmem:[%s1855_s0 + $0x130] sm:$0xff] }
  0x34   :  { %882 = vmatprep.mubr.msk.f32.mxu0 %vm167_vm0, %v23_v44  ;;  %914 = vmatprep.mubr.msk.f32.mxu1 %vm167_vm0, %v87_v45  ;;  %v116_v43 = vld [vmem:[%s1855_s0 + $0x330] sm:$0xff]  ;;  %v55_v44 = vld [vmem:[%s1855_s0 + $0x148] sm:$0xff] }
  0x35   :  { %v119_v45 = vld [vmem:[%s1855_s0 + $0x348] sm:$0xff] }
  0x37   :  { %445 = vmatmul.mubr.f32.gmra.mrb[8].mxu0 %v22_v46  ;;  %605 = vmatmul.mubr.f32.gmra.mrb[8].mxu1 %v86_v47  ;;  %v54_v46 = vld [vmem:[%s1855_s0 + $0x140] sm:$0xff] }
  0x38   :  { %883 = vmatprep.mubr.msk.f32.mxu0 %vm167_vm0, %v25_v48  ;;  %915 = vmatprep.mubr.msk.f32.mxu1 %vm167_vm0, %v89_v49  ;;  %v118_v47 = vld [vmem:[%s1855_s0 + $0x340] sm:$0xff]  ;;  %v57_v48 = vld [vmem:[%s1855_s0 + $0x158] sm:$0xff] }
  0x39   :  { %v121_v49 = vld [vmem:[%s1855_s0 + $0x358] sm:$0xff] }
  0x3b   :  { %450 = vmatmul.mubr.f32.gmra.mrb[10].mxu0 %v24_v50  ;;  %610 = vmatmul.mubr.f32.gmra.mrb[10].mxu1 %v88_v51  ;;  %v56_v50 = vld [vmem:[%s1855_s0 + $0x150] sm:$0xff] }
  0x3c   :  { %884 = vmatprep.mubr.msk.f32.mxu0 %vm167_vm0, %v27_v52  ;;  %916 = vmatprep.mubr.msk.f32.mxu1 %vm167_vm0, %v91_v53  ;;  %v120_v51 = vld [vmem:[%s1855_s0 + $0x350] sm:$0xff]  ;;  %v59_v52 = vld [vmem:[%s1855_s0 + $0x168] sm:$0xff] }
  0x3d   :  { %v123_v53 = vld [vmem:[%s1855_s0 + $0x368] sm:$0xff] }
  0x3f   :  { %455 = vmatmul.mubr.f32.gmra.mrb[12].mxu0 %v26_v54  ;;  %615 = vmatmul.mubr.f32.gmra.mrb[12].mxu1 %v90_v55  ;;  %v58_v54 = vld [vmem:[%s1855_s0 + $0x160] sm:$0xff] }
  0x40   :  { %885 = vmatprep.mubr.msk.f32.mxu0 %vm167_vm0, %v29_v56  ;;  %917 = vmatprep.mubr.msk.f32.mxu1 %vm167_vm0, %v93_v57  ;;  %v122_v55 = vld [vmem:[%s1855_s0 + $0x360] sm:$0xff]  ;;  %v61_v56 = vld [vmem:[%s1855_s0 + $0x178] sm:$0xff] }
  0x41   :  { %v125_v57 = vld [vmem:[%s1855_s0 + $0x378] sm:$0xff] }
  0x43   :  { %460 = vmatmul.mubr.f32.gmra.mrb[14].mxu0 %v28_v58  ;;  %620 = vmatmul.mubr.f32.gmra.mrb[14].mxu1 %v92_v59  ;;  %v60_v58 = vld [vmem:[%s1855_s0 + $0x170] sm:$0xff] }
  0x44   :  { %886 = vmatprep.mubr.msk.f32.mxu0 %vm167_vm0, %v31_v60  ;;  %918 = vmatprep.mubr.msk.f32.mxu1 %vm167_vm0, %v95_v61  ;;  %v124_v59 = vld [vmem:[%s1855_s0 + $0x370] sm:$0xff]  ;;  %v63_v60 = vld [vmem:[%s1855_s0 + $0x188] sm:$0xff] }
  0x45   :  { %v127_v61 = vld [vmem:[%s1855_s0 + $0x388] sm:$0xff] }
  0x47   :  { %465 = vmatmul.mubr.f32.gmra.mrb[16].mxu0 %v30_v62  ;;  %625 = vmatmul.mubr.f32.gmra.mrb[16].mxu1 %v94_v63  ;;  %v62_v62 = vld [vmem:[%s1855_s0 + $0x180] sm:$0xff] }
  0x48   :  { %887 = vmatprep.mubr.msk.f32.mxu0 %vm167_vm0, %v33_v0  ;;  %919 = vmatprep.mubr.msk.f32.mxu1 %vm167_vm0, %v97_v1  ;;  %v126_v63 = vld [vmem:[%s1855_s0 + $0x380] sm:$0xff]  ;;  %v65_v0 = vld [vmem:[%s1855_s0 + $0x198] sm:$0xff] }
  0x49   :  { %v129_v1 = vld [vmem:[%s1855_s0 + $0x398] sm:$0xff] }
  0x4b   :  { %470 = vmatmul.mubr.f32.gmra.mrb[18].mxu0 %v32_v2  ;;  %630 = vmatmul.mubr.f32.gmra.mrb[18].mxu1 %v96_v3  ;;  %v64_v2 = vld [vmem:[%s1855_s0 + $0x190] sm:$0xff] }
  0x4c   :  { %888 = vmatprep.mubr.msk.f32.mxu0 %vm167_vm0, %v35_v4  ;;  %920 = vmatprep.mubr.msk.f32.mxu1 %vm167_vm0, %v99_v5  ;;  %v128_v3 = vld [vmem:[%s1855_s0 + $0x390] sm:$0xff]  ;;  %v67_v4 = vld [vmem:[%s1855_s0 + $0x1a8] sm:$0xff] }
  0x4d   :  { %v131_v5 = vld [vmem:[%s1855_s0 + $0x3a8] sm:$0xff] }
  0x4f   :  { %475 = vmatmul.mubr.f32.gmra.mrb[20].mxu0 %v34_v6  ;;  %635 = vmatmul.mubr.f32.gmra.mrb[20].mxu1 %v98_v7  ;;  %v66_v6 = vld [vmem:[%s1855_s0 + $0x1a0] sm:$0xff] }
  0x50   :  { %889 = vmatprep.mubr.msk.f32.mxu0 %vm167_vm0, %v37_v8  ;;  %921 = vmatprep.mubr.msk.f32.mxu1 %vm167_vm0, %v101_v9  ;;  %v130_v7 = vld [vmem:[%s1855_s0 + $0x3a0] sm:$0xff]  ;;  %v69_v8 = vld [vmem:[%s1855_s0 + $0x1b8] sm:$0xff] }
  0x51   :  { %v133_v9 = vld [vmem:[%s1855_s0 + $0x3b8] sm:$0xff] }
  0x53   :  { %480 = vmatmul.mubr.f32.gmra.mrb[22].mxu0 %v36_v10  ;;  %640 = vmatmul.mubr.f32.gmra.mrb[22].mxu1 %v100_v11  ;;  %v68_v10 = vld [vmem:[%s1855_s0 + $0x1b0] sm:$0xff] }
  0x54   :  { %890 = vmatprep.mubr.msk.f32.mxu0 %vm167_vm0, %v39_v12  ;;  %922 = vmatprep.mubr.msk.f32.mxu1 %vm167_vm0, %v103_v13  ;;  %v132_v11 = vld [vmem:[%s1855_s0 + $0x3b0] sm:$0xff]  ;;  %v71_v12 = vld [vmem:[%s1855_s0 + $0x1c8] sm:$0xff] }
  0x55   :  { %v135_v13 = vld [vmem:[%s1855_s0 + $0x3c8] sm:$0xff] }
  0x57   :  { %485 = vmatmul.mubr.f32.gmra.mrb[24].mxu0 %v38_v14  ;;  %645 = vmatmul.mubr.f32.gmra.mrb[24].mxu1 %v102_v15  ;;  %v70_v14 = vld [vmem:[%s1855_s0 + $0x1c0] sm:$0xff] }
  0x58   :  { %891 = vmatprep.mubr.msk.f32.mxu0 %vm167_vm0, %v41_v16  ;;  %923 = vmatprep.mubr.msk.f32.mxu1 %vm167_vm0, %v105_v17  ;;  %v134_v15 = vld [vmem:[%s1855_s0 + $0x3c0] sm:$0xff]  ;;  %v73_v16 = vld [vmem:[%s1855_s0 + $0x1d8] sm:$0xff] }
  0x59   :  { %v137_v17 = vld [vmem:[%s1855_s0 + $0x3d8] sm:$0xff] }
  0x5b   :  { %490 = vmatmul.mubr.f32.gmra.mrb[26].mxu0 %v40_v18  ;;  %650 = vmatmul.mubr.f32.gmra.mrb[26].mxu1 %v104_v19  ;;  %v72_v18 = vld [vmem:[%s1855_s0 + $0x1d0] sm:$0xff] }
  0x5c   :  { %892 = vmatprep.mubr.msk.f32.mxu0 %vm167_vm0, %v43_v20  ;;  %924 = vmatprep.mubr.msk.f32.mxu1 %vm167_vm0, %v107_v21  ;;  %v136_v19 = vld [vmem:[%s1855_s0 + $0x3d0] sm:$0xff]  ;;  %v75_v20 = vld [vmem:[%s1855_s0 + $0x1e8] sm:$0xff] }
  0x5d   :  { %v139_v21 = vld [vmem:[%s1855_s0 + $0x3e8] sm:$0xff] }
  0x5f   :  { %495 = vmatmul.mubr.f32.gmra.mrb[28].mxu0 %v42_v22  ;;  %655 = vmatmul.mubr.f32.gmra.mrb[28].mxu1 %v106_v23  ;;  %v74_v22 = vld [vmem:[%s1855_s0 + $0x1e0] sm:$0xff] }
  0x60   :  { %893 = vmatprep.mubr.msk.f32.mxu0 %vm167_vm0, %v45_v24  ;;  %925 = vmatprep.mubr.msk.f32.mxu1 %vm167_vm0, %v109_v25  ;;  %v138_v23 = vld [vmem:[%s1855_s0 + $0x3e0] sm:$0xff]  ;;  %v77_v24 = vld [vmem:[%s1855_s0 + $0x1f8] sm:$0xff] }
  0x61   :  { %v141_v25 = vld [vmem:[%s1855_s0 + $0x3f8] sm:$0xff] }
  0x63   :  { %500 = vmatmul.mubr.f32.gmra.mrb[30].mxu0 %v44_v26  ;;  %660 = vmatmul.mubr.f32.gmra.mrb[30].mxu1 %v108_v27  ;;  %v76_v26 = vld [vmem:[%s1855_s0 + $0x1f0] sm:$0xff] }
  0x64   :  { %894 = vmatprep.mubr.msk.f32.mxu0 %vm167_vm0, %v47_v28  ;;  %926 = vmatprep.mubr.msk.f32.mxu1 %vm167_vm0, %v111_v29  ;;  %v140_v27 = vld [vmem:[%s1855_s0 + $0x3f0] sm:$0xff]  ;;  %v1532_v28 = vld [vmem:[%s1856_s2] ss:$0 sm:$0xff] }
  0x67   :  { %505 = vmatmul.mubr.f32.gmra.mrb[32].mxu0 %v46_v30  ;;  %665 = vmatmul.mubr.f32.gmra.mrb[32].mxu1 %v110_v31 }
  0x68   :  { %895 = vmatprep.mubr.msk.f32.mxu0 %vm167_vm0, %v49_v32  ;;  %927 = vmatprep.mubr.msk.f32.mxu1 %vm167_vm0, %v113_v33 }
  0x6b   :  { %510 = vmatmul.mubr.f32.gmra.mrb[34].mxu0 %v48_v34  ;;  %670 = vmatmul.mubr.f32.gmra.mrb[34].mxu1 %v112_v35 }
  0x6c   :  { %896 = vmatprep.mubr.msk.f32.mxu0 %vm167_vm0, %v51_v36  ;;  %928 = vmatprep.mubr.msk.f32.mxu1 %vm167_vm0, %v115_v37 }
  0x6f   :  { %515 = vmatmul.mubr.f32.gmra.mrb[36].mxu0 %v50_v38  ;;  %675 = vmatmul.mubr.f32.gmra.mrb[36].mxu1 %v114_v39 }
  0x70   :  { %897 = vmatprep.mubr.msk.f32.mxu0 %vm167_vm0, %v53_v40  ;;  %929 = vmatprep.mubr.msk.f32.mxu1 %vm167_vm0, %v117_v41 }
  0x73   :  { %520 = vmatmul.mubr.f32.gmra.mrb[38].mxu0 %v52_v42  ;;  %680 = vmatmul.mubr.f32.gmra.mrb[38].mxu1 %v116_v43 }
  0x74   :  { %898 = vmatprep.mubr.msk.f32.mxu0 %vm167_vm0, %v55_v44  ;;  %930 = vmatprep.mubr.msk.f32.mxu1 %vm167_vm0, %v119_v45 }
  0x77   :  { %525 = vmatmul.mubr.f32.gmra.mrb[40].mxu0 %v54_v46  ;;  %685 = vmatmul.mubr.f32.gmra.mrb[40].mxu1 %v118_v47 }
  0x78   :  { %899 = vmatprep.mubr.msk.f32.mxu0 %vm167_vm0, %v57_v48  ;;  %931 = vmatprep.mubr.msk.f32.mxu1 %vm167_vm0, %v121_v49 }
  0x7b   :  { %530 = vmatmul.mubr.f32.gmra.mrb[42].mxu0 %v56_v50  ;;  %690 = vmatmul.mubr.f32.gmra.mrb[42].mxu1 %v120_v51 }
  0x7c   :  { %900 = vmatprep.mubr.msk.f32.mxu0 %vm167_vm0, %v59_v52  ;;  %932 = vmatprep.mubr.msk.f32.mxu1 %vm167_vm0, %v123_v53 }
  0x7f   :  { %535 = vmatmul.mubr.f32.gmra.mrb[44].mxu0 %v58_v54  ;;  %695 = vmatmul.mubr.f32.gmra.mrb[44].mxu1 %v122_v55 }
  0x80   :  { %901 = vmatprep.mubr.msk.f32.mxu0 %vm167_vm0, %v61_v56  ;;  %933 = vmatprep.mubr.msk.f32.mxu1 %vm167_vm0, %v125_v57 }
  0x83   :  { %540 = vmatmul.mubr.f32.gmra.mrb[46].mxu0 %v60_v58  ;;  %700 = vmatmul.mubr.f32.gmra.mrb[46].mxu1 %v124_v59 }
  0x84   :  { %902 = vmatprep.mubr.msk.f32.mxu0 %vm167_vm0, %v63_v60  ;;  %934 = vmatprep.mubr.msk.f32.mxu1 %vm167_vm0, %v127_v61 }
  0x87   :  { %545 = vmatmul.mubr.f32.gmra.mrb[48].mxu0 %v62_v62  ;;  %705 = vmatmul.mubr.f32.gmra.mrb[48].mxu1 %v126_v63 }
  0x88   :  { %903 = vmatprep.mubr.msk.f32.mxu0 %vm167_vm0, %v65_v0  ;;  %935 = vmatprep.mubr.msk.f32.mxu1 %vm167_vm0, %v129_v1 }
  0x8b   :  { %550 = vmatmul.mubr.f32.gmra.mrb[50].mxu0 %v64_v2  ;;  %710 = vmatmul.mubr.f32.gmra.mrb[50].mxu1 %v128_v3 }
  0x8c   :  { %904 = vmatprep.mubr.msk.f32.mxu0 %vm167_vm0, %v67_v4  ;;  %936 = vmatprep.mubr.msk.f32.mxu1 %vm167_vm0, %v131_v5 }
  0x8f   :  { %555 = vmatmul.mubr.f32.gmra.mrb[52].mxu0 %v66_v6  ;;  %715 = vmatmul.mubr.f32.gmra.mrb[52].mxu1 %v130_v7 }
  0x90   :  { %905 = vmatprep.mubr.msk.f32.mxu0 %vm167_vm0, %v69_v8  ;;  %937 = vmatprep.mubr.msk.f32.mxu1 %vm167_vm0, %v133_v9 }
  0x93   :  { %560 = vmatmul.mubr.f32.gmra.mrb[54].mxu0 %v68_v10  ;;  %720 = vmatmul.mubr.f32.gmra.mrb[54].mxu1 %v132_v11 }
  0x94   :  { %906 = vmatprep.mubr.msk.f32.mxu0 %vm167_vm0, %v71_v12  ;;  %938 = vmatprep.mubr.msk.f32.mxu1 %vm167_vm0, %v135_v13 }
  0x97   :  { %565 = vmatmul.mubr.f32.gmra.mrb[56].mxu0 %v70_v14  ;;  %725 = vmatmul.mubr.f32.gmra.mrb[56].mxu1 %v134_v15 }
  0x98   :  { %907 = vmatprep.mubr.msk.f32.mxu0 %vm167_vm0, %v73_v16  ;;  %939 = vmatprep.mubr.msk.f32.mxu1 %vm167_vm0, %v137_v17 }
  0x9b   :  { %570 = vmatmul.mubr.f32.gmra.mrb[58].mxu0 %v72_v18  ;;  %730 = vmatmul.mubr.f32.gmra.mrb[58].mxu1 %v136_v19 }
  0x9c   :  { %908 = vmatprep.mubr.msk.f32.mxu0 %vm167_vm0, %v75_v20  ;;  %940 = vmatprep.mubr.msk.f32.mxu1 %vm167_vm0, %v139_v21 }
  0x9f   :  { %575 = vmatmul.mubr.f32.gmra.mrb[60].mxu0 %v74_v22  ;;  %735 = vmatmul.mubr.f32.gmra.mrb[60].mxu1 %v138_v23 }
  0xa0   :  { %909 = vmatprep.mubr.msk.f32.mxu0 %vm167_vm0, %v77_v24  ;;  %941 = vmatprep.mubr.msk.f32.mxu1 %vm167_vm0, %v141_v25 }
  0xa3   :  { %580 = vmatmul.mubr.f32.gmra.mrb[62].mxu0 %v76_v26  ;;  %740 = vmatmul.mubr.f32.gmra.mrb[62].mxu1 %v140_v27 }
  0xfa   :  { %v426_v29 = vpop.f32.mrb[0].mxu0  ;;  %v586_v30 = vpop.f32.mrb[0].mxu1 }
  0xfb   :  { %v427_v31 = vadd.f32 %v1532_v28, %v426_v29  ;;  %v587_v32 = vadd.f32 %v1532_v28, %v586_v30  ;;  %v428_v33 = vpop.f32.mrb[1].mxu0  ;;  %v588_v34 = vpop.f32.mrb[1].mxu1 }
  0xfd   :  { %v745_v35 = vmax.f32 %v427_v31, 0.0  ;;  %v777_v36 = vmax.f32 %v587_v32, 0.0 }
  0xfe   :  { %v431_v37 = vpop.f32.mrb[2].mxu0  ;;  %v591_v38 = vpop.f32.mrb[2].mxu1 }
  0xff   :  { %809 = vst.msk [vmem:[%s1857_s3] sm:$0xff] %vm167_vm0, %v745_v35  ;;  %841 = vst.msk [vmem:[%s1857_s3 + $0x100] sm:$0xff] %vm167_vm0, %v777_v36  ;;  %v432_v39 = vadd.f32 %v1532_v28, %v431_v37  ;;  %v592_v40 = vadd.f32 %v1532_v28, %v591_v38  ;;  %v433_v41 = vpop.f32.mrb[3].mxu0  ;;  %v593_v42 = vpop.f32.mrb[3].mxu1 }
 0x101   :  { %v746_v43 = vmax.f32 %v432_v39, 0.0  ;;  %v778_v44 = vmax.f32 %v592_v40, 0.0 }
 0x102   :  { %v436_v45 = vpop.f32.mrb[4].mxu0  ;;  %v596_v46 = vpop.f32.mrb[4].mxu1 }
 0x103   :  { %810 = vst.msk [vmem:[%s1857_s3 + $0x8] sm:$0xff] %vm167_vm0, %v746_v43  ;;  %842 = vst.msk [vmem:[%s1857_s3 + $0x108] sm:$0xff] %vm167_vm0, %v778_v44  ;;  %v437_v47 = vadd.f32 %v1532_v28, %v436_v45  ;;  %v597_v48 = vadd.f32 %v1532_v28, %v596_v46  ;;  %v438_v49 = vpop.f32.mrb[5].mxu0  ;;  %v598_v50 = vpop.f32.mrb[5].mxu1 }
 0x105   :  { %v747_v51 = vmax.f32 %v437_v47, 0.0  ;;  %v779_v52 = vmax.f32 %v597_v48, 0.0 }
 0x106   :  { %v441_v53 = vpop.f32.mrb[6].mxu0  ;;  %v601_v54 = vpop.f32.mrb[6].mxu1 }
 0x107   :  { %811 = vst.msk [vmem:[%s1857_s3 + $0x10] sm:$0xff] %vm167_vm0, %v747_v51  ;;  %843 = vst.msk [vmem:[%s1857_s3 + $0x110] sm:$0xff] %vm167_vm0, %v779_v52  ;;  %v442_v55 = vadd.f32 %v1532_v28, %v441_v53  ;;  %v602_v56 = vadd.f32 %v1532_v28, %v601_v54  ;;  %v443_v57 = vpop.f32.mrb[7].mxu0  ;;  %v603_v58 = vpop.f32.mrb[7].mxu1 }
 0x109   :  { %v748_v59 = vmax.f32 %v442_v55, 0.0  ;;  %v780_v60 = vmax.f32 %v602_v56, 0.0 }
 0x10a   :  { %v446_v61 = vpop.f32.mrb[8].mxu0  ;;  %v606_v62 = vpop.f32.mrb[8].mxu1 }
 0x10b   :  { %812 = vst.msk [vmem:[%s1857_s3 + $0x18] sm:$0xff] %vm167_vm0, %v748_v59  ;;  %844 = vst.msk [vmem:[%s1857_s3 + $0x118] sm:$0xff] %vm167_vm0, %v780_v60  ;;  %v447_v63 = vadd.f32 %v1532_v28, %v446_v61  ;;  %v607_v0 = vadd.f32 %v1532_v28, %v606_v62  ;;  %v448_v1 = vpop.f32.mrb[9].mxu0  ;;  %v608_v2 = vpop.f32.mrb[9].mxu1 }
 0x10d   :  { %v749_v3 = vmax.f32 %v447_v63, 0.0  ;;  %v781_v4 = vmax.f32 %v607_v0, 0.0 }
 0x10e   :  { %v451_v5 = vpop.f32.mrb[10].mxu0  ;;  %v611_v6 = vpop.f32.mrb[10].mxu1 }
 0x10f   :  { %813 = vst.msk [vmem:[%s1857_s3 + $0x20] sm:$0xff] %vm167_vm0, %v749_v3  ;;  %845 = vst.msk [vmem:[%s1857_s3 + $0x120] sm:$0xff] %vm167_vm0, %v781_v4  ;;  %v452_v7 = vadd.f32 %v1532_v28, %v451_v5  ;;  %v612_v8 = vadd.f32 %v1532_v28, %v611_v6  ;;  %v453_v9 = vpop.f32.mrb[11].mxu0  ;;  %v613_v10 = vpop.f32.mrb[11].mxu1 }
 0x111   :  { %v750_v11 = vmax.f32 %v452_v7, 0.0  ;;  %v782_v12 = vmax.f32 %v612_v8, 0.0 }
 0x112   :  { %v456_v13 = vpop.f32.mrb[12].mxu0  ;;  %v616_v14 = vpop.f32.mrb[12].mxu1 }
 0x113   :  { %814 = vst.msk [vmem:[%s1857_s3 + $0x28] sm:$0xff] %vm167_vm0, %v750_v11  ;;  %846 = vst.msk [vmem:[%s1857_s3 + $0x128] sm:$0xff] %vm167_vm0, %v782_v12  ;;  %v457_v15 = vadd.f32 %v1532_v28, %v456_v13  ;;  %v617_v16 = vadd.f32 %v1532_v28, %v616_v14  ;;  %v458_v17 = vpop.f32.mrb[13].mxu0  ;;  %v618_v18 = vpop.f32.mrb[13].mxu1 }
 0x115   :  { %v751_v19 = vmax.f32 %v457_v15, 0.0  ;;  %v783_v20 = vmax.f32 %v617_v16, 0.0 }
 0x116   :  { %v461_v21 = vpop.f32.mrb[14].mxu0  ;;  %v621_v22 = vpop.f32.mrb[14].mxu1 }
 0x117   :  { %815 = vst.msk [vmem:[%s1857_s3 + $0x30] sm:$0xff] %vm167_vm0, %v751_v19  ;;  %847 = vst.msk [vmem:[%s1857_s3 + $0x130] sm:$0xff] %vm167_vm0, %v783_v20  ;;  %v462_v23 = vadd.f32 %v1532_v28, %v461_v21  ;;  %v622_v24 = vadd.f32 %v1532_v28, %v621_v22  ;;  %v463_v25 = vpop.f32.mrb[15].mxu0  ;;  %v623_v26 = vpop.f32.mrb[15].mxu1 }
 0x119   :  { %v752_v27 = vmax.f32 %v462_v23, 0.0  ;;  %v784_v29 = vmax.f32 %v622_v24, 0.0 }
 0x11a   :  { %v466_v30 = vpop.f32.mrb[16].mxu0  ;;  %v626_v31 = vpop.f32.mrb[16].mxu1 }
 0x11b   :  { %816 = vst.msk [vmem:[%s1857_s3 + $0x38] sm:$0xff] %vm167_vm0, %v752_v27  ;;  %848 = vst.msk [vmem:[%s1857_s3 + $0x138] sm:$0xff] %vm167_vm0, %v784_v29  ;;  %v467_v32 = vadd.f32 %v1532_v28, %v466_v30  ;;  %v627_v33 = vadd.f32 %v1532_v28, %v626_v31  ;;  %v468_v34 = vpop.f32.mrb[17].mxu0  ;;  %v628_v35 = vpop.f32.mrb[17].mxu1 }
 0x11d   :  { %v753_v36 = vmax.f32 %v467_v32, 0.0  ;;  %v785_v37 = vmax.f32 %v627_v33, 0.0 }
 0x11e   :  { %v471_v38 = vpop.f32.mrb[18].mxu0  ;;  %v631_v39 = vpop.f32.mrb[18].mxu1 }
 0x11f   :  { %817 = vst.msk [vmem:[%s1857_s3 + $0x40] sm:$0xff] %vm167_vm0, %v753_v36  ;;  %849 = vst.msk [vmem:[%s1857_s3 + $0x140] sm:$0xff] %vm167_vm0, %v785_v37  ;;  %v472_v40 = vadd.f32 %v1532_v28, %v471_v38  ;;  %v632_v41 = vadd.f32 %v1532_v28, %v631_v39  ;;  %v473_v42 = vpop.f32.mrb[19].mxu0  ;;  %v633_v43 = vpop.f32.mrb[19].mxu1 }
 0x121   :  { %v754_v44 = vmax.f32 %v472_v40, 0.0  ;;  %v786_v45 = vmax.f32 %v632_v41, 0.0 }
 0x122   :  { %v476_v46 = vpop.f32.mrb[20].mxu0  ;;  %v636_v47 = vpop.f32.mrb[20].mxu1 }
 0x123   :  { %818 = vst.msk [vmem:[%s1857_s3 + $0x48] sm:$0xff] %vm167_vm0, %v754_v44  ;;  %850 = vst.msk [vmem:[%s1857_s3 + $0x148] sm:$0xff] %vm167_vm0, %v786_v45  ;;  %v477_v48 = vadd.f32 %v1532_v28, %v476_v46  ;;  %v637_v49 = vadd.f32 %v1532_v28, %v636_v47  ;;  %v478_v50 = vpop.f32.mrb[21].mxu0  ;;  %v638_v51 = vpop.f32.mrb[21].mxu1 }
 0x125   :  { %v755_v52 = vmax.f32 %v477_v48, 0.0  ;;  %v787_v53 = vmax.f32 %v637_v49, 0.0 }
 0x126   :  { %v481_v54 = vpop.f32.mrb[22].mxu0  ;;  %v641_v55 = vpop.f32.mrb[22].mxu1 }
 0x127   :  { %819 = vst.msk [vmem:[%s1857_s3 + $0x50] sm:$0xff] %vm167_vm0, %v755_v52  ;;  %851 = vst.msk [vmem:[%s1857_s3 + $0x150] sm:$0xff] %vm167_vm0, %v787_v53  ;;  %v482_v56 = vadd.f32 %v1532_v28, %v481_v54  ;;  %v642_v57 = vadd.f32 %v1532_v28, %v641_v55  ;;  %v483_v58 = vpop.f32.mrb[23].mxu0  ;;  %v643_v59 = vpop.f32.mrb[23].mxu1 }
 0x129   :  { %v756_v60 = vmax.f32 %v482_v56, 0.0  ;;  %v788_v61 = vmax.f32 %v642_v57, 0.0 }
 0x12a   :  { %v486_v62 = vpop.f32.mrb[24].mxu0  ;;  %v646_v63 = vpop.f32.mrb[24].mxu1 }
 0x12b   :  { %820 = vst.msk [vmem:[%s1857_s3 + $0x58] sm:$0xff] %vm167_vm0, %v756_v60  ;;  %852 = vst.msk [vmem:[%s1857_s3 + $0x158] sm:$0xff] %vm167_vm0, %v788_v61  ;;  %v487_v0 = vadd.f32 %v1532_v28, %v486_v62  ;;  %v647_v1 = vadd.f32 %v1532_v28, %v646_v63  ;;  %v488_v2 = vpop.f32.mrb[25].mxu0  ;;  %v648_v3 = vpop.f32.mrb[25].mxu1 }
 0x12d   :  { %v757_v4 = vmax.f32 %v487_v0, 0.0  ;;  %v789_v5 = vmax.f32 %v647_v1, 0.0 }
 0x12e   :  { %v491_v6 = vpop.f32.mrb[26].mxu0  ;;  %v651_v7 = vpop.f32.mrb[26].mxu1 }
 0x12f   :  { %821 = vst.msk [vmem:[%s1857_s3 + $0x60] sm:$0xff] %vm167_vm0, %v757_v4  ;;  %853 = vst.msk [vmem:[%s1857_s3 + $0x160] sm:$0xff] %vm167_vm0, %v789_v5  ;;  %v492_v8 = vadd.f32 %v1532_v28, %v491_v6  ;;  %v652_v9 = vadd.f32 %v1532_v28, %v651_v7  ;;  %v493_v10 = vpop.f32.mrb[27].mxu0  ;;  %v653_v11 = vpop.f32.mrb[27].mxu1 }
 0x131   :  { %v758_v12 = vmax.f32 %v492_v8, 0.0  ;;  %v790_v13 = vmax.f32 %v652_v9, 0.0 }
 0x132   :  { %v496_v14 = vpop.f32.mrb[28].mxu0  ;;  %v656_v15 = vpop.f32.mrb[28].mxu1 }
 0x133   :  { %822 = vst.msk [vmem:[%s1857_s3 + $0x68] sm:$0xff] %vm167_vm0, %v758_v12  ;;  %854 = vst.msk [vmem:[%s1857_s3 + $0x168] sm:$0xff] %vm167_vm0, %v790_v13  ;;  %v497_v16 = vadd.f32 %v1532_v28, %v496_v14  ;;  %v657_v17 = vadd.f32 %v1532_v28, %v656_v15  ;;  %v498_v18 = vpop.f32.mrb[29].mxu0  ;;  %v658_v19 = vpop.f32.mrb[29].mxu1 }
 0x135   :  { %v759_v20 = vmax.f32 %v497_v16, 0.0  ;;  %v791_v21 = vmax.f32 %v657_v17, 0.0 }
 0x136   :  { %v501_v22 = vpop.f32.mrb[30].mxu0  ;;  %v661_v23 = vpop.f32.mrb[30].mxu1 }
 0x137   :  { %823 = vst.msk [vmem:[%s1857_s3 + $0x70] sm:$0xff] %vm167_vm0, %v759_v20  ;;  %855 = vst.msk [vmem:[%s1857_s3 + $0x170] sm:$0xff] %vm167_vm0, %v791_v21  ;;  %v502_v24 = vadd.f32 %v1532_v28, %v501_v22  ;;  %v662_v25 = vadd.f32 %v1532_v28, %v661_v23  ;;  %v503_v26 = vpop.f32.mrb[31].mxu0  ;;  %v663_v27 = vpop.f32.mrb[31].mxu1 }
 0x139   :  { %v760_v29 = vmax.f32 %v502_v24, 0.0  ;;  %v792_v30 = vmax.f32 %v662_v25, 0.0 }
 0x13a   :  { %v506_v31 = vpop.f32.mrb[32].mxu0  ;;  %v666_v32 = vpop.f32.mrb[32].mxu1 }
 0x13b   :  { %824 = vst.msk [vmem:[%s1857_s3 + $0x78] sm:$0xff] %vm167_vm0, %v760_v29  ;;  %856 = vst.msk [vmem:[%s1857_s3 + $0x178] sm:$0xff] %vm167_vm0, %v792_v30  ;;  %v507_v33 = vadd.f32 %v1532_v28, %v506_v31  ;;  %v667_v34 = vadd.f32 %v1532_v28, %v666_v32  ;;  %v508_v35 = vpop.f32.mrb[33].mxu0  ;;  %v668_v36 = vpop.f32.mrb[33].mxu1 }
 0x13d   :  { %v761_v37 = vmax.f32 %v507_v33, 0.0  ;;  %v793_v38 = vmax.f32 %v667_v34, 0.0 }
 0x13e   :  { %v511_v39 = vpop.f32.mrb[34].mxu0  ;;  %v671_v40 = vpop.f32.mrb[34].mxu1 }
 0x13f   :  { %825 = vst.msk [vmem:[%s1857_s3 + $0x80] sm:$0xff] %vm167_vm0, %v761_v37  ;;  %857 = vst.msk [vmem:[%s1857_s3 + $0x180] sm:$0xff] %vm167_vm0, %v793_v38  ;;  %v512_v41 = vadd.f32 %v1532_v28, %v511_v39  ;;  %v672_v42 = vadd.f32 %v1532_v28, %v671_v40  ;;  %v513_v43 = vpop.f32.mrb[35].mxu0  ;;  %v673_v44 = vpop.f32.mrb[35].mxu1 }
 0x141   :  { %v762_v45 = vmax.f32 %v512_v41, 0.0  ;;  %v794_v46 = vmax.f32 %v672_v42, 0.0 }
 0x142   :  { %v516_v47 = vpop.f32.mrb[36].mxu0  ;;  %v676_v48 = vpop.f32.mrb[36].mxu1 }
 0x143   :  { %826 = vst.msk [vmem:[%s1857_s3 + $0x88] sm:$0xff] %vm167_vm0, %v762_v45  ;;  %858 = vst.msk [vmem:[%s1857_s3 + $0x188] sm:$0xff] %vm167_vm0, %v794_v46  ;;  %v517_v49 = vadd.f32 %v1532_v28, %v516_v47  ;;  %v677_v50 = vadd.f32 %v1532_v28, %v676_v48  ;;  %v518_v51 = vpop.f32.mrb[37].mxu0  ;;  %v678_v52 = vpop.f32.mrb[37].mxu1 }
 0x145   :  { %v763_v53 = vmax.f32 %v517_v49, 0.0  ;;  %v795_v54 = vmax.f32 %v677_v50, 0.0 }
 0x146   :  { %v521_v55 = vpop.f32.mrb[38].mxu0  ;;  %v681_v56 = vpop.f32.mrb[38].mxu1 }
 0x147   :  { %827 = vst.msk [vmem:[%s1857_s3 + $0x90] sm:$0xff] %vm167_vm0, %v763_v53  ;;  %859 = vst.msk [vmem:[%s1857_s3 + $0x190] sm:$0xff] %vm167_vm0, %v795_v54  ;;  %v522_v57 = vadd.f32 %v1532_v28, %v521_v55  ;;  %v682_v58 = vadd.f32 %v1532_v28, %v681_v56  ;;  %v523_v59 = vpop.f32.mrb[39].mxu0  ;;  %v683_v60 = vpop.f32.mrb[39].mxu1 }
 0x149   :  { %v764_v61 = vmax.f32 %v522_v57, 0.0  ;;  %v796_v62 = vmax.f32 %v682_v58, 0.0 }
 0x14a   :  { %v526_v63 = vpop.f32.mrb[40].mxu0  ;;  %v686_v0 = vpop.f32.mrb[40].mxu1 }
 0x14b   :  { %828 = vst.msk [vmem:[%s1857_s3 + $0x98] sm:$0xff] %vm167_vm0, %v764_v61  ;;  %860 = vst.msk [vmem:[%s1857_s3 + $0x198] sm:$0xff] %vm167_vm0, %v796_v62  ;;  %v527_v1 = vadd.f32 %v1532_v28, %v526_v63  ;;  %v687_v2 = vadd.f32 %v1532_v28, %v686_v0  ;;  %v528_v3 = vpop.f32.mrb[41].mxu0  ;;  %v688_v4 = vpop.f32.mrb[41].mxu1 }
 0x14d   :  { %v765_v5 = vmax.f32 %v527_v1, 0.0  ;;  %v797_v6 = vmax.f32 %v687_v2, 0.0 }
 0x14e   :  { %v531_v7 = vpop.f32.mrb[42].mxu0  ;;  %v691_v8 = vpop.f32.mrb[42].mxu1 }
 0x14f   :  { %829 = vst.msk [vmem:[%s1857_s3 + $0xa0] sm:$0xff] %vm167_vm0, %v765_v5  ;;  %861 = vst.msk [vmem:[%s1857_s3 + $0x1a0] sm:$0xff] %vm167_vm0, %v797_v6  ;;  %v532_v9 = vadd.f32 %v1532_v28, %v531_v7  ;;  %v692_v10 = vadd.f32 %v1532_v28, %v691_v8  ;;  %v533_v11 = vpop.f32.mrb[43].mxu0  ;;  %v693_v12 = vpop.f32.mrb[43].mxu1 }
 0x151   :  { %v766_v13 = vmax.f32 %v532_v9, 0.0  ;;  %v798_v14 = vmax.f32 %v692_v10, 0.0 }
 0x152   :  { %v536_v15 = vpop.f32.mrb[44].mxu0  ;;  %v696_v16 = vpop.f32.mrb[44].mxu1 }
 0x153   :  { %830 = vst.msk [vmem:[%s1857_s3 + $0xa8] sm:$0xff] %vm167_vm0, %v766_v13  ;;  %862 = vst.msk [vmem:[%s1857_s3 + $0x1a8] sm:$0xff] %vm167_vm0, %v798_v14  ;;  %v537_v17 = vadd.f32 %v1532_v28, %v536_v15  ;;  %v697_v18 = vadd.f32 %v1532_v28, %v696_v16  ;;  %v538_v19 = vpop.f32.mrb[45].mxu0  ;;  %v698_v20 = vpop.f32.mrb[45].mxu1 }
 0x155   :  { %v767_v21 = vmax.f32 %v537_v17, 0.0  ;;  %v799_v22 = vmax.f32 %v697_v18, 0.0 }
 0x156   :  { %v541_v23 = vpop.f32.mrb[46].mxu0  ;;  %v701_v24 = vpop.f32.mrb[46].mxu1 }
 0x157   :  { %831 = vst.msk [vmem:[%s1857_s3 + $0xb0] sm:$0xff] %vm167_vm0, %v767_v21  ;;  %863 = vst.msk [vmem:[%s1857_s3 + $0x1b0] sm:$0xff] %vm167_vm0, %v799_v22  ;;  %v542_v25 = vadd.f32 %v1532_v28, %v541_v23  ;;  %v702_v26 = vadd.f32 %v1532_v28, %v701_v24  ;;  %v543_v27 = vpop.f32.mrb[47].mxu0  ;;  %v703_v29 = vpop.f32.mrb[47].mxu1 }
 0x159   :  { %v768_v30 = vmax.f32 %v542_v25, 0.0  ;;  %v800_v31 = vmax.f32 %v702_v26, 0.0 }
 0x15a   :  { %v546_v32 = vpop.f32.mrb[48].mxu0  ;;  %v706_v33 = vpop.f32.mrb[48].mxu1 }
 0x15b   :  { %832 = vst.msk [vmem:[%s1857_s3 + $0xb8] sm:$0xff] %vm167_vm0, %v768_v30  ;;  %864 = vst.msk [vmem:[%s1857_s3 + $0x1b8] sm:$0xff] %vm167_vm0, %v800_v31  ;;  %v547_v34 = vadd.f32 %v1532_v28, %v546_v32  ;;  %v707_v35 = vadd.f32 %v1532_v28, %v706_v33  ;;  %v548_v36 = vpop.f32.mrb[49].mxu0  ;;  %v708_v37 = vpop.f32.mrb[49].mxu1 }
 0x15d   :  { %v769_v38 = vmax.f32 %v547_v34, 0.0  ;;  %v801_v39 = vmax.f32 %v707_v35, 0.0 }
 0x15e   :  { %v551_v40 = vpop.f32.mrb[50].mxu0  ;;  %v711_v41 = vpop.f32.mrb[50].mxu1 }
 0x15f   :  { %833 = vst.msk [vmem:[%s1857_s3 + $0xc0] sm:$0xff] %vm167_vm0, %v769_v38  ;;  %865 = vst.msk [vmem:[%s1857_s3 + $0x1c0] sm:$0xff] %vm167_vm0, %v801_v39  ;;  %v552_v42 = vadd.f32 %v1532_v28, %v551_v40  ;;  %v712_v43 = vadd.f32 %v1532_v28, %v711_v41  ;;  %v553_v44 = vpop.f32.mrb[51].mxu0  ;;  %v713_v45 = vpop.f32.mrb[51].mxu1 }
 0x161   :  { %v770_v46 = vmax.f32 %v552_v42, 0.0  ;;  %v802_v47 = vmax.f32 %v712_v43, 0.0 }
 0x162   :  { %v556_v48 = vpop.f32.mrb[52].mxu0  ;;  %v716_v49 = vpop.f32.mrb[52].mxu1 }
 0x163   :  { %834 = vst.msk [vmem:[%s1857_s3 + $0xc8] sm:$0xff] %vm167_vm0, %v770_v46  ;;  %866 = vst.msk [vmem:[%s1857_s3 + $0x1c8] sm:$0xff] %vm167_vm0, %v802_v47  ;;  %v557_v50 = vadd.f32 %v1532_v28, %v556_v48  ;;  %v717_v51 = vadd.f32 %v1532_v28, %v716_v49  ;;  %v558_v52 = vpop.f32.mrb[53].mxu0  ;;  %v718_v53 = vpop.f32.mrb[53].mxu1 }
 0x165   :  { %v771_v54 = vmax.f32 %v557_v50, 0.0  ;;  %v803_v55 = vmax.f32 %v717_v51, 0.0 }
 0x166   :  { %v561_v56 = vpop.f32.mrb[54].mxu0  ;;  %v721_v57 = vpop.f32.mrb[54].mxu1 }
 0x167   :  { %835 = vst.msk [vmem:[%s1857_s3 + $0xd0] sm:$0xff] %vm167_vm0, %v771_v54  ;;  %867 = vst.msk [vmem:[%s1857_s3 + $0x1d0] sm:$0xff] %vm167_vm0, %v803_v55  ;;  %v562_v58 = vadd.f32 %v1532_v28, %v561_v56  ;;  %v722_v59 = vadd.f32 %v1532_v28, %v721_v57  ;;  %v563_v60 = vpop.f32.mrb[55].mxu0  ;;  %v723_v61 = vpop.f32.mrb[55].mxu1 }
 0x169   :  { %v772_v62 = vmax.f32 %v562_v58, 0.0  ;;  %v804_v63 = vmax.f32 %v722_v59, 0.0 }
 0x16a   :  { %v566_v0 = vpop.f32.mrb[56].mxu0  ;;  %v726_v1 = vpop.f32.mrb[56].mxu1 }
 0x16b   :  { %836 = vst.msk [vmem:[%s1857_s3 + $0xd8] sm:$0xff] %vm167_vm0, %v772_v62  ;;  %868 = vst.msk [vmem:[%s1857_s3 + $0x1d8] sm:$0xff] %vm167_vm0, %v804_v63  ;;  %v567_v2 = vadd.f32 %v1532_v28, %v566_v0  ;;  %v727_v3 = vadd.f32 %v1532_v28, %v726_v1  ;;  %v568_v4 = vpop.f32.mrb[57].mxu0  ;;  %v728_v5 = vpop.f32.mrb[57].mxu1 }
 0x16d   :  { %v773_v6 = vmax.f32 %v567_v2, 0.0  ;;  %v805_v7 = vmax.f32 %v727_v3, 0.0 }
 0x16e   :  { %v571_v8 = vpop.f32.mrb[58].mxu0  ;;  %v731_v9 = vpop.f32.mrb[58].mxu1 }
 0x16f   :  { %837 = vst.msk [vmem:[%s1857_s3 + $0xe0] sm:$0xff] %vm167_vm0, %v773_v6  ;;  %869 = vst.msk [vmem:[%s1857_s3 + $0x1e0] sm:$0xff] %vm167_vm0, %v805_v7  ;;  %v572_v10 = vadd.f32 %v1532_v28, %v571_v8  ;;  %v732_v11 = vadd.f32 %v1532_v28, %v731_v9  ;;  %v573_v12 = vpop.f32.mrb[59].mxu0  ;;  %v733_v13 = vpop.f32.mrb[59].mxu1 }
 0x171   :  { %v774_v14 = vmax.f32 %v572_v10, 0.0  ;;  %v806_v15 = vmax.f32 %v732_v11, 0.0 }
 0x172   :  { %v576_v16 = vpop.f32.mrb[60].mxu0  ;;  %v736_v17 = vpop.f32.mrb[60].mxu1 }
 0x173   :  { %838 = vst.msk [vmem:[%s1857_s3 + $0xe8] sm:$0xff] %vm167_vm0, %v774_v14  ;;  %870 = vst.msk [vmem:[%s1857_s3 + $0x1e8] sm:$0xff] %vm167_vm0, %v806_v15  ;;  %v577_v18 = vadd.f32 %v1532_v28, %v576_v16  ;;  %v737_v19 = vadd.f32 %v1532_v28, %v736_v17  ;;  %v578_v20 = vpop.f32.mrb[61].mxu0  ;;  %v738_v21 = vpop.f32.mrb[61].mxu1 }
 0x175   :  { %v775_v22 = vmax.f32 %v577_v18, 0.0  ;;  %v807_v23 = vmax.f32 %v737_v19, 0.0 }
 0x176   :  { %v581_v24 = vpop.f32.mrb[62].mxu0  ;;  %v741_v25 = vpop.f32.mrb[62].mxu1 }
 0x177   :  { %839 = vst.msk [vmem:[%s1857_s3 + $0xf0] sm:$0xff] %vm167_vm0, %v775_v22  ;;  %871 = vst.msk [vmem:[%s1857_s3 + $0x1f0] sm:$0xff] %vm167_vm0, %v807_v23  ;;  %v582_v26 = vadd.f32 %v1532_v28, %v581_v24  ;;  %v742_v27 = vadd.f32 %v1532_v28, %v741_v25  ;;  %v583_v29 = vpop.f32.mrb[63].mxu0  ;;  %v743_v30 = vpop.f32.mrb[63].mxu1 }
 0x179   :  { %v776_v31 = vmax.f32 %v582_v26, 0.0  ;;  %v808_v32 = vmax.f32 %v742_v27, 0.0 }
 0x17b   :  { %840 = vst.msk [vmem:[%s1857_s3 + $0xf8] sm:$0xff] %vm167_vm0, %v776_v31  ;;  %872 = vst.msk [vmem:[%s1857_s3 + $0x1f8] sm:$0xff] %vm167_vm0, %v808_v32 }

// kernel: babyai_rl_forward.5
= control target key start
LH: loop header
LB: loop body
LE: loop exit
PB: predicated region body
PF: predicated region fallthrough
CT: control target
= control target key end

     0   :  { %s6504_s0 = inlined_call_operand.vmem [shape: f32[8,1024], index: 0, kind: input, shape index: {}]   ;;  %s6505_s1 = inlined_call_operand.vmem [shape: f32[6,8,64], index: 1, kind: input, shape index: {}]   ;;  %s6506_s2 = inlined_call_operand.vmem [shape: f32[8,8], index: 2, kind: input, shape index: {}]   ;;  %s6507_s3 = inlined_call_operand.vmem [shape: f32[2,128], index: 3, kind: input, shape index: {}]   ;;  %s6508_s4 = inlined_call_operand.vmem [shape: f32[64,96], index: 4, kind: input, shape index: {}]   ;;  %s6509_s5 = inlined_call_operand.vmem [shape: f32[1,96], index: 5, kind: input, shape index: {}]   ;;  %s6510_s6 = inlined_call_operand.vmem [shape: f32[32,96], index: 6, kind: input, shape index: {}]   ;;  %s6511_s7 = inlined_call_operand.vmem [shape: f32[32,32], index: 7, kind: input, shape index: {}]   ;;  %s6512_s8 = inlined_call_operand.vmem [shape: f32[1,32], index: 8, kind: input, shape index: {}]   ;;  %s6513_s9 = inlined_call_operand.vmem [shape: f32[16,1024], index: 9, kind: input, shape index: {}]   ;;  %s6514_s10 = inlined_call_operand.vmem [shape: f32[1024,64], index: 10, kind: input, shape index: {}]   ;;  %s6515_s11 = inlined_call_operand.vmem [shape: f32[1,64], index: 11, kind: input, shape index: {}]   ;;  %s6516_s12 = inlined_call_operand.vmem [shape: f32[1024,64], index: 12, kind: input, shape index: {}]   ;;  %s6517_s13 = inlined_call_operand.vmem [shape: f32[8,64], index: 13, kind: input, shape index: {}]   ;;  %s6518_s14 = inlined_call_operand.vmem [shape: f32[1,64], index: 14, kind: input, shape index: {}]   ;;  %s6519_s15 = inlined_call_operand.vmem [shape: f32[128,256], index: 15, kind: input, shape index: {}]   ;;  %s6520_s16 = inlined_call_operand.vmem [shape: f32[64,256], index: 16, kind: input, shape index: {}]   ;;  %s6521_s17 = inlined_call_operand.vmem [shape: f32[1,256], index: 17, kind: input, shape index: {}]   ;;  %s6522_s18 = inlined_call_operand.vmem [shape: f32[96,64], index: 18, kind: input, shape index: {}]   ;;  %s6523_s19 = inlined_call_operand.vmem [shape: f32[1,64], index: 19, kind: input, shape index: {}]   ;;  %s6524_s20 = inlined_call_operand.vmem [shape: f32[64,7], index: 20, kind: input, shape index: {}]   ;;  %s6525_s21 = inlined_call_operand.vmem [shape: f32[1,7], index: 21, kind: input, shape index: {}]   ;;  %s6526_s22 = inlined_call_operand.hbm [shape: f32[8,7], index: 22, kind: output, shape index: {0}]   ;;  %s6527_s23 = inlined_call_operand.vmem [shape: f32[2,128], index: 23, kind: output, shape index: {1}]  }
   0x1   :  { %6533 = sst [smem:[#allocation6_spill]] %s6504_s0 }
   0x2   :  { %6534 = sst [smem:[#allocation7_spill]] %s6505_s1 }
   0x3   :  { %6535 = sst [smem:[#allocation8_spill]] %s6506_s2 }
   0x4   :  { %6536 = sst [smem:[#allocation9_spill]] %s6507_s3 }
   0x5   :  { %6537 = sst [smem:[#allocation10_spill]] %s6508_s4 }
   0x6   :  { %6538 = sst [smem:[#allocation11_spill]] %s6509_s5 }
   0x7   :  { %6539 = sst [smem:[#allocation12_spill]] %s6510_s6 }
   0x8   :  { %6540 = sst [smem:[#allocation13_spill]] %s6511_s7 }
   0x9   :  { %s6541_s24 = sld [smem:[#allocation10_spill]]  ;;  %s6542_s2 = sld [smem:[#allocation12_spill]]  ;;  %v4902_v3 = vmov 0.0|0.0   ;;  %vm4903_vm0 = vmmov 0   ;;  %v4904_v11 = vmov 0.0  }
   0xa   :  { %4258 = vmatprep.subr.bf16.mxu0 %v4902_v3  ;;  %4270 = vmatprep.subr.bf16.mxu1 %v4902_v3 }
   0xb   :  { %4043 = vmatprep.mubr.msk.f32.mxu1 %vm4903_vm0, %v4904_v11  ;;  %4032 = vmatprep.mubr.msk.f32.mxu0 %vm4903_vm0, %v4904_v11 }
   0xf   :  { %v82_v0 = vld [vmem:[%s6541_s24] sm:$0xff]  ;;  %v83_v1 = vld [vmem:[%s6541_s24 + $0x8] sm:$0xff]  ;;  %v84_v6 = vld [vmem:[%s6541_s24 + $0x10] sm:$0xff] }
  0x10   :  { %v91_v2 = vld [vmem:[%s6542_s2] sm:$0xff]  ;;  %v5041_v4 = vpack.c.bf16 %v83_v1, %v82_v0  ;;  %v92_v5 = vld [vmem:[%s6542_s2 + $0x8] sm:$0xff]  ;;  %v85_v7 = vld [vmem:[%s6541_s24 + $0x18] sm:$0xff] }
  0x11   :  { %v5052_v8 = vpack.c.bf16 %v92_v5, %v91_v2  ;;  %v93_v9 = vld [vmem:[%s6542_s2 + $0x10] sm:$0xff]  ;;  %v94_v10 = vld [vmem:[%s6542_s2 + $0x18] sm:$0xff]  ;;  %v5065_v12 = vpack.c.bf16 %v85_v7, %v84_v6  ;;  %v86_v14 = vld [vmem:[%s6541_s24 + $0x20] sm:$0xff] }
  0x12   :  { %4260 = vmatpush3.bf16.msra.mxu0 %v5041_v4  ;;  %v5069_v13 = vpack.c.bf16 %v94_v10, %v93_v9  ;;  %v87_v15 = vld [vmem:[%s6541_s24 + $0x28] sm:$0xff] }
  0x13   :  { %4272 = vmatpush3.bf16.msra.mxu1 %v5052_v8  ;;  %4261 = vmatprep.subr.bf16.mxu0 %v4902_v3 }
  0x14   :  { %29 = vsyncpa [#allocation4], 0  ;;  %4273 = vmatprep.subr.bf16.mxu1 %v4902_v3  ;;  %v5079_v16 = vpack.c.bf16 %v87_v15, %v86_v14  ;;  %v88_v17 = vld [vmem:[%s6541_s24 + $0x30] sm:$0xff]  ;;  %v89_v18 = vld [vmem:[%s6541_s24 + $0x38] sm:$0xff]  ;;  %s6543_s3 = sld [smem:[#allocation7_spill]]  ;;  %vm102_vm1 = vcmask 523264  }
  0x15   :  { %v5092_v19 = vpack.c.bf16 %v89_v18, %v88_v17  ;;  %s4905_s0 = smov 64   ;;  %s6544_s25 = sld [smem:[#allocation11_spill]]  ;;  %vm176_vm2 = vcmask 261120   ;;  %vm1258_vm3 = vcmask 130048   ;;  %vm2412_vm4 = vcmask 64512  }
  0x16   :  { %4263 = vmatpush3.bf16.msra.mxu0 %v5065_v12  ;;  %s4906_s26 = smov 96   ;;  %s4907_s30 = smov 112   ;;  %vm3355_vm5 = vcmask 1041408   ;;  %vm3357_vm6 = vcmask 1043456   ;;  %vm3359_vm7 = vcmask 1045504   ;;  %vm3388_vm8 = vcmask 785408  }
  0x17   :  { %4275 = vmatpush3.bf16.msra.mxu1 %v5069_v13  ;;  %4264 = vmatprep.subr.bf16.mxu0 %v4902_v3  ;;  %s6547_s5 = sld [smem:[#allocation8_spill]]  ;;  %s4909_s4 = smov [#allocation3]   ;;  %vm3551_vm9 = vcmask 56320  }
  0x18   :  { %4276 = vmatprep.subr.bf16.mxu1 %v4902_v3 }
  0x1a   :  { %4044 = vmatmul.mubr.f32.vlgmr.msra.gmra.mrb[0].mxu1 %v4904_v11  ;;  %4266 = vmatpush3.bf16.msra.mxu0 %v5079_v16  ;;  %v95_v20 = vld [vmem:[%s6543_s3] sm:$0xff]  ;;  %v3574_v36 = vld [vmem:[%s6543_s3 + $0x8] sm:$0xff]  ;;  %v3578_v58 = vld [vmem:[%s6543_s3 + $0x10] sm:$0xff] }
  0x1b   :  { %4267 = vmatprep.subr.bf16.mxu0 %v4902_v3  ;;  %4278 = vmatpush3.bf16.msra.mxu1 %v5041_v4  ;;  %v5121_v25 = vld [vmem:[%s6544_s25] ss:$0 sm:$0xff]  ;;  %s6545_s25 = sld [smem:[#allocation13_spill]] }
  0x1c   :  { %4279 = vmatprep.subr.bf16.mxu1 %v4902_v3  ;;  %4062 = vmatprep.mubr.msk.f32.mxu1 %vm4903_vm0, %v4904_v11 }
  0x1e   :  { %4269 = vmatpush3.bf16.msra.mxu0 %v5092_v19 }
  0x1f   :  { %4281 = vmatpush3.bf16.msra.mxu1 %v5065_v12  ;;  %4288 = vmatprep.subr.bf16.mxu0 %v4902_v3 }
  0x20   :  { %4282 = vmatprep.subr.bf16.mxu1 %v4902_v3 }
  0x21   :  { %4033 = vmatmul.mubr.msk.f32.vlgmr.msra.gmra.mrb[0].mxu0 %vm102_vm1, %v95_v20 }
  0x22   :  { %4290 = vmatpush3.bf16.msra.mxu0 %v5052_v8  ;;  %4073 = vmatprep.mubr.msk.f32.mxu0 %vm4903_vm0, %v4904_v11 }
  0x23   :  { %4284 = vmatpush3.bf16.msra.mxu1 %v5079_v16  ;;  %4291 = vmatprep.subr.bf16.mxu0 %v4902_v3 }
  0x24   :  { %4285 = vmatprep.subr.bf16.mxu1 %v4902_v3 }
  0x26   :  { %4293 = vmatpush3.bf16.msra.mxu0 %v5069_v13 }
  0x27   :  { %4287 = vmatpush3.bf16.msra.mxu1 %v5092_v19  ;;  %4294 = vmatprep.subr.bf16.mxu0 %v4902_v3 }
  0x28   :  { %4306 = vmatprep.subr.bf16.mxu1 %v4902_v3 }
  0x2a   :  { %4063 = vmatmul.mubr.msk.f32.vlgmr.msra.gmra.mrb[2].mxu1 %vm102_vm1, %v3574_v36 }
  0x2b   :  { %4308 = vmatpush3.bf16.msra.mxu1 %v5052_v8  ;;  %4103 = vmatprep.mubr.msk.f32.mxu1 %vm4903_vm0, %v4904_v11 }
  0x2c   :  { %4309 = vmatprep.subr.bf16.mxu1 %v4902_v3 }
  0x2f   :  { %4311 = vmatpush3.bf16.msra.mxu1 %v5069_v13 }
  0x30   :  { %4312 = vmatprep.subr.bf16.mxu1 %v4902_v3 }
  0xed   :  { %v246_v21 = vpop.f32.mrb[0].mxu1 }
  0xee   :  { %258 = vrot.lane.b32.xlu0 %v246_v21, %s4905_s0  ;;  %v4045_v22 = vpop.f32.mrb[1].mxu1 }
  0xf4   :  { %v172_v23 = vpop.f32.mrb[0].mxu0 }
  0xf5   :  { %v4034_v24 = vpop.f32.mrb[1].mxu0  ;;  %v173_v26 = vadd.f32 %v5121_v25, %v172_v23 }
  0xf6   :  { %v3582_v24 = vld [vmem:[%s6543_s3 + $0x18] sm:$0xff] }
  0xf7   :  { %v250_v27 = vadd.f32 %v246_v21, %v173_v26 }
  0xf9   :  { %v3573_v28 = vmul.f32 -1.442695, %v250_v27 }
  0xfb   :  { %4794 = vpow2.f32 %v3573_v28 }
  0xfd   :  { %v347_v43 = vpop.f32.mrb[2].mxu1 }
  0xfe   :  { %v4064_v44 = vpop.f32.mrb[3].mxu1  ;;  %v348_v48 = vadd.f32 %v5121_v25, %v347_v43 }
 0x105   :  { %v4795_v29 = vpop.eup %4794 }
 0x106   :  { %v254_v30 = vadd.f32 1.0, %v4795_v29 }
 0x108   :  { %4796 = vrcp.f32 %v254_v30 }
 0x112   :  { %v4797_v31 = vpop.eup %4796 }
 0x113   :  { %v268_v38 = vsub.f32 1.0, %v4797_v31  ;;  %v274_v40 = vmul.f32 0.0, %v4797_v31 }
 0x160   :  { %v259_v32 = vpop.permute.xlu0 %258 }
 0x161   :  { %v261_v33 = vmul.f32 %v4797_v31, %v259_v32 }
 0x163   :  { %263 = vrot.lane.b32.xlu0 %v261_v33, %s4905_s0 }
 0x1d5   :  { %v264_v34 = vpop.permute.xlu0 %263 }
 0x1d6   :  { %v266_v35 = vadd.f32 %v264_v34, %v173_v26 }
 0x1d8   :  { %4798 = vtanh.f32 %v266_v35 }
 0x1e2   :  { %v4799_v37 = vpop.eup %4798 }
 0x1e3   :  { %270 = vrot.lane.b32.xlu1 %v4799_v37, %s4906_s26 }
 0x255   :  { %v271_v39 = vpop.permute.xlu1 %270 }
 0x256   :  { %v273_v41 = vmul.f32 %v271_v39, %v268_v38 }
 0x258   :  { %v275_v42 = vadd.f32 %v274_v40, %v273_v41 }
 0x25a   :  { %352 = vrot.lane.b32.xlu1 %v275_v42, %s4906_s26 }
 0x2cc   :  { %v353_v45 = vpop.permute.xlu1 %352 }
 0x2cd   :  { %4074 = vmatmul.mubr.msk.f32.vlgmr.msra.gmra.mrb[2].mxu0 %vm176_vm2, %v353_v45 }
 0x2ce   :  { %4296 = vmatpush3.bf16.msra.mxu0 %v5041_v4  ;;  %4092 = vmatprep.mubr.msk.f32.mxu0 %vm4903_vm0, %v4904_v11 }
 0x2cf   :  { %4297 = vmatprep.subr.bf16.mxu0 %v4902_v3 }
 0x2d2   :  { %4299 = vmatpush3.bf16.msra.mxu0 %v5065_v12 }
 0x2d3   :  { %4300 = vmatprep.subr.bf16.mxu0 %v4902_v3 }
 0x2d6   :  { %4302 = vmatpush3.bf16.msra.mxu0 %v5079_v16 }
 0x2d7   :  { %4303 = vmatprep.subr.bf16.mxu0 %v4902_v3 }
 0x2da   :  { %4305 = vmatpush3.bf16.msra.mxu0 %v5092_v19 }
 0x2db   :  { %4324 = vmatprep.subr.bf16.mxu0 %v4902_v3 }
 0x2dd   :  { %4093 = vmatmul.mubr.msk.f32.vlgmr.msra.gmra.mrb[4].mxu0 %vm102_vm1, %v3578_v58 }
 0x2de   :  { %4326 = vmatpush3.bf16.msra.mxu0 %v5052_v8  ;;  %4133 = vmatprep.mubr.msk.f32.mxu0 %vm4903_vm0, %v4904_v11 }
 0x2df   :  { %4327 = vmatprep.subr.bf16.mxu0 %v4902_v3 }
 0x2e2   :  { %4329 = vmatpush3.bf16.msra.mxu0 %v5069_v13 }
 0x2e3   :  { %4330 = vmatprep.subr.bf16.mxu0 %v4902_v3 }
 0x3a0   :  { %v422_v46 = vpop.f32.mrb[2].mxu0 }
 0x3a1   :  { %434 = vrot.lane.b32.xlu0 %v422_v46, %s4905_s0  ;;  %v4075_v47 = vpop.f32.mrb[3].mxu0  ;;  %v426_v49 = vadd.f32 %v422_v46, %v348_v48 }
 0x3a2   :  { %v3586_v47 = vld [vmem:[%s6543_s3 + $0x20] sm:$0xff] }
 0x3a3   :  { %v3577_v50 = vmul.f32 -1.442695, %v426_v49 }
 0x3a5   :  { %4800 = vpow2.f32 %v3577_v50 }
 0x3af   :  { %v4801_v51 = vpop.eup %4800 }
 0x3b0   :  { %v430_v52 = vadd.f32 1.0, %v4801_v51  ;;  %v523_v1 = vpop.f32.mrb[4].mxu0 }
 0x3b1   :  { %v4094_v2 = vpop.f32.mrb[5].mxu0  ;;  %v524_v9 = vadd.f32 %v5121_v25, %v523_v1 }
 0x3b2   :  { %4802 = vrcp.f32 %v430_v52 }
 0x3bc   :  { %v4803_v53 = vpop.eup %4802 }
 0x3bd   :  { %v444_v60 = vsub.f32 1.0, %v4803_v53  ;;  %v450_v62 = vmul.f32 %v4803_v53, %v275_v42 }
 0x413   :  { %v435_v54 = vpop.permute.xlu0 %434 }
 0x414   :  { %v437_v55 = vmul.f32 %v4803_v53, %v435_v54 }
 0x416   :  { %439 = vrot.lane.b32.xlu1 %v437_v55, %s4905_s0 }
 0x488   :  { %v440_v56 = vpop.permute.xlu1 %439 }
 0x489   :  { %v442_v57 = vadd.f32 %v440_v56, %v348_v48 }
 0x48b   :  { %4804 = vtanh.f32 %v442_v57 }
 0x495   :  { %v4805_v59 = vpop.eup %4804 }
 0x496   :  { %446 = vrot.lane.b32.xlu0 %v4805_v59, %s4906_s26 }
 0x508   :  { %v447_v61 = vpop.permute.xlu0 %446 }
 0x509   :  { %v449_v63 = vmul.f32 %v447_v61, %v444_v60 }
 0x50b   :  { %v451_v0 = vadd.f32 %v450_v62, %v449_v63 }
 0x50d   :  { %528 = vrot.lane.b32.xlu1 %v451_v0, %s4906_s26 }
 0x57f   :  { %v529_v5 = vpop.permute.xlu1 %528 }
 0x580   :  { %4104 = vmatmul.mubr.msk.f32.vlgmr.msra.gmra.mrb[4].mxu1 %vm176_vm2, %v529_v5 }
 0x581   :  { %4314 = vmatpush3.bf16.msra.mxu1 %v5041_v4  ;;  %4122 = vmatprep.mubr.msk.f32.mxu1 %vm4903_vm0, %v4904_v11 }
 0x582   :  { %4315 = vmatprep.subr.bf16.mxu1 %v4902_v3 }
 0x585   :  { %4317 = vmatpush3.bf16.msra.mxu1 %v5065_v12 }
 0x586   :  { %4318 = vmatprep.subr.bf16.mxu1 %v4902_v3 }
 0x589   :  { %4320 = vmatpush3.bf16.msra.mxu1 %v5079_v16 }
 0x58a   :  { %4321 = vmatprep.subr.bf16.mxu1 %v4902_v3 }
 0x58d   :  { %4323 = vmatpush3.bf16.msra.mxu1 %v5092_v19 }
 0x58e   :  { %4342 = vmatprep.subr.bf16.mxu1 %v4902_v3 }
 0x590   :  { %4123 = vmatmul.mubr.msk.f32.vlgmr.msra.gmra.mrb[6].mxu1 %vm102_vm1, %v3582_v24 }
 0x591   :  { %4344 = vmatpush3.bf16.msra.mxu1 %v5052_v8  ;;  %4163 = vmatprep.mubr.msk.f32.mxu1 %vm4903_vm0, %v4904_v11 }
 0x592   :  { %4345 = vmatprep.subr.bf16.mxu1 %v4902_v3 }
 0x595   :  { %4347 = vmatpush3.bf16.msra.mxu1 %v5069_v13 }
 0x596   :  { %4348 = vmatprep.subr.bf16.mxu1 %v4902_v3 }
 0x653   :  { %v598_v6 = vpop.f32.mrb[4].mxu1 }
 0x654   :  { %610 = vrot.lane.b32.xlu0 %v598_v6, %s4905_s0  ;;  %v4105_v7 = vpop.f32.mrb[5].mxu1  ;;  %v602_v10 = vadd.f32 %v598_v6, %v524_v9 }
 0x656   :  { %v3581_v14 = vmul.f32 -1.442695, %v602_v10 }
 0x658   :  { %4806 = vpow2.f32 %v3581_v14 }
 0x662   :  { %v4807_v15 = vpop.eup %4806 }
 0x663   :  { %v606_v17 = vadd.f32 1.0, %v4807_v15  ;;  %v699_v32 = vpop.f32.mrb[6].mxu1 }
 0x664   :  { %v4124_v33 = vpop.f32.mrb[7].mxu1  ;;  %v700_v37 = vadd.f32 %v5121_v25, %v699_v32 }
 0x665   :  { %4808 = vrcp.f32 %v606_v17  ;;  %v1159_v33 = vld [vmem:[%s6545_s25 + $0x18] sm:$0xff] }
 0x66f   :  { %v4809_v18 = vpop.eup %4808 }
 0x670   :  { %v620_v27 = vsub.f32 1.0, %v4809_v18  ;;  %v626_v29 = vmul.f32 %v4809_v18, %v451_v0 }
 0x6c6   :  { %v611_v20 = vpop.permute.xlu0 %610 }
 0x6c7   :  { %v613_v21 = vmul.f32 %v4809_v18, %v611_v20 }
 0x6c9   :  { %615 = vrot.lane.b32.xlu1 %v613_v21, %s4905_s0 }
 0x73b   :  { %v616_v22 = vpop.permute.xlu1 %615 }
 0x73c   :  { %v618_v23 = vadd.f32 %v616_v22, %v524_v9 }
 0x73e   :  { %4810 = vtanh.f32 %v618_v23 }
 0x748   :  { %v4811_v26 = vpop.eup %4810 }
 0x749   :  { %622 = vrot.lane.b32.xlu0 %v4811_v26, %s4906_s26 }
 0x7bb   :  { %v623_v28 = vpop.permute.xlu0 %622 }
 0x7bc   :  { %v625_v30 = vmul.f32 %v623_v28, %v620_v27 }
 0x7be   :  { %v627_v31 = vadd.f32 %v626_v29, %v625_v30  ;;  %v1156_v30 = vld [vmem:[%s6545_s25] sm:$0xff] }
 0x7c0   :  { %704 = vrot.lane.b32.xlu1 %v627_v31, %s4906_s26 }
 0x832   :  { %v705_v34 = vpop.permute.xlu1 %704 }
 0x833   :  { %4134 = vmatmul.mubr.msk.f32.vlgmr.msra.gmra.mrb[6].mxu0 %vm176_vm2, %v705_v34 }
 0x834   :  { %4332 = vmatpush3.bf16.msra.mxu0 %v5041_v4  ;;  %4152 = vmatprep.mubr.msk.f32.mxu0 %vm4903_vm0, %v4904_v11 }
 0x835   :  { %4333 = vmatprep.subr.bf16.mxu0 %v4902_v3 }
 0x838   :  { %4335 = vmatpush3.bf16.msra.mxu0 %v5065_v12 }
 0x839   :  { %4336 = vmatprep.subr.bf16.mxu0 %v4902_v3 }
 0x83c   :  { %4338 = vmatpush3.bf16.msra.mxu0 %v5079_v16 }
 0x83d   :  { %4339 = vmatprep.subr.bf16.mxu0 %v4902_v3 }
 0x840   :  { %4341 = vmatpush3.bf16.msra.mxu0 %v5092_v19 }
 0x841   :  { %4360 = vmatprep.subr.bf16.mxu0 %v4902_v3 }
 0x843   :  { %4153 = vmatmul.mubr.msk.f32.vlgmr.msra.gmra.mrb[8].mxu0 %vm102_vm1, %v3586_v47 }
 0x844   :  { %4362 = vmatpush3.bf16.msra.mxu0 %v5052_v8  ;;  %4193 = vmatprep.mubr.msk.f32.mxu0 %vm4903_vm0, %v4904_v11 }
 0x845   :  { %4363 = vmatprep.subr.bf16.mxu0 %v4902_v3 }
 0x848   :  { %4365 = vmatpush3.bf16.msra.mxu0 %v5069_v13 }
 0x849   :  { %4366 = vmatprep.subr.bf16.mxu0 %v4902_v3 }
 0x906   :  { %v774_v35 = vpop.f32.mrb[6].mxu0 }
 0x907   :  { %786 = vrot.lane.b32.xlu0 %v774_v35, %s4905_s0  ;;  %v4135_v36 = vpop.f32.mrb[7].mxu0  ;;  %v778_v38 = vadd.f32 %v774_v35, %v700_v37 }
 0x908   :  { %v1243_v36 = vld [vmem:[%s6513_s9 + $0x8] sm:$0xff] }
 0x909   :  { %v3585_v39 = vmul.f32 -1.442695, %v778_v38  ;;  %v1247_v38 = vld [vmem:[%s6513_s9 + $0x28] sm:$0xff] }
 0x90b   :  { %4812 = vpow2.f32 %v3585_v39 }
 0x915   :  { %v4813_v40 = vpop.eup %4812 }
 0x916   :  { %v782_v41 = vadd.f32 1.0, %v4813_v40  ;;  %v875_v8 = vpop.f32.mrb[8].mxu0  ;;  %v1255_v40 = vld [vmem:[%s6513_s9 + $0x68] sm:$0xff] }
 0x917   :  { %v4154_v54 = vpop.f32.mrb[9].mxu0 }
 0x918   :  { %4814 = vrcp.f32 %v782_v41  ;;  %v4380_v41 = vpack.c.bf16 %v1255_v40, %v1247_v38  ;;  %v1253_v54 = vld [vmem:[%s6513_s9 + $0x58] sm:$0xff]  ;;  %v1871_v38 = vld [vmem:[%s6514_s10 + $0x28] sm:$0xff] }
 0x922   :  { %v4815_v42 = vpop.eup %4814 }
 0x923   :  { %v796_v49 = vsub.f32 1.0, %v4815_v42  ;;  %v802_v51 = vmul.f32 %v4815_v42, %v627_v31  ;;  %v1158_v31 = vld [vmem:[%s6545_s25 + $0x10] sm:$0xff] }
 0x924   :  { %v4370_v34 = vpack.c.bf16 %v1159_v33, %v1158_v31  ;;  %v1886_v31 = vld [vmem:[%s6514_s10 + $0xa0] sm:$0xff] }
 0x925   :  { %v1918_v33 = vld [vmem:[%s6514_s10 + $0x1a0] sm:$0xff] }
 0x979   :  { %v787_v43 = vpop.permute.xlu0 %786 }
 0x97a   :  { %v789_v44 = vmul.f32 %v4815_v42, %v787_v43 }
 0x97c   :  { %791 = vrot.lane.b32.xlu1 %v789_v44, %s4905_s0 }
 0x9ee   :  { %v792_v45 = vpop.permute.xlu1 %791 }
 0x9ef   :  { %v794_v46 = vadd.f32 %v792_v45, %v700_v37  ;;  %v1251_v37 = vld [vmem:[%s6513_s9 + $0x48] sm:$0xff] }
 0x9f0   :  { %v4372_v39 = vpack.c.bf16 %v1251_v37, %v1243_v36  ;;  %v1870_v37 = vld [vmem:[%s6514_s10 + $0x20] sm:$0xff] }
 0x9f1   :  { %4816 = vtanh.f32 %v794_v46 }
 0x9fb   :  { %v4817_v48 = vpop.eup %4816 }
 0x9fc   :  { %798 = vrot.lane.b32.xlu0 %v4817_v48, %s4906_s26  ;;  %v1242_v48 = vld [vmem:[%s6513_s9] sm:$0xff] }
 0xa6e   :  { %v799_v50 = vpop.permute.xlu0 %798 }
 0xa6f   :  { %v801_v52 = vmul.f32 %v799_v50, %v796_v49  ;;  %v1250_v49 = vld [vmem:[%s6513_s9 + $0x40] sm:$0xff] }
 0xa70   :  { %v1246_v50 = vld [vmem:[%s6513_s9 + $0x20] sm:$0xff] }
 0xa71   :  { %v803_v53 = vadd.f32 %v802_v51, %v801_v52  ;;  %v4374_v51 = vpack.c.bf16 %v1250_v49, %v1242_v48  ;;  %v1254_v52 = vld [vmem:[%s6513_s9 + $0x60] sm:$0xff]  ;;  %v4414_v48 = vpack.c.bf16 %v1871_v38, %v1870_v37  ;;  %v1880_v37 = vld [vmem:[%s6514_s10 + $0x70] sm:$0xff]  ;;  %v1881_v38 = vld [vmem:[%s6514_s10 + $0x78] sm:$0xff] }
 0xa73   :  { %880 = vrot.lane.b32.xlu1 %v803_v53, %s4906_s26 }
 0xae5   :  { %v881_v55 = vpop.permute.xlu1 %880 }
 0xae6   :  { %4164 = vmatmul.mubr.msk.f32.vlgmr.msra.gmra.mrb[8].mxu1 %vm176_vm2, %v881_v55 }
 0xae7   :  { %4350 = vmatpush3.bf16.msra.mxu1 %v5041_v4  ;;  %4182 = vmatprep.mubr.msk.f32.mxu1 %vm4903_vm0, %v4904_v11  ;;  %v876_v4 = vadd.f32 %v5121_v25, %v875_v8  ;;  %v1245_v8 = vld [vmem:[%s6513_s9 + $0x18] sm:$0xff] }
 0xae8   :  { %4351 = vmatprep.subr.bf16.mxu1 %v4902_v3  ;;  %v4376_v55 = vpack.c.bf16 %v1253_v54, %v1245_v8  ;;  %v1904_v8 = vld [vmem:[%s6514_s10 + $0x130] sm:$0xff]  ;;  %v1905_v54 = vld [vmem:[%s6514_s10 + $0x138] sm:$0xff] }
 0xaeb   :  { %4353 = vmatpush3.bf16.msra.mxu1 %v5065_v12 }
 0xaec   :  { %4354 = vmatprep.subr.bf16.mxu1 %v4902_v3 }
 0xaef   :  { %4356 = vmatpush3.bf16.msra.mxu1 %v5079_v16 }
 0xaf0   :  { %4357 = vmatprep.subr.bf16.mxu1 %v4902_v3 }
 0xaf3   :  { %4359 = vmatpush3.bf16.msra.mxu1 %v5092_v19  ;;  %v3590_v19 = vld [vmem:[%s6543_s3 + $0x28] sm:$0xff] }
 0xaf4   :  { %4373 = vmatprep.subr.bf16.mxu1 %v4372_v39 }
 0xaf6   :  { %4183 = vmatmul.mubr.msk.f32.vlgmr.msra.gmra.mrb[10].mxu1 %vm102_vm1, %v3590_v19 }
 0xaf7   :  { %1326 = vmatprep.mubr.f32.mxu1 %v4904_v11  ;;  %4375 = vmatpush1.bf16.msra.mxu1 %v4374_v51 }
 0xaf8   :  { %4377 = vmatprep.subr.bf16.mxu1 %v4376_v55 }
 0xbb9   :  { %v950_v13 = vpop.f32.mrb[8].mxu1 }
 0xbba   :  { %962 = vrot.lane.b32.xlu0 %v950_v13, %s4905_s0  ;;  %v4165_v56 = vpop.f32.mrb[9].mxu1  ;;  %v954_v57 = vadd.f32 %v950_v13, %v876_v4  ;;  %v1244_v13 = vld [vmem:[%s6513_s9 + $0x10] sm:$0xff] }
 0xbbb   :  { %v1252_v56 = vld [vmem:[%s6513_s9 + $0x50] sm:$0xff] }
 0xbbc   :  { %v3589_v58 = vmul.f32 -1.442695, %v954_v57  ;;  %v1249_v57 = vld [vmem:[%s6513_s9 + $0x38] sm:$0xff] }
 0xbbe   :  { %4818 = vpow2.f32 %v3589_v58  ;;  %v1257_v58 = vld [vmem:[%s6513_s9 + $0x78] sm:$0xff] }
 0xbc8   :  { %v4819_v59 = vpop.eup %4818 }
 0xbc9   :  { %v958_v60 = vadd.f32 1.0, %v4819_v59  ;;  %v1051_v9 = vpop.f32.mrb[10].mxu1 }
 0xbca   :  { %v4184_v10 = vpop.f32.mrb[11].mxu1  ;;  %v1052_v18 = vadd.f32 %v5121_v25, %v1051_v9  ;;  %v1157_v25 = vld [vmem:[%s6545_s25 + $0x8] sm:$0xff]  ;;  %v1898_v9 = vld [vmem:[%s6514_s10 + $0x100] sm:$0xff] }
 0xbcb   :  { %4820 = vrcp.f32 %v958_v60  ;;  %v4367_v32 = vpack.c.bf16 %v1157_v25, %v1156_v30  ;;  %v4378_v60 = vpack.c.bf16 %v1252_v56, %v1244_v13  ;;  %v1899_v10 = vld [vmem:[%s6514_s10 + $0x108] sm:$0xff]  ;;  %v1900_v30 = vld [vmem:[%s6514_s10 + $0x110] sm:$0xff]  ;;  %v1901_v25 = vld [vmem:[%s6514_s10 + $0x118] sm:$0xff] }
 0xbcc   :  { %v4442_v36 = vpack.c.bf16 %v1901_v25, %v1900_v30  ;;  %v1891_v13 = vld [vmem:[%s6514_s10 + $0xc8] sm:$0xff]  ;;  %v1922_v56 = vld [vmem:[%s6514_s10 + $0x1c0] sm:$0xff] }
 0xbcd   :  { %v1910_v30 = vld [vmem:[%s6514_s10 + $0x160] sm:$0xff]  ;;  %v1911_v25 = vld [vmem:[%s6514_s10 + $0x168] sm:$0xff] }
 0xbd5   :  { %v4821_v12 = vpop.eup %4820 }
 0xbd6   :  { %v972_v1 = vsub.f32 1.0, %v4821_v12  ;;  %v978_v5 = vmul.f32 %v4821_v12, %v803_v53  ;;  %v4382_v53 = vpack.c.bf16 %v1254_v52, %v1246_v50  ;;  %v1872_v50 = vld [vmem:[%s6514_s10 + $0x30] sm:$0xff] }
 0xc2c   :  { %v963_v61 = vpop.permute.xlu0 %962 }
 0xc2d   :  { %v965_v62 = vmul.f32 %v4821_v12, %v963_v61 }
 0xc2f   :  { %967 = vrot.lane.b32.xlu1 %v965_v62, %s4905_s0  ;;  %v4384_v62 = vpack.c.bf16 %v1257_v58, %v1249_v57  ;;  %v4450_v58 = vpack.c.bf16 %v1905_v54, %v1904_v8 }
 0xca1   :  { %v968_v16 = vpop.permute.xlu1 %967 }
 0xca2   :  { %v970_v63 = vadd.f32 %v968_v16, %v876_v4  ;;  %v3594_v4 = vld [vmem:[%s6512_s8] ss:$0 sm:$0xff]  ;;  %v1248_v16 = vld [vmem:[%s6513_s9 + $0x30] sm:$0xff] }
 0xca4   :  { %4822 = vtanh.f32 %v970_v63  ;;  %v1256_v63 = vld [vmem:[%s6513_s9 + $0x70] sm:$0xff] }
 0xca5   :  { %v4386_v19 = vpack.c.bf16 %v1256_v63, %v1248_v16  ;;  %v1907_v16 = vld [vmem:[%s6514_s10 + $0x148] sm:$0xff]  ;;  %v1892_v63 = vld [vmem:[%s6514_s10 + $0xd0] sm:$0xff] }
 0xcae   :  { %v4823_v0 = vpop.eup %4822 }
 0xcaf   :  { %974 = vrot.lane.b32.xlu0 %v4823_v0, %s4906_s26  ;;  %v1882_v0 = vld [vmem:[%s6514_s10 + $0x80] sm:$0xff] }
 0xd21   :  { %v975_v2 = vpop.permute.xlu0 %974 }
 0xd22   :  { %v977_v6 = vmul.f32 %v975_v2, %v972_v1  ;;  %v1883_v1 = vld [vmem:[%s6514_s10 + $0x88] sm:$0xff]  ;;  %v1914_v2 = vld [vmem:[%s6514_s10 + $0x180] sm:$0xff] }
 0xd24   :  { %v979_v7 = vadd.f32 %v978_v5, %v977_v6  ;;  %v1915_v5 = vld [vmem:[%s6514_s10 + $0x188] sm:$0xff]  ;;  %v1866_v6 = vld [vmem:[%s6514_s10] sm:$0xff] }
 0xd26   :  { %1056 = vrot.lane.b32.xlu1 %v979_v7, %s4906_s26 }
 0xd98   :  { %v1057_v14 = vpop.permute.xlu1 %1056 }
 0xd99   :  { %4194 = vmatmul.mubr.msk.f32.vlgmr.msra.gmra.mrb[10].mxu0 %vm176_vm2, %v1057_v14  ;;  %v1884_v14 = vld [vmem:[%s6514_s10 + $0x90] sm:$0xff] }
 0xd9a   :  { %4204 = vmatprep.mubr.msk.f32.mxu0 %vm4903_vm0, %v4904_v11  ;;  %4368 = vmatpush3.bf16.msra.mxu0 %v4367_v32  ;;  %v1887_v32 = vld [vmem:[%s6514_s10 + $0xa8] sm:$0xff] }
 0xd9b   :  { %4369 = vmatprep.subr.bf16.mxu0 %v4902_v3 }
 0xd9e   :  { %4371 = vmatpush3.bf16.msra.mxu0 %v4370_v34  ;;  %v1919_v34 = vld [vmem:[%s6514_s10 + $0x1a8] sm:$0xff] }
 0xd9f   :  { %4381 = vmatprep.subr.bf16.mxu0 %v4380_v41  ;;  %v4444_v40 = vpack.c.bf16 %v1919_v34, %v1918_v33  ;;  %v1897_v33 = vld [vmem:[%s6514_s10 + $0xf8] sm:$0xff]  ;;  %v1928_v34 = vld [vmem:[%s6514_s10 + $0x1f0] sm:$0xff] }
 0xe6c   :  { %v1126_v15 = vpop.f32.mrb[10].mxu0 }
 0xe6d   :  { %1138 = vrot.lane.b32.xlu0 %v1126_v15, %s4905_s0  ;;  %v4195_v17 = vpop.f32.mrb[11].mxu0  ;;  %v1130_v20 = vadd.f32 %v1126_v15, %v1052_v18 }
 0xe6e   :  { %v4404_v17 = vpack.c.bf16 %v1883_v1, %v1882_v0  ;;  %v1924_v0 = vld [vmem:[%s6514_s10 + $0x1d0] sm:$0xff]  ;;  %v1925_v1 = vld [vmem:[%s6514_s10 + $0x1d8] sm:$0xff] }
 0xe6f   :  { %v3593_v21 = vmul.f32 -1.442695, %v1130_v20  ;;  %v1885_v20 = vld [vmem:[%s6514_s10 + $0x98] sm:$0xff] }
 0xe71   :  { %4824 = vpow2.f32 %v3593_v21  ;;  %v1916_v21 = vld [vmem:[%s6514_s10 + $0x190] sm:$0xff] }
 0xe7b   :  { %v4825_v22 = vpop.eup %4824 }
 0xe7c   :  { %v1134_v23 = vadd.f32 1.0, %v4825_v22  ;;  %v1917_v22 = vld [vmem:[%s6514_s10 + $0x198] sm:$0xff] }
 0xe7e   :  { %4826 = vrcp.f32 %v1134_v23 }
 0xe88   :  { %v4827_v24 = vpop.eup %4826 }
 0xe89   :  { %v1148_v42 = vsub.f32 1.0, %v4827_v24  ;;  %v1154_v44 = vmul.f32 %v4827_v24, %v979_v7  ;;  %v1867_v7 = vld [vmem:[%s6514_s10 + $0x8] sm:$0xff] }
 0xe8a   :  { %v4406_v23 = vpack.c.bf16 %v1867_v7, %v1866_v6  ;;  %v1876_v6 = vld [vmem:[%s6514_s10 + $0x50] sm:$0xff] }
 0xedf   :  { %v1139_v26 = vpop.permute.xlu0 %1138 }
 0xee0   :  { %v1141_v27 = vmul.f32 %v4827_v24, %v1139_v26  ;;  %v4438_v24 = vpack.c.bf16 %v1899_v10, %v1898_v9  ;;  %v1868_v26 = vld [vmem:[%s6514_s10 + $0x10] sm:$0xff]  ;;  %v4456_v9 = vpack.c.bf16 %v1925_v1, %v1924_v0  ;;  %v1877_v10 = vld [vmem:[%s6514_s10 + $0x58] sm:$0xff] }
 0xee2   :  { %1143 = vrot.lane.b32.xlu1 %v1141_v27, %s4905_s0  ;;  %v1869_v27 = vld [vmem:[%s6514_s10 + $0x18] sm:$0xff] }
 0xf54   :  { %v1144_v28 = vpop.permute.xlu1 %1143 }
 0xf55   :  { %v1146_v29 = vadd.f32 %v1144_v28, %v1052_v18  ;;  %v4436_v18 = vpack.c.bf16 %v1915_v5, %v1914_v2  ;;  %v4408_v28 = vpack.c.bf16 %v1885_v20, %v1884_v14  ;;  %v1908_v14 = vld [vmem:[%s6514_s10 + $0x150] sm:$0xff]  ;;  %v1894_v20 = vld [vmem:[%s6514_s10 + $0xe0] sm:$0xff] }
 0xf57   :  { %4828 = vtanh.f32 %v1146_v29  ;;  %v4440_v29 = vpack.c.bf16 %v1917_v22, %v1916_v21  ;;  %v1895_v21 = vld [vmem:[%s6514_s10 + $0xe8] sm:$0xff]  ;;  %v1926_v22 = vld [vmem:[%s6514_s10 + $0x1e0] sm:$0xff] }
 0xf61   :  { %v4829_v35 = vpop.eup %4828 }
 0xf62   :  { %1150 = vrot.lane.b32.xlu0 %v4829_v35, %s4906_s26  ;;  %v4410_v35 = vpack.c.bf16 %v1869_v27, %v1868_v26  ;;  %v1878_v26 = vld [vmem:[%s6514_s10 + $0x60] sm:$0xff]  ;;  %v1879_v27 = vld [vmem:[%s6514_s10 + $0x68] sm:$0xff] }
 0xfd4   :  { %v1151_v43 = vpop.permute.xlu0 %1150 }
 0xfd5   :  { %v1153_v45 = vmul.f32 %v1151_v43, %v1148_v42  ;;  %v1903_v42 = vld [vmem:[%s6514_s10 + $0x128] sm:$0xff]  ;;  %v1888_v43 = vld [vmem:[%s6514_s10 + $0xb0] sm:$0xff] }
 0xfd7   :  { %v5267_v46 = vadd.f32 %v1154_v44, %v1153_v45  ;;  %v1889_v44 = vld [vmem:[%s6514_s10 + $0xb8] sm:$0xff]  ;;  %v1920_v45 = vld [vmem:[%s6514_s10 + $0x1b0] sm:$0xff] }
 0xfd8   :  { %v4416_v52 = vpack.c.bf16 %v1889_v44, %v1888_v43  ;;  %v1946_v44 = vld [vmem:[%s6514_s10 + $0x280] sm:$0xff] }
 0xfd9   :  { %1168 = vrot.lane.b32.xlu1 %v5267_v46, %s4906_s26  ;;  %s6546_s26 = sld [smem:[#allocation6_spill]] }
 0xfdf   :  { %v5567_v1 = vld [vmem:[%s6546_s26 + $0x28] sm:$0xff] }
0x104b   :  { %v1169_v47 = vpop.permute.xlu1 %1168 }
0x104c   :  { %4205 = vmatmul.mubr.msk.f32.vlgmr.msra.gmra.mrb[12].mxu0 %vm176_vm2, %v1169_v47  ;;  %v1921_v47 = vld [vmem:[%s6514_s10 + $0x1b8] sm:$0xff] }
0x104d   :  { %1468 = vmatprep.mubr.f32.mxu0 %v4904_v11  ;;  %4383 = vmatpush1.bf16.msra.mxu0 %v4382_v53 }
0x104e   :  { %4389 = vmatprep.subr.bf16.mxu0 %v4372_v39  ;;  %v4412_v39 = vpack.c.bf16 %v1887_v32, %v1886_v31  ;;  %v4462_v31 = vpack.c.bf16 %v1911_v25, %v1910_v30  ;;  %v1896_v32 = vld [vmem:[%s6514_s10 + $0xf0] sm:$0xff] }
0x111f   :  { %v1238_v59 = vpop.f32.mrb[12].mxu0 }
0x1120   :  { %v1239_v12 = vadd.f32 %v3594_v4, %v1238_v59  ;;  %v4206_v61 = vpop.f32.mrb[13].mxu0  ;;  %v1923_v4 = vld [vmem:[%s6514_s10 + $0x1c8] sm:$0xff]  ;;  %v1874_v59 = vld [vmem:[%s6514_s10 + $0x40] sm:$0xff] }
0x1121   :  { %v4452_v61 = vpack.c.bf16 %v1923_v4, %v1922_v56  ;;  %v5533_v4 = vld [vmem:[%s6546_s26] sm:$0xff] }
0x1122   :  { %1546 = vrot.lane.b32.xlu0 %v1239_v12, %s4907_s30  ;;  %3596 = vmatmul.mubr.msk.f32.vlgmr.msra.gmra.mrb[12].mxu1 %vm1258_vm3, %v1239_v12 }
0x1123   :  { %3598 = vmatmul.mubr.msk.f32.vlgmr.msra.gmra.mrb[14].mxu0 %vm1258_vm3, %v1239_v12  ;;  %4379 = vmatpush1.bf16.msra.mxu1 %v4378_v60 }
0x1124   :  { %1397 = vmatprep.mubr.f32.mxu1 %v4904_v11  ;;  %4385 = vmatprep.subr.bf16.mxu1 %v4384_v62 }
0x1125   :  { %4391 = vmatpush1.bf16.msra.mxu0 %v4374_v51  ;;  %1614 = vmatprep.mubr.f32.mxu0 %v4904_v11  ;;  %v1873_v51 = vld [vmem:[%s6514_s10 + $0x38] sm:$0xff] }
0x1126   :  { %3597 = vmatmul.mubr.msk.f32.vlgmr.msra.gmra.mrb[14].mxu1 %vm1258_vm3, %v1239_v12  ;;  %4397 = vmatprep.subr.bf16.mxu0 %v4380_v41  ;;  %v1902_v41 = vld [vmem:[%s6514_s10 + $0x120] sm:$0xff]  ;;  %v4418_v57 = vpack.c.bf16 %v1873_v51, %v1872_v50 }
0x1127   :  { %4387 = vmatpush1.bf16.msra.mxu1 %v4386_v19  ;;  %1539 = vmatprep.mubr.f32.mxu1 %v4904_v11  ;;  %v4446_v49 = vpack.c.bf16 %v1903_v42, %v1902_v41  ;;  %v1912_v41 = vld [vmem:[%s6514_s10 + $0x170] sm:$0xff]  ;;  %v1913_v42 = vld [vmem:[%s6514_s10 + $0x178] sm:$0xff] }
0x1128   :  { %4393 = vmatprep.subr.bf16.mxu1 %v4376_v55  ;;  %v1890_v55 = vld [vmem:[%s6514_s10 + $0xc0] sm:$0xff]  ;;  %v4466_v43 = vpack.c.bf16 %v1913_v42, %v1912_v41 }
0x112a   :  { %3599 = vmatmul.mubr.msk.f32.vlgmr.msra.gmra.mrb[16].mxu1 %vm1258_vm3, %v1239_v12  ;;  %v4420_v12 = vpack.c.bf16 %v1891_v13, %v1890_v55 }
0x112b   :  { %4395 = vmatpush1.bf16.msra.mxu1 %v4378_v60  ;;  %1685 = vmatprep.mubr.f32.mxu1 %v4904_v11  ;;  %v1875_v60 = vld [vmem:[%s6514_s10 + $0x48] sm:$0xff] }
0x112c   :  { %4401 = vmatprep.subr.bf16.mxu1 %v4384_v62  ;;  %v1906_v62 = vld [vmem:[%s6514_s10 + $0x140] sm:$0xff]  ;;  %v4422_v2 = vpack.c.bf16 %v1875_v60, %v1874_v59  ;;  %v5548_v59 = vld [vmem:[%s6546_s26 + $0x18] sm:$0xff] }
0x112d   :  { %v4454_v5 = vpack.c.bf16 %v1907_v16, %v1906_v62 }
0x1194   :  { %v1547_v15 = vpop.permute.xlu0 %1546 }
0x1195   :  { %3600 = vmatmul.mubr.msk.f32.vlgmr.msra.gmra.mrb[16].mxu0 %vm1258_vm3, %v1547_v15  ;;  %3601 = vmatmul.mubr.msk.f32.vlgmr.msra.gmra.mrb[18].mxu1 %vm1258_vm3, %v1547_v15 }
0x1196   :  { %4399 = vmatpush1.bf16.msra.mxu0 %v4382_v53  ;;  %4403 = vmatpush1.bf16.msra.mxu1 %v4386_v19  ;;  %v4448_v53 = vpack.c.bf16 %v1921_v47, %v1920_v45  ;;  %v1893_v19 = vld [vmem:[%s6514_s10 + $0xd8] sm:$0xff]  ;;  %v1947_v45 = vld [vmem:[%s6514_s10 + $0x288] sm:$0xff]  ;;  %v1978_v47 = vld [vmem:[%s6514_s10 + $0x380] sm:$0xff] }
0x1197   :  { %1756 = vmatprep.mubr.f32.mxu0 %v4904_v11  ;;  %1827 = vmatprep.mubr.f32.mxu1 %v4904_v11  ;;  %v4424_v7 = vpack.c.bf16 %v1893_v19, %v1892_v63  ;;  %v5562_v63 = vld [vmem:[%s6546_s26 + $0x30] sm:$0xff] }
0x1198   :  { %4405 = vmatprep.subr.bf16.mxu0 %v4404_v17  ;;  %4437 = vmatprep.subr.bf16.mxu1 %v4436_v18  ;;  %v4426_v17 = vpack.c.bf16 %v1877_v10, %v1876_v6  ;;  %v1930_v10 = vld [vmem:[%s6514_s10 + $0x200] sm:$0xff] }
0x1199   :  { %3602 = vmatmul.mubr.msk.f32.vlgmr.msra.gmra.mrb[18].mxu0 %vm1258_vm3, %v1547_v15  ;;  %3603 = vmatmul.mubr.msk.f32.vlgmr.msra.gmra.mrb[20].mxu1 %vm1258_vm3, %v1547_v15  ;;  %v1909_v15 = vld [vmem:[%s6514_s10 + $0x158] sm:$0xff] }
0x119a   :  { %4407 = vmatpush3.bf16.msra.mxu0 %v4406_v23  ;;  %4439 = vmatpush3.bf16.msra.mxu1 %v4438_v24  ;;  %v4458_v18 = vpack.c.bf16 %v1909_v15, %v1908_v14  ;;  %v4428_v23 = vpack.c.bf16 %v1895_v21, %v1894_v20  ;;  %v1927_v24 = vld [vmem:[%s6514_s10 + $0x1e8] sm:$0xff] }
0x119b   :  { %4409 = vmatprep.subr.bf16.mxu0 %v4408_v28  ;;  %4441 = vmatprep.subr.bf16.mxu1 %v4440_v29  ;;  %v4460_v28 = vpack.c.bf16 %v1927_v24, %v1926_v22  ;;  %v4430_v29 = vpack.c.bf16 %v1879_v27, %v1878_v26  ;;  %v1963_v20 = vld [vmem:[%s6514_s10 + $0x308] sm:$0xff]  ;;  %v1948_v26 = vld [vmem:[%s6514_s10 + $0x290] sm:$0xff]  ;;  %v1949_v27 = vld [vmem:[%s6514_s10 + $0x298] sm:$0xff] }
0x119e   :  { %4411 = vmatpush3.bf16.msra.mxu0 %v4410_v35  ;;  %4443 = vmatpush3.bf16.msra.mxu1 %v4442_v36  ;;  %v4432_v35 = vpack.c.bf16 %v1897_v33, %v1896_v32  ;;  %v1929_v36 = vld [vmem:[%s6514_s10 + $0x1f8] sm:$0xff]  ;;  %v1980_v33 = vld [vmem:[%s6514_s10 + $0x390] sm:$0xff] }
0x119f   :  { %4413 = vmatprep.subr.bf16.mxu0 %v4412_v39  ;;  %4445 = vmatprep.subr.bf16.mxu1 %v4444_v40  ;;  %v4464_v39 = vpack.c.bf16 %v1929_v36, %v1928_v34  ;;  %v4434_v40 = vpack.c.bf16 %v1881_v38, %v1880_v37  ;;  %v1981_v34 = vld [vmem:[%s6514_s10 + $0x398] sm:$0xff] }
0x11a2   :  { %4415 = vmatpush3.bf16.msra.mxu0 %v4414_v48  ;;  %4447 = vmatpush3.bf16.msra.mxu1 %v4446_v49  ;;  %v4468_v48 = vpack.c.bf16 %v1947_v45, %v1946_v44  ;;  %v1979_v49 = vld [vmem:[%s6514_s10 + $0x388] sm:$0xff]  ;;  %v1932_v45 = vld [vmem:[%s6514_s10 + $0x210] sm:$0xff] }
0x11a3   :  { %4417 = vmatprep.subr.bf16.mxu0 %v4416_v52  ;;  %4449 = vmatprep.subr.bf16.mxu1 %v4448_v53  ;;  %v4500_v50 = vpack.c.bf16 %v1979_v49, %v1978_v47  ;;  %v1933_v47 = vld [vmem:[%s6514_s10 + $0x218] sm:$0xff] }
0x11a6   :  { %4419 = vmatpush3.bf16.msra.mxu0 %v4418_v57  ;;  %4451 = vmatpush3.bf16.msra.mxu1 %v4450_v58  ;;  %v5538_v57 = vld [vmem:[%s6546_s26 + $0x10] sm:$0xff]  ;;  %v5543_v58 = vld [vmem:[%s6546_s26 + $0x8] sm:$0xff] }
0x11a7   :  { %4421 = vmatprep.subr.bf16.mxu0 %v4420_v12  ;;  %4453 = vmatprep.subr.bf16.mxu1 %v4452_v61  ;;  %v5555_v61 = vld [vmem:[%s6546_s26 + $0x20] sm:$0xff] }
0x11aa   :  { %4423 = vmatpush3.bf16.msra.mxu0 %v4422_v2  ;;  %4455 = vmatpush3.bf16.msra.mxu1 %v4454_v5  ;;  %v5572_v2 = vld [vmem:[%s6546_s26 + $0x38] sm:$0xff] }
0x11ab   :  { %4425 = vmatprep.subr.bf16.mxu0 %v4424_v7  ;;  %4457 = vmatprep.subr.bf16.mxu1 %v4456_v9 }
0x11ae   :  { %4427 = vmatpush3.bf16.msra.mxu0 %v4426_v17  ;;  %4459 = vmatpush3.bf16.msra.mxu1 %v4458_v18  ;;  %v1931_v17 = vld [vmem:[%s6514_s10 + $0x208] sm:$0xff]  ;;  %v1962_v18 = vld [vmem:[%s6514_s10 + $0x300] sm:$0xff] }
0x11af   :  { %4429 = vmatprep.subr.bf16.mxu0 %v4428_v23  ;;  %4461 = vmatprep.subr.bf16.mxu1 %v4460_v28 }
0x11b2   :  { %4431 = vmatpush3.bf16.msra.mxu0 %v4430_v29  ;;  %4463 = vmatpush3.bf16.msra.mxu1 %v4462_v31 }
0x11b3   :  { %4433 = vmatprep.subr.bf16.mxu0 %v4432_v35  ;;  %4465 = vmatprep.subr.bf16.mxu1 %v4464_v39  ;;  %v4470_v39 = vpack.c.bf16 %v1931_v17, %v1930_v10  ;;  %v1967_v10 = vld [vmem:[%s6514_s10 + $0x328] sm:$0xff]  ;;  %v1984_v17 = vld [vmem:[%s6514_s10 + $0x3b0] sm:$0xff] }
0x11b6   :  { %4435 = vmatpush3.bf16.msra.mxu0 %v4434_v40  ;;  %4467 = vmatpush3.bf16.msra.mxu1 %v4466_v43  ;;  %v4502_v40 = vpack.c.bf16 %v1963_v20, %v1962_v18  ;;  %v1985_v18 = vld [vmem:[%s6514_s10 + $0x3b8] sm:$0xff] }
0x11b7   :  { %4469 = vmatprep.subr.bf16.mxu0 %v4468_v48  ;;  %4501 = vmatprep.subr.bf16.mxu1 %v4500_v50  ;;  %v4472_v50 = vpack.c.bf16 %v1949_v27, %v1948_v26  ;;  %v4512_v26 = vpack.c.bf16 %v1985_v18, %v1984_v17  ;;  %v1968_v27 = vld [vmem:[%s6514_s10 + $0x330] sm:$0xff] }
0x11b8   :  { %v1944_v18 = vld [vmem:[%s6514_s10 + $0x270] sm:$0xff] }
0x11f5   :  { %v1328_v51 = vpop.f32.mrb[12].mxu1 }
0x11f6   :  { %v1470_v52 = vpop.f32.mrb[14].mxu0  ;;  %v1330_v53 = vpop.f32.mrb[13].mxu1  ;;  %v1834_v60 = vmul.f32 %v1328_v51, %v5533_v4  ;;  %v4504_v51 = vpack.c.bf16 %v1981_v34, %v1980_v33  ;;  %v1938_v34 = vld [vmem:[%s6514_s10 + $0x240] sm:$0xff] }
0x11f7   :  { %v1472_v8 = vpop.f32.mrb[15].mxu0  ;;  %v1835_v62 = vmul.f32 %v1330_v53, %v5543_v58  ;;  %v1838_v21 = vmul.f32 %v1470_v52, %v5555_v61  ;;  %v1964_v52 = vld [vmem:[%s6514_s10 + $0x310] sm:$0xff]  ;;  %v1965_v53 = vld [vmem:[%s6514_s10 + $0x318] sm:$0xff] }
0x11f8   :  { %v1839_v28 = vmul.f32 %v1472_v8, %v5567_v1  ;;  %v1950_v8 = vld [vmem:[%s6514_s10 + $0x2a0] sm:$0xff] }
0x11f9   :  { %v1399_v54 = vpop.f32.mrb[14].mxu1 }
0x11fa   :  { %v1401_v55 = vpop.f32.mrb[15].mxu1  ;;  %v1836_v12 = vmul.f32 %v1399_v54, %v5538_v57 }
0x11fb   :  { %v1837_v16 = vmul.f32 %v1401_v55, %v5548_v59 }
0x11fd   :  { %v1541_v13 = vpop.f32.mrb[16].mxu1 }
0x11fe   :  { %v1543_v56 = vpop.f32.mrb[17].mxu1  ;;  %v1840_v22 = vmul.f32 %v1541_v13, %v5562_v63  ;;  %v1951_v13 = vld [vmem:[%s6514_s10 + $0x2a8] sm:$0xff] }
0x11ff   :  { %v1841_v29 = vmul.f32 %v1543_v56, %v5572_v2  ;;  %v1982_v56 = vld [vmem:[%s6514_s10 + $0x3a0] sm:$0xff] }
0x1268   :  { %v1616_v19 = vpop.f32.mrb[16].mxu0  ;;  %v1687_v0 = vpop.f32.mrb[18].mxu1 }
0x1269   :  { %v1842_v5 = vadd.f32 %v1834_v60, %v1616_v19  ;;  %v1844_v6 = vadd.f32 %v1836_v12, %v1687_v0  ;;  %v1618_v7 = vpop.f32.mrb[17].mxu0  ;;  %v1689_v9 = vpop.f32.mrb[19].mxu1  ;;  %v1983_v60 = vld [vmem:[%s6514_s10 + $0x3a8] sm:$0xff]  ;;  %v4474_v12 = vpack.c.bf16 %v1933_v47, %v1932_v45  ;;  %v4506_v19 = vpack.c.bf16 %v1965_v53, %v1964_v52  ;;  %v1934_v0 = vld [vmem:[%s6514_s10 + $0x220] sm:$0xff]  ;;  %v1989_v45 = vld [vmem:[%s6514_s10 + $0x3d8] sm:$0xff] }
0x126a   :  { %v1843_v14 = vadd.f32 %v1835_v62, %v1618_v7  ;;  %v1845_v15 = vadd.f32 %v1837_v16, %v1689_v9  ;;  %v4508_v7 = vpack.c.bf16 %v1983_v60, %v1982_v56  ;;  %v1966_v9 = vld [vmem:[%s6514_s10 + $0x320] sm:$0xff]  ;;  %v1972_v53 = vld [vmem:[%s6514_s10 + $0x350] sm:$0xff]  ;;  %v1991_v56 = vld [vmem:[%s6514_s10 + $0x3e8] sm:$0xff] }
0x126b   :  { %v1850_v23 = vmax.f32 %v1842_v5, 0.0  ;;  %v1852_v24 = vmax.f32 %v1844_v6, 0.0  ;;  %v1935_v5 = vld [vmem:[%s6514_s10 + $0x228] sm:$0xff]  ;;  %v4476_v6 = vpack.c.bf16 %v1951_v13, %v1950_v8  ;;  %v1973_v8 = vld [vmem:[%s6514_s10 + $0x358] sm:$0xff]  ;;  %v1990_v13 = vld [vmem:[%s6514_s10 + $0x3e0] sm:$0xff] }
0x126c   :  { %v1851_v30 = vmax.f32 %v1843_v14, 0.0  ;;  %v1853_v25 = vmax.f32 %v1845_v15, 0.0  ;;  %v1758_v31 = vpop.f32.mrb[18].mxu0  ;;  %v1829_v32 = vpop.f32.mrb[20].mxu1  ;;  %v1952_v14 = vld [vmem:[%s6514_s10 + $0x2b0] sm:$0xff]  ;;  %v1953_v15 = vld [vmem:[%s6514_s10 + $0x2b8] sm:$0xff]  ;;  %v4478_v20 = vpack.c.bf16 %v1935_v5, %v1934_v0  ;;  %v4524_v0 = vpack.c.bf16 %v1991_v56, %v1990_v13 }
0x126d   :  { %v5602_v35 = vadd.f32 %v1838_v21, %v1758_v31  ;;  %v5604_v36 = vadd.f32 %v1840_v22, %v1829_v32  ;;  %v1760_v37 = vpop.f32.mrb[19].mxu0  ;;  %v1831_v38 = vpop.f32.mrb[21].mxu1  ;;  %v1858_v48 = vadd.f32 %v1850_v23, %v5533_v4  ;;  %v1860_v49 = vadd.f32 %v1852_v24, %v5538_v57  ;;  %v1936_v22 = vld [vmem:[%s6514_s10 + $0x230] sm:$0xff]  ;;  %v1937_v23 = vld [vmem:[%s6514_s10 + $0x238] sm:$0xff]  ;;  %v1987_v31 = vld [vmem:[%s6514_s10 + $0x3c8] sm:$0xff] }
0x126e   :  { %v1859_v41 = vadd.f32 %v1851_v30, %v5543_v58  ;;  %v1861_v42 = vadd.f32 %v1853_v25, %v5548_v59  ;;  %v1847_v43 = vadd.f32 %v1839_v28, %v1760_v37  ;;  %v1849_v44 = vadd.f32 %v1841_v29, %v1831_v38  ;;  %v1969_v28 = vld [vmem:[%s6514_s10 + $0x338] sm:$0xff]  ;;  %v1954_v29 = vld [vmem:[%s6514_s10 + $0x2c0] sm:$0xff]  ;;  %v1955_v30 = vld [vmem:[%s6514_s10 + $0x2c8] sm:$0xff] }
0x126f   :  { %v4510_v21 = vpack.c.bf16 %v1967_v10, %v1966_v9  ;;  %v4480_v24 = vpack.c.bf16 %v1953_v15, %v1952_v14  ;;  %v1986_v25 = vld [vmem:[%s6514_s10 + $0x3c0] sm:$0xff]  ;;  %v4482_v32 = vpack.c.bf16 %v1937_v23, %v1936_v22  ;;  %v4514_v33 = vpack.c.bf16 %v1969_v28, %v1968_v27  ;;  %v1939_v37 = vld [vmem:[%s6514_s10 + $0x248] sm:$0xff]  ;;  %v1961_v9 = vld [vmem:[%s6514_s10 + $0x2f8] sm:$0xff] }
0x1270   :  { %v1855_v54 = vmax.f32 %v1847_v43, 0.0  ;;  %v1857_v55 = vmax.f32 %v1849_v44, 0.0  ;;  %2065 = vmatprep.mubr.f32.mxu0 %v1859_v41  ;;  %2135 = vmatprep.mubr.f32.mxu1 %v1861_v42  ;;  %v4484_v38 = vpack.c.bf16 %v1955_v30, %v1954_v29  ;;  %v1971_v41 = vld [vmem:[%s6514_s10 + $0x348] sm:$0xff]  ;;  %v1956_v42 = vld [vmem:[%s6514_s10 + $0x2d0] sm:$0xff]  ;;  %v1957_v43 = vld [vmem:[%s6514_s10 + $0x2d8] sm:$0xff]  ;;  %v4486_v47 = vpack.c.bf16 %v1939_v37, %v1938_v34 }
0x1271   :  { %2066 = vmatmul.mubr.f32.vlgmr.msra.gmra.mrb[20].mxu0 %v1858_v48  ;;  %2136 = vmatmul.mubr.f32.vlgmr.msra.gmra.mrb[22].mxu1 %v1860_v49  ;;  %v1988_v44 = vld [vmem:[%s6514_s10 + $0x3d0] sm:$0xff]  ;;  %v1974_v5 = vld [vmem:[%s6514_s10 + $0x360] sm:$0xff]  ;;  %v1993_v14 = vld [vmem:[%s6514_s10 + $0x3f8] sm:$0xff]  ;;  %v1854_v30 = vmax.f32 %v5602_v35, 0.0 }
0x1272   :  { %v1863_v62 = vadd.f32 %v1855_v54, %v5567_v1  ;;  %v1865_v16 = vadd.f32 %v1857_v55, %v5572_v2  ;;  %4471 = vmatpush3.bf16.msra.mxu0 %v4470_v39  ;;  %4503 = vmatpush3.bf16.msra.mxu1 %v4502_v40  ;;  %v4516_v39 = vpack.c.bf16 %v1987_v31, %v1986_v25  ;;  %v1970_v40 = vld [vmem:[%s6514_s10 + $0x340] sm:$0xff]  ;;  %v1940_v49 = vld [vmem:[%s6514_s10 + $0x250] sm:$0xff]  ;;  %v1959_v55 = vld [vmem:[%s6514_s10 + $0x2e8] sm:$0xff]  ;;  %v1856_v25 = vmax.f32 %v5604_v36, 0.0 }
0x1273   :  { %4473 = vmatprep.subr.bf16.mxu0 %v4472_v50  ;;  %4505 = vmatprep.subr.bf16.mxu1 %v4504_v51  ;;  %v4518_v48 = vpack.c.bf16 %v1971_v41, %v1970_v40  ;;  %v1941_v50 = vld [vmem:[%s6514_s10 + $0x258] sm:$0xff]  ;;  %v4488_v51 = vpack.c.bf16 %v1957_v43, %v1956_v42  ;;  %v4520_v52 = vpack.c.bf16 %v1989_v45, %v1988_v44  ;;  %v1958_v54 = vld [vmem:[%s6514_s10 + $0x2e0] sm:$0xff]  ;;  %v1992_v10 = vld [vmem:[%s6514_s10 + $0x3f0] sm:$0xff] }
0x1274   :  { %2205 = vmatprep.mubr.f32.mxu0 %v1863_v62  ;;  %2275 = vmatprep.mubr.f32.mxu1 %v1865_v16  ;;  %v4490_v60 = vpack.c.bf16 %v1941_v50, %v1940_v49  ;;  %v1942_v62 = vld [vmem:[%s6514_s10 + $0x260] sm:$0xff]  ;;  %v1943_v16 = vld [vmem:[%s6514_s10 + $0x268] sm:$0xff]  ;;  %v1945_v22 = vld [vmem:[%s6514_s10 + $0x278] sm:$0xff]  ;;  %v1862_v42 = vadd.f32 %v1854_v30, %v5555_v61  ;;  %v1864_v43 = vadd.f32 %v1856_v25, %v5562_v63 }
0x1275   :  { %v4494_v15 = vpack.c.bf16 %v1943_v16, %v1942_v62  ;;  %v1976_v23 = vld [vmem:[%s6514_s10 + $0x370] sm:$0xff]  ;;  %v2299_v27 = vld [vmem:[%s6516_s12 + $0x88] sm:$0xff]  ;;  %v4498_v28 = vpack.c.bf16 %v1945_v22, %v1944_v18  ;;  %v2330_v34 = vld [vmem:[%s6516_s12 + $0x180] sm:$0xff] }
0x1276   :  { %4475 = vmatpush3.bf16.msra.mxu0 %v4474_v12  ;;  %4507 = vmatpush3.bf16.msra.mxu1 %v4506_v19  ;;  %v4522_v12 = vpack.c.bf16 %v1973_v8, %v1972_v53  ;;  %v4492_v19 = vpack.c.bf16 %v1959_v55, %v1958_v54  ;;  %v2331_v35 = vld [vmem:[%s6516_s12 + $0x188] sm:$0xff]  ;;  %v2300_v36 = vld [vmem:[%s6516_s12 + $0x90] sm:$0xff]  ;;  %v2301_v37 = vld [vmem:[%s6516_s12 + $0x98] sm:$0xff] }
0x1277   :  { %4477 = vmatprep.subr.bf16.mxu0 %v4476_v6  ;;  %4509 = vmatprep.subr.bf16.mxu1 %v4508_v7  ;;  %v1975_v6 = vld [vmem:[%s6514_s10 + $0x368] sm:$0xff]  ;;  %v1960_v7 = vld [vmem:[%s6514_s10 + $0x2f0] sm:$0xff]  ;;  %v2314_v40 = vld [vmem:[%s6516_s12 + $0x100] sm:$0xff]  ;;  %v4564_v44 = vpack.c.bf16 %v2331_v35, %v2330_v34  ;;  %v4536_v49 = vpack.c.bf16 %v2301_v37, %v2300_v36 }
0x1278   :  { %v4526_v17 = vpack.c.bf16 %v1975_v6, %v1974_v5  ;;  %v2315_v41 = vld [vmem:[%s6516_s12 + $0x108] sm:$0xff]  ;;  %v2284_v45 = vld [vmem:[%s6516_s12 + $0x10] sm:$0xff]  ;;  %v2333_v50 = vld [vmem:[%s6516_s12 + $0x198] sm:$0xff] }
0x1279   :  { %v2410_v53 = vld [vmem:[%s6547_s5] sm:$0xff]  ;;  %v4566_v8 = vpack.c.bf16 %v2315_v41, %v2314_v40  ;;  %v2316_v55 = vld [vmem:[%s6516_s12 + $0x110] sm:$0xff]  ;;  %v2317_v13 = vld [vmem:[%s6516_s12 + $0x118] sm:$0xff] }
0x127a   :  { %4479 = vmatpush3.bf16.msra.mxu0 %v4478_v20  ;;  %4511 = vmatpush3.bf16.msra.mxu1 %v4510_v21  ;;  %v4496_v20 = vpack.c.bf16 %v1961_v9, %v1960_v7  ;;  %v4528_v21 = vpack.c.bf16 %v1993_v14, %v1992_v10  ;;  %v2287_v62 = vld [vmem:[%s6516_s12 + $0x28] sm:$0xff]  ;;  %v2334_v16 = vld [vmem:[%s6516_s12 + $0x1a0] sm:$0xff]  ;;  %v2305_v5 = vld [vmem:[%s6516_s12 + $0xb8] sm:$0xff]  ;;  %v4570_v6 = vpack.c.bf16 %v2317_v13, %v2316_v55 }
0x127b   :  { %4481 = vmatprep.subr.bf16.mxu0 %v4480_v24  ;;  %4513 = vmatprep.subr.bf16.mxu1 %v4512_v26  ;;  %v1977_v24 = vld [vmem:[%s6514_s10 + $0x378] sm:$0xff]  ;;  %v2298_v26 = vld [vmem:[%s6516_s12 + $0x80] sm:$0xff]  ;;  %v2319_v10 = vld [vmem:[%s6516_s12 + $0x128] sm:$0xff] }
0x127c   :  { %v4530_v29 = vpack.c.bf16 %v1977_v24, %v1976_v23  ;;  %v4532_v31 = vpack.c.bf16 %v2299_v27, %v2298_v26  ;;  %v2318_v9 = vld [vmem:[%s6516_s12 + $0x120] sm:$0xff]  ;;  %v2336_v18 = vld [vmem:[%s6516_s12 + $0x1b0] sm:$0xff]  ;;  %v2307_v22 = vld [vmem:[%s6516_s12 + $0xc8] sm:$0xff] }
0x127d   :  { %v4574_v23 = vpack.c.bf16 %v2319_v10, %v2318_v9  ;;  %v2320_v26 = vld [vmem:[%s6516_s12 + $0x130] sm:$0xff]  ;;  %v2321_v27 = vld [vmem:[%s6516_s12 + $0x138] sm:$0xff]  ;;  %v2291_v30 = vld [vmem:[%s6516_s12 + $0x48] sm:$0xff] }
0x127e   :  { %4483 = vmatpush3.bf16.msra.mxu0 %v4482_v32  ;;  %4515 = vmatpush3.bf16.msra.mxu1 %v4514_v33  ;;  %v2282_v32 = vld [vmem:[%s6516_s12] sm:$0xff]  ;;  %v2283_v33 = vld [vmem:[%s6516_s12 + $0x8] sm:$0xff]  ;;  %v4578_v34 = vpack.c.bf16 %v2321_v27, %v2320_v26  ;;  %v2292_v40 = vld [vmem:[%s6516_s12 + $0x50] sm:$0xff] }
0x127f   :  { %4485 = vmatprep.subr.bf16.mxu0 %v4484_v38  ;;  %4517 = vmatprep.subr.bf16.mxu1 %v4516_v39  ;;  %v2411_v38 = vld [vmem:[%s6517_s13] sm:$0xff]  ;;  %v4534_v39 = vpack.c.bf16 %v2283_v33, %v2282_v32  ;;  %v2308_v32 = vld [vmem:[%s6516_s12 + $0xd0] sm:$0xff]  ;;  %v2309_v33 = vld [vmem:[%s6516_s12 + $0xd8] sm:$0xff] }
0x1280   :  { %v2338_v25 = vld [vmem:[%s6516_s12 + $0x1c0] sm:$0xff]  ;;  %v2323_v37 = vld [vmem:[%s6516_s12 + $0x148] sm:$0xff]  ;;  %v2293_v41 = vld [vmem:[%s6516_s12 + $0x58] sm:$0xff] }
0x1281   :  { %v2322_v36 = vld [vmem:[%s6516_s12 + $0x140] sm:$0xff]  ;;  %v2343_v55 = vld [vmem:[%s6516_s12 + $0x1e8] sm:$0xff]  ;;  %v2312_v13 = vld [vmem:[%s6516_s12 + $0xf0] sm:$0xff] }
0x1282   :  { %4487 = vmatpush3.bf16.msra.mxu0 %v4486_v47  ;;  %4519 = vmatpush3.bf16.msra.mxu1 %v4518_v48  ;;  %v2285_v47 = vld [vmem:[%s6516_s12 + $0x18] sm:$0xff]  ;;  %v2332_v48 = vld [vmem:[%s6516_s12 + $0x190] sm:$0xff]  ;;  %v2362_v10 = vld [vmem:[%s6516_s12 + $0x280] sm:$0xff] }
0x1283   :  { %4489 = vmatprep.subr.bf16.mxu0 %v4488_v51  ;;  %4521 = vmatprep.subr.bf16.mxu1 %v4520_v52  ;;  %v2302_v51 = vld [vmem:[%s6516_s12 + $0xa0] sm:$0xff]  ;;  %v2303_v52 = vld [vmem:[%s6516_s12 + $0xa8] sm:$0xff]  ;;  %v4538_v54 = vpack.c.bf16 %v2285_v47, %v2284_v45  ;;  %v4568_v56 = vpack.c.bf16 %v2333_v50, %v2332_v48  ;;  %v4582_v47 = vpack.c.bf16 %v2323_v37, %v2322_v36  ;;  %v2325_v50 = vld [vmem:[%s6516_s12 + $0x158] sm:$0xff] }
0x1284   :  { %v2311_v45 = vld [vmem:[%s6516_s12 + $0xe8] sm:$0xff]  ;;  %v4554_v48 = vpack.c.bf16 %v2293_v41, %v2292_v40  ;;  %v2345_v9 = vld [vmem:[%s6516_s12 + $0x1f8] sm:$0xff]  ;;  %v2364_v27 = vld [vmem:[%s6516_s12 + $0x290] sm:$0xff] }
0x1285   :  { %v2395_v26 = vld [vmem:[%s6516_s12 + $0x388] sm:$0xff]  ;;  %v2397_v36 = vld [vmem:[%s6516_s12 + $0x398] sm:$0xff]  ;;  %v2366_v37 = vld [vmem:[%s6516_s12 + $0x2a0] sm:$0xff] }
0x1286   :  { %4491 = vmatpush3.bf16.msra.mxu0 %v4490_v60  ;;  %4523 = vmatpush3.bf16.msra.mxu1 %v4522_v12  ;;  %v4540_v60 = vpack.c.bf16 %v2303_v52, %v2302_v51  ;;  %v2286_v12 = vld [vmem:[%s6516_s12 + $0x20] sm:$0xff]  ;;  %v2380_v41 = vld [vmem:[%s6516_s12 + $0x310] sm:$0xff] }
0x1287   :  { %4493 = vmatprep.subr.bf16.mxu0 %v4492_v19  ;;  %4525 = vmatprep.subr.bf16.mxu1 %v4524_v0  ;;  %v2335_v19 = vld [vmem:[%s6516_s12 + $0x1a8] sm:$0xff]  ;;  %v2304_v0 = vld [vmem:[%s6516_s12 + $0xb0] sm:$0xff]  ;;  %v4542_v7 = vpack.c.bf16 %v2287_v62, %v2286_v12  ;;  %v2326_v62 = vld [vmem:[%s6516_s12 + $0x160] sm:$0xff] }
0x1288   :  { %v4572_v14 = vpack.c.bf16 %v2335_v19, %v2334_v16  ;;  %v2327_v16 = vld [vmem:[%s6516_s12 + $0x168] sm:$0xff] }
0x128a   :  { %4495 = vmatpush3.bf16.msra.mxu0 %v4494_v15  ;;  %4527 = vmatpush3.bf16.msra.mxu1 %v4526_v17  ;;  %v4544_v15 = vpack.c.bf16 %v2305_v5, %v2304_v0  ;;  %v2289_v17 = vld [vmem:[%s6516_s12 + $0x38] sm:$0xff]  ;;  %v2296_v5 = vld [vmem:[%s6516_s12 + $0x70] sm:$0xff] }
0x128b   :  { %4497 = vmatprep.subr.bf16.mxu0 %v4496_v20  ;;  %4529 = vmatprep.subr.bf16.mxu1 %v4528_v21  ;;  %v2337_v20 = vld [vmem:[%s6516_s12 + $0x1b8] sm:$0xff]  ;;  %v2306_v21 = vld [vmem:[%s6516_s12 + $0xc0] sm:$0xff] }
0x128e   :  { %4499 = vmatpush3.bf16.msra.mxu0 %v4498_v28  ;;  %4531 = vmatpush3.bf16.msra.mxu1 %v4530_v29  ;;  %v4576_v28 = vpack.c.bf16 %v2337_v20, %v2336_v18  ;;  %v4548_v29 = vpack.c.bf16 %v2307_v22, %v2306_v21  ;;  %v2329_v18 = vld [vmem:[%s6516_s12 + $0x178] sm:$0xff]  ;;  %v2346_v22 = vld [vmem:[%s6516_s12 + $0x200] sm:$0xff] }
0x128f   :  { %4207 = vmatprep.subr.mxu0 %v4904_v11  ;;  %4533 = vmatprep.subr.bf16.mxu1 %v4532_v31  ;;  %v2339_v31 = vld [vmem:[%s6516_s12 + $0x1c8] sm:$0xff] }
0x1291   :  { %2206 = vmatmul.mubr.f32.vlgmr.msra.gmra.mrb[22].mxu0 %v1862_v42  ;;  %2276 = vmatmul.mubr.f32.vlgmr.msra.gmra.mrb[24].mxu1 %v1864_v43  ;;  %v2340_v42 = vld [vmem:[%s6516_s12 + $0x1d0] sm:$0xff]  ;;  %v2341_v43 = vld [vmem:[%s6516_s12 + $0x1d8] sm:$0xff] }
0x1292   :  { %4208 = vmatpush3.msra.mxu0 %v2411_v38  ;;  %4535 = vmatpush3.bf16.msra.mxu1 %v4534_v39  ;;  %v4580_v38 = vpack.c.bf16 %v2339_v31, %v2338_v25  ;;  %v4552_v39 = vpack.c.bf16 %v2309_v33, %v2308_v32  ;;  %v4584_v51 = vpack.c.bf16 %v2341_v43, %v2340_v42  ;;  %v2379_v25 = vld [vmem:[%s6516_s12 + $0x308] sm:$0xff]  ;;  %v2348_v33 = vld [vmem:[%s6516_s12 + $0x210] sm:$0xff]  ;;  %v2381_v42 = vld [vmem:[%s6516_s12 + $0x318] sm:$0xff] }
0x1293   :  { %4209 = vmatprep.mubr.msk.f32.mxu0 %vm4903_vm0, %v4904_v11  ;;  %4565 = vmatprep.subr.bf16.mxu0 %v4564_v44  ;;  %v2310_v44 = vld [vmem:[%s6516_s12 + $0xe0] sm:$0xff] }
0x1294   :  { %4537 = vmatprep.subr.bf16.mxu1 %v4536_v49  ;;  %2550 = vmatprep.mubr.f32.mxu1 %v5543_v58  ;;  %v2288_v58 = vld [vmem:[%s6516_s12 + $0x30] sm:$0xff]  ;;  %v4556_v52 = vpack.c.bf16 %v2311_v45, %v2310_v44  ;;  %v2351_v45 = vld [vmem:[%s6516_s12 + $0x228] sm:$0xff] }
0x1295   :  { %4210 = vmatmul.mubr.msk.f32.vlgmr.msra.gmra.mrb[24].mxu0 %vm2412_vm4, %v2410_v53  ;;  %v4546_v24 = vpack.c.bf16 %v2289_v17, %v2288_v58  ;;  %v2324_v49 = vld [vmem:[%s6516_s12 + $0x150] sm:$0xff]  ;;  %v2294_v53 = vld [vmem:[%s6516_s12 + $0x60] sm:$0xff] }
0x1296   :  { %4567 = vmatpush3.bf16.msra.mxu0 %v4566_v8  ;;  %4539 = vmatpush3.bf16.msra.mxu1 %v4538_v54  ;;  %v2295_v8 = vld [vmem:[%s6516_s12 + $0x68] sm:$0xff]  ;;  %v2342_v54 = vld [vmem:[%s6516_s12 + $0x1e0] sm:$0xff]  ;;  %v2328_v17 = vld [vmem:[%s6516_s12 + $0x170] sm:$0xff] }
0x1297   :  { %4569 = vmatprep.subr.bf16.mxu0 %v4568_v56  ;;  %4541 = vmatprep.subr.bf16.mxu1 %v4540_v60  ;;  %v2313_v56 = vld [vmem:[%s6516_s12 + $0xf8] sm:$0xff]  ;;  %v4586_v60 = vpack.c.bf16 %v2325_v50, %v2324_v49  ;;  %v4558_v12 = vpack.c.bf16 %v2295_v8, %v2294_v53  ;;  %v4588_v19 = vpack.c.bf16 %v2343_v55, %v2342_v54  ;;  %v2368_v49 = vld [vmem:[%s6516_s12 + $0x2b0] sm:$0xff]  ;;  %v2382_v53 = vld [vmem:[%s6516_s12 + $0x320] sm:$0xff] }
0x1298   :  { %2620 = vmatprep.mubr.f32.mxu0 %v5548_v59  ;;  %v2290_v59 = vld [vmem:[%s6516_s12 + $0x40] sm:$0xff]  ;;  %v4560_v0 = vpack.c.bf16 %v2313_v56, %v2312_v13  ;;  %v2369_v50 = vld [vmem:[%s6516_s12 + $0x2b8] sm:$0xff]  ;;  %v2383_v8 = vld [vmem:[%s6516_s12 + $0x328] sm:$0xff] }
0x1299   :  { %v4550_v35 = vpack.c.bf16 %v2291_v30, %v2290_v59  ;;  %v2378_v30 = vld [vmem:[%s6516_s12 + $0x300] sm:$0xff]  ;;  %v4608_v55 = vpack.c.bf16 %v2369_v50, %v2368_v49  ;;  %v2400_v13 = vld [vmem:[%s6516_s12 + $0x3b0] sm:$0xff]  ;;  %v2401_v56 = vld [vmem:[%s6516_s12 + $0x3b8] sm:$0xff] }
0x129a   :  { %4571 = vmatpush3.bf16.msra.mxu0 %v4570_v6  ;;  %4543 = vmatpush3.bf16.msra.mxu1 %v4542_v7  ;;  %v2297_v6 = vld [vmem:[%s6516_s12 + $0x78] sm:$0xff]  ;;  %v2344_v7 = vld [vmem:[%s6516_s12 + $0x1f0] sm:$0xff] }
0x129b   :  { %4573 = vmatprep.subr.bf16.mxu0 %v4572_v14  ;;  %4545 = vmatprep.subr.bf16.mxu1 %v4544_v15  ;;  %v2363_v14 = vld [vmem:[%s6516_s12 + $0x288] sm:$0xff]  ;;  %v4590_v15 = vpack.c.bf16 %v2327_v16, %v2326_v62  ;;  %v4562_v58 = vpack.c.bf16 %v2297_v6, %v2296_v5  ;;  %v4592_v20 = vpack.c.bf16 %v2345_v9, %v2344_v7  ;;  %v2402_v9 = vld [vmem:[%s6516_s12 + $0x3c0] sm:$0xff]  ;;  %v2409_v49 = vld [vmem:[%s6516_s12 + $0x3f8] sm:$0xff] }
0x129c   :  { %v4596_v21 = vpack.c.bf16 %v2363_v14, %v2362_v10  ;;  %v4638_v62 = vpack.c.bf16 %v2383_v8, %v2382_v53  ;;  %v4640_v5 = vpack.c.bf16 %v2401_v56, %v2400_v13  ;;  %v2355_v7 = vld [vmem:[%s6516_s12 + $0x248] sm:$0xff]  ;;  %v2372_v14 = vld [vmem:[%s6516_s12 + $0x2d0] sm:$0xff]  ;;  %v2393_v8 = vld [vmem:[%s6516_s12 + $0x378] sm:$0xff] }
0x129d   :  { %v2403_v10 = vld [vmem:[%s6516_s12 + $0x3c8] sm:$0xff]  ;;  %v2392_v53 = vld [vmem:[%s6516_s12 + $0x370] sm:$0xff]  ;;  %v2787_v56 = vld [vmem:[%s6519_s15 + $0x38] sm:$0xff] }
0x129e   :  { %4575 = vmatpush3.bf16.msra.mxu0 %v4574_v23  ;;  %4547 = vmatpush3.bf16.msra.mxu1 %v4546_v24  ;;  %v2347_v23 = vld [vmem:[%s6516_s12 + $0x208] sm:$0xff]  ;;  %v2394_v24 = vld [vmem:[%s6516_s12 + $0x380] sm:$0xff]  ;;  %v2782_v13 = vld [vmem:[%s6519_s15 + $0x10] sm:$0xff] }
0x129f   :  { %4577 = vmatprep.subr.bf16.mxu0 %v4576_v28  ;;  %4549 = vmatprep.subr.bf16.mxu1 %v4548_v29  ;;  %v2365_v28 = vld [vmem:[%s6516_s12 + $0x298] sm:$0xff]  ;;  %v4594_v29 = vpack.c.bf16 %v2329_v18, %v2328_v17  ;;  %v4598_v59 = vpack.c.bf16 %v2347_v23, %v2346_v22  ;;  %v4628_v31 = vpack.c.bf16 %v2395_v26, %v2394_v24  ;;  %v2386_v18 = vld [vmem:[%s6516_s12 + $0x340] sm:$0xff]  ;;  %v2356_v23 = vld [vmem:[%s6516_s12 + $0x250] sm:$0xff] }
0x12a0   :  { %v4600_v32 = vpack.c.bf16 %v2365_v28, %v2364_v27  ;;  %v2357_v24 = vld [vmem:[%s6516_s12 + $0x258] sm:$0xff]  ;;  %v2404_v26 = vld [vmem:[%s6516_s12 + $0x3d0] sm:$0xff]  ;;  %v2374_v28 = vld [vmem:[%s6516_s12 + $0x2e0] sm:$0xff] }
0x12a1   :  { %v2405_v27 = vld [vmem:[%s6516_s12 + $0x3d8] sm:$0xff] }
0x12a2   :  { %4579 = vmatpush3.bf16.msra.mxu0 %v4578_v34  ;;  %4551 = vmatpush3.bf16.msra.mxu1 %v4550_v35  ;;  %v2349_v34 = vld [vmem:[%s6516_s12 + $0x218] sm:$0xff]  ;;  %v2396_v35 = vld [vmem:[%s6516_s12 + $0x390] sm:$0xff] }
0x12a3   :  { %4581 = vmatprep.subr.bf16.mxu0 %v4580_v38  ;;  %4553 = vmatprep.subr.bf16.mxu1 %v4552_v39  ;;  %v2367_v38 = vld [vmem:[%s6516_s12 + $0x2a8] sm:$0xff]  ;;  %v4630_v39 = vpack.c.bf16 %v2379_v25, %v2378_v30  ;;  %v4602_v40 = vpack.c.bf16 %v2349_v34, %v2348_v33  ;;  %v4632_v43 = vpack.c.bf16 %v2397_v36, %v2396_v35  ;;  %v2388_v25 = vld [vmem:[%s6516_s12 + $0x350] sm:$0xff]  ;;  %v2358_v34 = vld [vmem:[%s6516_s12 + $0x260] sm:$0xff] }
0x12a4   :  { %v4604_v44 = vpack.c.bf16 %v2367_v38, %v2366_v37  ;;  %v4618_v30 = vpack.c.bf16 %v2357_v24, %v2356_v23  ;;  %v2359_v35 = vld [vmem:[%s6516_s12 + $0x268] sm:$0xff]  ;;  %v2406_v36 = vld [vmem:[%s6516_s12 + $0x3e0] sm:$0xff]  ;;  %v2376_v38 = vld [vmem:[%s6516_s12 + $0x2f0] sm:$0xff] }
0x12a5   :  { %v2407_v37 = vld [vmem:[%s6516_s12 + $0x3e8] sm:$0xff]  ;;  %v2897_v24 = vld [vmem:[%s6520_s16] sm:$0xff] }
0x12a6   :  { %4583 = vmatpush3.bf16.msra.mxu0 %v4582_v47  ;;  %4555 = vmatpush3.bf16.msra.mxu1 %v4554_v48  ;;  %v2398_v47 = vld [vmem:[%s6516_s12 + $0x3a0] sm:$0xff]  ;;  %v2399_v48 = vld [vmem:[%s6516_s12 + $0x3a8] sm:$0xff] }
0x12a7   :  { %4585 = vmatprep.subr.bf16.mxu0 %v4584_v51  ;;  %4557 = vmatprep.subr.bf16.mxu1 %v4556_v52  ;;  %v4634_v51 = vpack.c.bf16 %v2381_v42, %v2380_v41  ;;  %v4636_v54 = vpack.c.bf16 %v2399_v48, %v2398_v47  ;;  %v4622_v41 = vpack.c.bf16 %v2359_v35, %v2358_v34  ;;  %v2390_v42 = vld [vmem:[%s6516_s12 + $0x360] sm:$0xff]  ;;  %v2361_v47 = vld [vmem:[%s6516_s12 + $0x278] sm:$0xff]  ;;  %v2408_v48 = vld [vmem:[%s6516_s12 + $0x3f0] sm:$0xff] }
0x12a8   :  { %v2803_v34 = vld [vmem:[%s6519_s15 + $0xb8] sm:$0xff] }
0x12aa   :  { %4587 = vmatpush3.bf16.msra.mxu0 %v4586_v60  ;;  %4559 = vmatpush3.bf16.msra.mxu1 %v4558_v12  ;;  %v2370_v60 = vld [vmem:[%s6516_s12 + $0x2c0] sm:$0xff]  ;;  %v2371_v12 = vld [vmem:[%s6516_s12 + $0x2c8] sm:$0xff] }
0x12ab   :  { %4589 = vmatprep.subr.bf16.mxu0 %v4588_v19  ;;  %4561 = vmatprep.subr.bf16.mxu1 %v4560_v0  ;;  %v2384_v19 = vld [vmem:[%s6516_s12 + $0x330] sm:$0xff]  ;;  %v2385_v0 = vld [vmem:[%s6516_s12 + $0x338] sm:$0xff]  ;;  %v4612_v6 = vpack.c.bf16 %v2371_v12, %v2370_v60 }
0x12ae   :  { %4591 = vmatpush3.bf16.msra.mxu0 %v4590_v15  ;;  %4563 = vmatpush3.bf16.msra.mxu1 %v4562_v58  ;;  %v2373_v15 = vld [vmem:[%s6516_s12 + $0x2d8] sm:$0xff]  ;;  %v4642_v58 = vpack.c.bf16 %v2385_v0, %v2384_v19  ;;  %v2789_v19 = vld [vmem:[%s6519_s15 + $0x48] sm:$0xff] }
0x12af   :  { %4593 = vmatprep.subr.bf16.mxu0 %v4592_v20  ;;  %4597 = vmatprep.subr.bf16.mxu1 %v4596_v21  ;;  %v2387_v20 = vld [vmem:[%s6516_s12 + $0x348] sm:$0xff]  ;;  %v4644_v21 = vpack.c.bf16 %v2403_v10, %v2402_v9  ;;  %v4616_v22 = vpack.c.bf16 %v2373_v15, %v2372_v14  ;;  %v2791_v0 = vld [vmem:[%s6519_s15 + $0x58] sm:$0xff]  ;;  %v2792_v15 = vld [vmem:[%s6519_s15 + $0x60] sm:$0xff] }
0x12b0   :  { %v2793_v9 = vld [vmem:[%s6519_s15 + $0x68] sm:$0xff]  ;;  %v2795_v10 = vld [vmem:[%s6519_s15 + $0x78] sm:$0xff] }
0x12b1   :  { %2551 = vmatmul.mubr.f32.vlgmr.msra.gmra.mrb[26].mxu1 %v5533_v4  ;;  %v2350_v4 = vld [vmem:[%s6516_s12 + $0x220] sm:$0xff] }
0x12b2   :  { %4595 = vmatpush3.bf16.msra.mxu0 %v4594_v29  ;;  %4599 = vmatpush3.bf16.msra.mxu1 %v4598_v59  ;;  %v4606_v52 = vpack.c.bf16 %v2351_v45, %v2350_v4  ;;  %v2375_v29 = vld [vmem:[%s6516_s12 + $0x2e8] sm:$0xff]  ;;  %v4646_v59 = vpack.c.bf16 %v2387_v20, %v2386_v18  ;;  %v2360_v45 = vld [vmem:[%s6516_s12 + $0x270] sm:$0xff] }
0x12b3   :  { %4629 = vmatprep.subr.bf16.mxu0 %v4628_v31  ;;  %4601 = vmatprep.subr.bf16.mxu1 %v4600_v32  ;;  %v2389_v31 = vld [vmem:[%s6516_s12 + $0x358] sm:$0xff]  ;;  %v4648_v32 = vpack.c.bf16 %v2405_v27, %v2404_v26  ;;  %v4620_v33 = vpack.c.bf16 %v2375_v29, %v2374_v28  ;;  %v2391_v4 = vld [vmem:[%s6516_s12 + $0x368] sm:$0xff]  ;;  %v2899_v26 = vld [vmem:[%s6520_s16 + $0x10] sm:$0xff] }
0x12b4   :  { %2690 = vmatprep.mubr.f32.mxu1 %v5567_v1  ;;  %v2353_v1 = vld [vmem:[%s6516_s12 + $0x238] sm:$0xff]  ;;  %v4654_v50 = vpack.c.bf16 %v2391_v4, %v2390_v42  ;;  %v2797_v18 = vld [vmem:[%s6519_s15 + $0x88] sm:$0xff]  ;;  %v6244_v27 = vpack.c.bf16 %v2899_v26, %v2897_v24 }
0x12b5   :  { %2621 = vmatmul.mubr.f32.vlgmr.msra.gmra.mrb[26].mxu0 %v5538_v57  ;;  %v2352_v57 = vld [vmem:[%s6516_s12 + $0x230] sm:$0xff]  ;;  %v2898_v20 = vld [vmem:[%s6520_s16 + $0x8] sm:$0xff]  ;;  %v2807_v42 = vld [vmem:[%s6519_s15 + $0xd8] sm:$0xff] }
0x12b6   :  { %4631 = vmatpush3.bf16.msra.mxu0 %v4630_v39  ;;  %4603 = vmatpush3.bf16.msra.mxu1 %v4602_v40  ;;  %v4610_v16 = vpack.c.bf16 %v2353_v1, %v2352_v57  ;;  %v2377_v39 = vld [vmem:[%s6516_s12 + $0x2f8] sm:$0xff]  ;;  %v4650_v40 = vpack.c.bf16 %v2389_v31, %v2388_v25  ;;  %v2780_v1 = vld [vmem:[%s6519_s15] sm:$0xff]  ;;  %v2902_v29 = vld [vmem:[%s6520_s16 + $0x28] sm:$0xff] }
0x12b7   :  { %4633 = vmatprep.subr.bf16.mxu0 %v4632_v43  ;;  %4605 = vmatprep.subr.bf16.mxu1 %v4604_v44  ;;  %v4652_v43 = vpack.c.bf16 %v2407_v37, %v2406_v36  ;;  %v4624_v44 = vpack.c.bf16 %v2377_v39, %v2376_v38  ;;  %v2783_v57 = vld [vmem:[%s6519_s15 + $0x18] sm:$0xff]  ;;  %v4662_v60 = vpack.c.bf16 %v2782_v13, %v2780_v1  ;;  %v2796_v25 = vld [vmem:[%s6519_s15 + $0x80] sm:$0xff]  ;;  %v2798_v31 = vld [vmem:[%s6519_s15 + $0x90] sm:$0xff] }
0x12b8   :  { %2760 = vmatprep.mubr.f32.mxu0 %v5572_v2  ;;  %v2354_v2 = vld [vmem:[%s6516_s12 + $0x240] sm:$0xff]  ;;  %v4678_v35 = vpack.c.bf16 %v2798_v31, %v2796_v25  ;;  %v2802_v38 = vld [vmem:[%s6519_s15 + $0xb0] sm:$0xff]  ;;  %v2906_v24 = vld [vmem:[%s6520_s16 + $0x48] sm:$0xff] }
0x12b9   :  { %v4614_v17 = vpack.c.bf16 %v2355_v7, %v2354_v2  ;;  %v2788_v2 = vld [vmem:[%s6519_s15 + $0x40] sm:$0xff]  ;;  %v2790_v7 = vld [vmem:[%s6519_s15 + $0x50] sm:$0xff]  ;;  %v2908_v26 = vld [vmem:[%s6520_s16 + $0x58] sm:$0xff] }
0x12ba   :  { %4635 = vmatpush3.bf16.msra.mxu0 %v4634_v51  ;;  %4607 = vmatpush3.bf16.msra.mxu1 %v4606_v52  ;;  %v4626_v51 = vpack.c.bf16 %v2361_v47, %v2360_v45  ;;  %v4656_v52 = vpack.c.bf16 %v2409_v49, %v2408_v48  ;;  %v4670_v14 = vpack.c.bf16 %v2790_v7, %v2788_v2  ;;  %v2800_v37 = vld [vmem:[%s6519_s15 + $0xa0] sm:$0xff] }
0x12bb   :  { %4637 = vmatprep.subr.bf16.mxu0 %v4636_v54  ;;  %4609 = vmatprep.subr.bf16.mxu1 %v4608_v55  ;;  %v4658_v54 = vpack.c.bf16 %v2393_v8, %v2392_v53  ;;  %v2781_v55 = vld [vmem:[%s6519_s15 + $0x8] sm:$0xff]  ;;  %v4682_v48 = vpack.c.bf16 %v2802_v38, %v2800_v37  ;;  %v2811_v8 = vld [vmem:[%s6519_s15 + $0xf8] sm:$0xff]  ;;  %v2808_v1 = vld [vmem:[%s6519_s15 + $0xe0] sm:$0xff] }
0x12bc   :  { %v2809_v53 = vld [vmem:[%s6519_s15 + $0xe8] sm:$0xff]  ;;  %v2911_v37 = vld [vmem:[%s6520_s16 + $0x70] sm:$0xff] }
0x12be   :  { %4639 = vmatpush3.bf16.msra.mxu0 %v4638_v62  ;;  %4611 = vmatpush3.bf16.msra.mxu1 %v4610_v16  ;;  %v2784_v62 = vld [vmem:[%s6519_s15 + $0x20] sm:$0xff]  ;;  %v2786_v16 = vld [vmem:[%s6519_s15 + $0x30] sm:$0xff] }
0x12bf   :  { %4641 = vmatprep.subr.bf16.mxu0 %v4640_v5  ;;  %4613 = vmatprep.subr.bf16.mxu1 %v4612_v6  ;;  %v4666_v5 = vpack.c.bf16 %v2786_v16, %v2784_v62  ;;  %v4668_v6 = vpack.c.bf16 %v2791_v0, %v2789_v19 }
0x12c2   :  { %4643 = vmatpush3.bf16.msra.mxu0 %v4642_v58  ;;  %4615 = vmatpush3.bf16.msra.mxu1 %v4614_v17  ;;  %v2794_v58 = vld [vmem:[%s6519_s15 + $0x70] sm:$0xff]  ;;  %v4672_v17 = vpack.c.bf16 %v2795_v10, %v2793_v9 }
0x12c3   :  { %4645 = vmatprep.subr.bf16.mxu0 %v4644_v21  ;;  %4617 = vmatprep.subr.bf16.mxu1 %v4616_v22  ;;  %v2900_v21 = vld [vmem:[%s6520_s16 + $0x18] sm:$0xff]  ;;  %v4674_v28 = vpack.c.bf16 %v2794_v58, %v2792_v15 }
0x12c4   :  { %v2799_v22 = vld [vmem:[%s6519_s15 + $0x98] sm:$0xff]  ;;  %v6236_v23 = vpack.c.bf16 %v2900_v21, %v2898_v20  ;;  %v2903_v20 = vld [vmem:[%s6520_s16 + $0x30] sm:$0xff] }
0x12c6   :  { %4647 = vmatpush3.bf16.msra.mxu0 %v4646_v59  ;;  %4619 = vmatpush3.bf16.msra.mxu1 %v4618_v30  ;;  %v2904_v59 = vld [vmem:[%s6520_s16 + $0x38] sm:$0xff]  ;;  %v4676_v30 = vpack.c.bf16 %v2799_v22, %v2797_v18  ;;  %v2901_v18 = vld [vmem:[%s6520_s16 + $0x20] sm:$0xff] }
0x12c7   :  { %4649 = vmatprep.subr.bf16.mxu0 %v4648_v32  ;;  %4621 = vmatprep.subr.bf16.mxu1 %v4620_v33  ;;  %v6260_v32 = vpack.c.bf16 %v2904_v59, %v2902_v29  ;;  %v2801_v33 = vld [vmem:[%s6519_s15 + $0xa8] sm:$0xff]  ;;  %v6309_v21 = vpack.c.bf16 %v2903_v20, %v2901_v18  ;;  %v6318_v29 = vpack.c.bf16 %v2908_v26, %v2906_v24  ;;  %v2905_v59 = vld [vmem:[%s6520_s16 + $0x40] sm:$0xff] }
0x12c8   :  { %v4680_v36 = vpack.c.bf16 %v2803_v34, %v2801_v33  ;;  %v2910_v33 = vld [vmem:[%s6520_s16 + $0x68] sm:$0xff]  ;;  %v2912_v34 = vld [vmem:[%s6520_s16 + $0x78] sm:$0xff] }
0x12ca   :  { %4651 = vmatpush3.bf16.msra.mxu0 %v4650_v40  ;;  %4623 = vmatpush3.bf16.msra.mxu1 %v4622_v41  ;;  %v2805_v41 = vld [vmem:[%s6519_s15 + $0xc8] sm:$0xff] }
0x12cb   :  { %4653 = vmatprep.subr.bf16.mxu0 %v4652_v43  ;;  %4625 = vmatprep.subr.bf16.mxu1 %v4624_v44  ;;  %v3604_v43 = vld [vmem:[%s6515_s11] ss:$0 sm:$0xff]  ;;  %v4684_v49 = vpack.c.bf16 %v2807_v42, %v2805_v41 }
0x12ce   :  { %4655 = vmatpush3.bf16.msra.mxu0 %v4654_v50  ;;  %4627 = vmatpush3.bf16.msra.mxu1 %v4626_v51  ;;  %v2804_v50 = vld [vmem:[%s6519_s15 + $0xc0] sm:$0xff]  ;;  %v2806_v51 = vld [vmem:[%s6519_s15 + $0xd0] sm:$0xff] }
0x12cf   :  { %4657 = vmatprep.subr.bf16.mxu0 %v4656_v52 }
0x12d1   :  { %2691 = vmatmul.mubr.f32.vlgmr.msra.gmra.mrb[28].mxu1 %v5555_v61  ;;  %v4660_v61 = vpack.c.bf16 %v2783_v57, %v2781_v55  ;;  %v4686_v55 = vpack.c.bf16 %v2806_v51, %v2804_v50  ;;  %v4688_v57 = vpack.c.bf16 %v2811_v8, %v2809_v53 }
0x12d2   :  { %4659 = vmatpush3.bf16.msra.mxu0 %v4658_v54  ;;  %2888 = vmatprep.mubr.f32.mxu1 %v4904_v11 }
0x12d3   :  { %4661 = vmatprep.subr.bf16.mxu1 %v4660_v61  ;;  %4693 = vmatprep.subr.bf16.mxu0 %v6236_v23  ;;  %v2810_v61 = vld [vmem:[%s6519_s15 + $0xf0] sm:$0xff] }
0x12d4   :  { %4663 = vmatpush1.bf16.msra.mxu1 %v4662_v60  ;;  %v4690_v13 = vpack.c.bf16 %v2810_v61, %v2808_v1 }
0x12d5   :  { %2761 = vmatmul.mubr.f32.vlgmr.msra.gmra.mrb[28].mxu0 %v5562_v63  ;;  %v2785_v63 = vld [vmem:[%s6519_s15 + $0x28] sm:$0xff] }
0x12d6   :  { %2983 = vmatprep.mubr.f32.mxu0 %v4904_v11  ;;  %v4664_v12 = vpack.c.bf16 %v2787_v56, %v2785_v63  ;;  %4695 = vmatpush1.bf16.msra.mxu0 %v6244_v27 }
0x12d7   :  { %4697 = vmatprep.subr.bf16.mxu0 %v6260_v32 }
0x12d8   :  { %4665 = vmatprep.subr.bf16.mxu1 %v4664_v12 }
0x12d9   :  { %4667 = vmatpush1.bf16.msra.mxu1 %v4666_v5 }
0x12da   :  { %4669 = vmatprep.subr.bf16.mxu1 %v4668_v6  ;;  %4699 = vmatpush1.bf16.msra.mxu0 %v6309_v21 }
0x12db   :  { %4701 = vmatprep.subr.bf16.mxu0 %v6318_v29 }
0x12dd   :  { %4671 = vmatpush1.bf16.msra.mxu1 %v4670_v14 }
0x12de   :  { %4673 = vmatprep.subr.bf16.mxu1 %v4672_v17 }
0x12e1   :  { %4675 = vmatpush1.bf16.msra.mxu1 %v4674_v28 }
0x12e2   :  { %4677 = vmatprep.subr.bf16.mxu1 %v4676_v30  ;;  %v2907_v30 = vld [vmem:[%s6520_s16 + $0x50] sm:$0xff] }
0x12e3   :  { %v6326_v31 = vpack.c.bf16 %v2907_v30, %v2905_v59 }
0x12e5   :  { %4679 = vmatpush1.bf16.msra.mxu1 %v4678_v35  ;;  %v2909_v35 = vld [vmem:[%s6520_s16 + $0x60] sm:$0xff]  ;;  %4703 = vmatpush1.bf16.msra.mxu0 %v6326_v31  ;;  %s6548_s16 = sld [smem:[#allocation9_spill]] }
0x12e6   :  { %4681 = vmatprep.subr.bf16.mxu1 %v4680_v36  ;;  %v6338_v36 = vpack.c.bf16 %v2912_v34, %v2910_v33 }
0x12e8   :  { %4705 = vmatprep.subr.bf16.mxu0 %v6338_v36 }
0x12e9   :  { %4683 = vmatpush1.bf16.msra.mxu1 %v4682_v48 }
0x12ea   :  { %4685 = vmatprep.subr.bf16.mxu1 %v4684_v49 }
0x12ed   :  { %4687 = vmatpush1.bf16.msra.mxu1 %v4686_v55 }
0x12ee   :  { %4689 = vmatprep.subr.bf16.mxu1 %v4688_v57 }
0x12f1   :  { %4691 = vmatpush1.bf16.msra.mxu1 %v4690_v13 }
0x12f2   :  { %4725 = vmatprep.subr.bf16.mxu1 %v6236_v23 }
0x1344   :  { %v3744_v39 = vpop.f32.mrb[20].mxu0  ;;  %v3779_v40 = vpop.f32.mrb[22].mxu1 }
0x1345   :  { %v3745_v44 = vpop.f32.mrb[21].mxu0  ;;  %v3780_v4 = vpop.f32.mrb[23].mxu1 }
0x1346   :  { %v3746_v45 = vadd.f32 %v3745_v44, %v3744_v39  ;;  %v3781_v47 = vadd.f32 %v3780_v4, %v3779_v40  ;;  %v6344_v40 = vpack.c.bf16 %v2911_v37, %v2909_v35  ;;  %v2913_v4 = vld [vmem:[%s6548_s16] sm:$0x3]  ;;  %s3559_s16 = sshll.u32 %s4909_s4, 4  ;;  %s3560_s16 = int_to_ptr.vmem [resolvable:$true] %s3559_s16 }
0x1347   :  { %p4883_p1 = scmp.lt.s32.totalorder %s3560_s16, %s3560_s16 }
0x1348   :  { %v2068_v52 = vadd.f32 %v3746_v45, %v3604_v43  ;;  %v3606_v43 = vld [vmem:[%s6518_s14] ss:$0 sm:$0xff]  ;;  %4707 = vmatpush1.bf16.msra.mxu0 %v6344_v40 }
0x1349   :  { %4709 = vmatprep.subr.bf16.mxu0 %v6236_v23 }
0x134a   :  { %v2138_v54 = vadd.f32 %v3781_v47, %v2068_v52  ;;  %v2814_v52 = vlaneseq }
0x134b   :  { %3607 = vmatmul.mubr.msk.f32.vlgmr.msra.gmra.mrb[30].mxu0 %vm102_vm1, %v2913_v4 }
0x134c   :  { %4711 = vmatpush1.bf16.msra.mxu0 %v6244_v27  ;;  %3085 = vmatprep.mubr.f32.mxu0 %v4904_v11  ;;  %v2815_v53 = vshrl.u32 %v2814_v52, 7 }
0x134d   :  { %4713 = vmatprep.subr.bf16.mxu0 %v6260_v32 }
0x134e   :  { %v2816_v8 = vsub.s32 0, %v2815_v53  ;;  %v2820_v55 = vsub.s32 1, %v2815_v53 }
0x1350   :  { %4715 = vmatpush1.bf16.msra.mxu0 %v6309_v21 }
0x1351   :  { %4717 = vmatprep.subr.bf16.mxu0 %v6318_v29 }
0x1354   :  { %4719 = vmatpush1.bf16.msra.mxu0 %v6326_v31 }
0x1355   :  { %4721 = vmatprep.subr.bf16.mxu0 %v6338_v36 }
0x1358   :  { %4723 = vmatpush1.bf16.msra.mxu0 %v6344_v40 }
0x1359   :  { %4741 = vmatprep.subr.bf16.mxu0 %v6236_v23 }
0x1364   :  { %v3814_v63 = vpop.f32.mrb[22].mxu0  ;;  %v3849_v56 = vpop.f32.mrb[24].mxu1 }
0x1365   :  { %v3815_v60 = vpop.f32.mrb[23].mxu0  ;;  %v3850_v12 = vpop.f32.mrb[25].mxu1 }
0x1366   :  { %v3816_v62 = vadd.f32 %v3815_v60, %v3814_v63  ;;  %v3851_v16 = vadd.f32 %v3850_v12, %v3849_v56 }
0x1368   :  { %v2208_v19 = vadd.f32 %v3816_v62, %v2138_v54  ;;  %v2482_v0 = vpop.f32.mrb[24].mxu0  ;;  %v2812_v54 = vld [vmem:[%s6521_s17] sm:$0x3]  ;;  %s4908_s17 = smov 32  }
0x1369   :  { %v4211_v5 = vpop.f32.mrb[25].mxu0  ;;  %v2817_v57 = vrot.slane %v2812_v54, %v2816_v8  ;;  %v2821_v1 = vrot.slane %v2812_v54, %v2820_v55 }
0x136a   :  { %v2278_v6 = vadd.f32 %v3851_v16, %v2208_v19 }
0x136c   :  { %v2281_v48 = vmax.f32 %v2278_v6, 0.0 }
0x1384   :  { %v3886_v2 = vpop.f32.mrb[26].mxu1 }
0x1385   :  { %v3887_v7 = vpop.f32.mrb[27].mxu1 }
0x1386   :  { %v3888_v9 = vadd.f32 %v3887_v7, %v3886_v2 }
0x1388   :  { %v2553_v10 = vadd.f32 %v3888_v9, %v2482_v0  ;;  %v3921_v14 = vpop.f32.mrb[26].mxu0 }
0x1389   :  { %v3922_v15 = vpop.f32.mrb[27].mxu0 }
0x138a   :  { %v3923_v58 = vadd.f32 %v3922_v15, %v3921_v14 }
0x138c   :  { %v2623_v17 = vadd.f32 %v3923_v58, %v2553_v10 }
0x13a4   :  { %v3956_v22 = vpop.f32.mrb[28].mxu1 }
0x13a5   :  { %v3957_v28 = vpop.f32.mrb[29].mxu1 }
0x13a6   :  { %v3958_v25 = vadd.f32 %v3957_v28, %v3956_v22 }
0x13a8   :  { %v2693_v38 = vadd.f32 %v3958_v25, %v2623_v17  ;;  %v3991_v39 = vpop.f32.mrb[28].mxu0 }
0x13a9   :  { %v3992_v41 = vpop.f32.mrb[29].mxu0 }
0x13aa   :  { %v3993_v42 = vadd.f32 %v3992_v41, %v3991_v39 }
0x13ac   :  { %v2763_v44 = vadd.f32 %v3993_v42, %v2693_v38 }
0x13ae   :  { %v2773_v45 = vadd.f32 %v3606_v43, %v2763_v44 }
0x13b0   :  { %v2774_v47 = vmax.f32 %v2773_v45, 0.0 }
0x13b2   :  { %2776 = vrot.lane.b32.xlu1 %v2774_v47, %s4905_s0 }
0x141e   :  { %v2985_v23 = vpop.f32.mrb[30].mxu0 }
0x141f   :  { %v2987_v51 = vpop.f32.mrb[31].mxu0 }
0x1424   :  { %v2777_v49 = vpop.permute.xlu1 %2776 }
0x1425   :  { %v2779_v50 = vsel %vm102_vm1, %v2281_v48, %v2777_v49 }
0x1426   :  { %2889 = vmatmul.mubr.f32.vlgmr.msra.gmra.mrb[30].mxu1 %v2779_v50 }
0x1427   :  { %4727 = vmatpush1.bf16.msra.mxu1 %v6244_v27  ;;  %3197 = vmatprep.mubr.f32.mxu1 %v4904_v11 }
0x1428   :  { %4729 = vmatprep.subr.bf16.mxu1 %v6260_v32 }
0x142b   :  { %4731 = vmatpush1.bf16.msra.mxu1 %v6309_v21 }
0x142c   :  { %4733 = vmatprep.subr.bf16.mxu1 %v6318_v29 }
0x142f   :  { %4735 = vmatpush1.bf16.msra.mxu1 %v6326_v31 }
0x1430   :  { %4737 = vmatprep.subr.bf16.mxu1 %v6338_v36 }
0x1433   :  { %4739 = vmatpush1.bf16.msra.mxu1 %v6344_v40 }
0x1434   :  { %4756 = vmatprep.subr.bf16.mxu1 %v4902_v3 }
0x14f9   :  { %v2890_v61 = vpop.f32.mrb[30].mxu1 }
0x14fa   :  { %v2891_v13 = vadd.f32 %v2890_v61, %v2817_v57  ;;  %v2892_v63 = vpop.f32.mrb[31].mxu1 }
0x14fb   :  { %v2893_v56 = vadd.f32 %v2892_v63, %v2821_v1 }
0x14fc   :  { %2895 = vst [vmem:[#allocation2] sm:$0xff] %v2891_v13 }
0x14fd   :  { %2896 = vst [vmem:[#allocation2 + $0x8] sm:$0xff] %v2893_v56 }
0x1503   :  { %v2914_v60 = vld [vmem:[#allocation2] sm:$0x3] }
0x1504   :  { %v2990_v12 = vadd.f32 %v2985_v23, %v2914_v60  ;;  %v2915_v16 = vld [vmem:[#allocation2 + $0x8] sm:$0x3]  ;;  %v3015_v33 = vld [vmem:[#allocation2 + $0x8] sm:$0xc]  ;;  %v3126_v54 = vld [vmem:[#allocation2 + $0x8] sm:$0x30] }
0x1505   :  { %v2991_v19 = vadd.f32 %v2987_v51, %v2915_v16  ;;  %v3125_v51 = vld [vmem:[#allocation2] sm:$0x30] }
0x1506   :  { %v3608_v62 = vmul.f32 -1.442695, %v2990_v12 }
0x1507   :  { %v3609_v9 = vmul.f32 -1.442695, %v2991_v19 }
0x1508   :  { %4830 = vpow2.f32 %v3608_v62 }
0x1509   :  { %4832 = vtanh.f32 %v2991_v19 }
0x1512   :  { %v4831_v0 = vpop.eup %4830 }
0x1513   :  { %v2995_v5 = vadd.f32 1.0, %v4831_v0  ;;  %v4833_v6 = vpop.eup %4832 }
0x1515   :  { %4834 = vrcp.f32 %v2995_v5 }
0x1516   :  { %4836 = vpow2.f32 %v3609_v9 }
0x151f   :  { %v4835_v2 = vpop.eup %4834 }
0x1520   :  { %v3006_v7 = vmul.f32 %v4835_v2, %v4833_v6  ;;  %v4837_v10 = vpop.eup %4836  ;;  %v3005_v15 = vmul.f32 %v4835_v2, %v2913_v4 }
0x1521   :  { %v3002_v14 = vadd.f32 1.0, %v4837_v10 }
0x1522   :  { %3008 = vrot.lane.b32.xlu0 %v3006_v7, %s4905_s0 }
0x1523   :  { %4838 = vrcp.f32 %v3002_v14 }
0x152d   :  { %v4839_v18 = vpop.eup %4838 }
0x1594   :  { %v3009_v58 = vpop.permute.xlu0 %3008 }
0x1595   :  { %v3011_v17 = vadd.f32 %v3009_v58, %v3005_v15 }
0x1597   :  { %4840 = vtanh.f32 %v3011_v17  ;;  %v3114_v35 = vrot.slane %v3011_v17, 6 }
0x15a1   :  { %v4841_v20 = vpop.eup %4840 }
0x15a2   :  { %v6380_v22 = vmul.f32 %v4841_v20, %v4839_v18  ;;  %v3237_v18 = vld [vmem:[#allocation2] sm:$0xc0] }
0x15a4   :  { %3017 = vrot.lane.b32.xlu1 %v6380_v22, %s4905_s0 }
0x1616   :  { %v3018_v24 = vpop.permute.xlu1 %3017 }
0x1617   :  { %3610 = vmatmul.mubr.msk.f32.vlgmr.msra.gmra.mrb[32].mxu0 %vm102_vm1, %v3018_v24 }
0x1618   :  { %4743 = vmatpush1.bf16.msra.mxu0 %v6244_v27  ;;  %3309 = vmatprep.mubr.f32.mxu0 %v4904_v11  ;;  %v3014_v27 = vld [vmem:[#allocation2] sm:$0xc] }
0x1619   :  { %4745 = vmatprep.subr.bf16.mxu0 %v6260_v32 }
0x161c   :  { %4747 = vmatpush1.bf16.msra.mxu0 %v6309_v21 }
0x161d   :  { %4749 = vmatprep.subr.bf16.mxu0 %v6318_v29 }
0x1620   :  { %4751 = vmatpush1.bf16.msra.mxu0 %v6326_v31 }
0x1621   :  { %4753 = vmatprep.subr.bf16.mxu0 %v6338_v36 }
0x1624   :  { %4755 = vmatpush1.bf16.msra.mxu0 %v6344_v40 }
0x1625   :  { %4774 = vmatprep.subr.bf16.mxu0 %v4902_v3 }
0x16ea   :  { %v3087_v26 = vpop.f32.mrb[32].mxu0 }
0x16eb   :  { %v3094_v28 = vrot.slane %v3087_v26, 6  ;;  %v3089_v59 = vpop.f32.mrb[33].mxu0 }
0x16ec   :  { %v3095_v32 = vrot.slane %v3089_v59, 6 }
0x16ed   :  { %v3098_v30 = vadd.f32 %v3094_v28, %v3014_v27 }
0x16ee   :  { %v3099_v21 = vadd.f32 %v3095_v32, %v3015_v33 }
0x16ef   :  { %v3611_v25 = vmul.f32 -1.442695, %v3098_v30 }
0x16f0   :  { %v3612_v39 = vmul.f32 -1.442695, %v3099_v21 }
0x16f1   :  { %4842 = vpow2.f32 %v3611_v25 }
0x16f2   :  { %4844 = vtanh.f32 %v3099_v21 }
0x16fb   :  { %v4843_v34 = vpop.eup %4842 }
0x16fc   :  { %v3103_v29 = vadd.f32 1.0, %v4843_v34  ;;  %v4845_v31 = vpop.eup %4844  ;;  %v3370_v34 = vld [vmem:[%s6522_s18 + $0x8] sm:$0xff] }
0x16fe   :  { %4846 = vrcp.f32 %v3103_v29  ;;  %v3371_v29 = vld [vmem:[%s6522_s18 + $0x10] sm:$0xff] }
0x16ff   :  { %4848 = vpow2.f32 %v3612_v39  ;;  %v3375_v39 = vld [vmem:[%s6522_s18 + $0x30] sm:$0xff] }
0x1708   :  { %v4847_v36 = vpop.eup %4846 }
0x1709   :  { %v3117_v37 = vmul.f32 %v4847_v36, %v4845_v31  ;;  %v3116_v38 = vmul.f32 %v4847_v36, %v3114_v35  ;;  %v4849_v40 = vpop.eup %4848  ;;  %v3372_v35 = vld [vmem:[%s6522_s18 + $0x18] sm:$0xff] }
0x170a   :  { %v3110_v41 = vadd.f32 1.0, %v4849_v40  ;;  %v4760_v36 = vpack.c.bf16 %v3372_v35, %v3371_v29  ;;  %v3376_v40 = vld [vmem:[%s6522_s18 + $0x38] sm:$0xff] }
0x170b   :  { %3119 = vrot.lane.b32.xlu0 %v3117_v37, %s4905_s0  ;;  %v3374_v37 = vld [vmem:[%s6522_s18 + $0x28] sm:$0xff] }
0x170c   :  { %4850 = vrcp.f32 %v3110_v41  ;;  %v4766_v41 = vpack.c.bf16 %v3376_v40, %v3375_v39 }
0x1716   :  { %v4851_v44 = vpop.eup %4850 }
0x177d   :  { %v3120_v42 = vpop.permute.xlu0 %3119 }
0x177e   :  { %v3122_v43 = vadd.f32 %v3120_v42, %v3116_v38  ;;  %v3377_v42 = vld [vmem:[%s6522_s18 + $0x40] sm:$0xff] }
0x1780   :  { %4852 = vtanh.f32 %v3122_v43  ;;  %v3226_v13 = vrot.slane %v3122_v43, 6  ;;  %v3378_v43 = vld [vmem:[%s6522_s18 + $0x48] sm:$0xff] }
0x178a   :  { %v4853_v4 = vpop.eup %4852 }
0x178b   :  { %v3124_v45 = vmul.f32 %v4853_v4, %v4851_v44  ;;  %v4769_v44 = vpack.c.bf16 %v3378_v43, %v3377_v42  ;;  %v3379_v4 = vld [vmem:[%s6522_s18 + $0x50] sm:$0xff] }
0x178d   :  { %v3128_v47 = vrot.slane %v3124_v45, 2  ;;  %v3356_v7 = vsel %vm3355_vm5, %v6380_v22, %v3124_v45  ;;  %v3238_v22 = vld [vmem:[#allocation2 + $0x8] sm:$0xc0]  ;;  %v3380_v45 = vld [vmem:[%s6522_s18 + $0x58] sm:$0xff] }
0x178f   :  { %3129 = vrot.lane.b32.xlu1 %v3128_v47, %s4905_s0  ;;  %v4772_v47 = vpack.c.bf16 %v3380_v45, %v3379_v4 }
0x1801   :  { %v3130_v48 = vpop.permute.xlu1 %3129 }
0x1802   :  { %3613 = vmatmul.mubr.msk.f32.vlgmr.msra.gmra.mrb[32].mxu1 %vm102_vm1, %v3130_v48 }
0x1803   :  { %4236 = vmatprep.mubr.msk.f32.mxu1 %vm4903_vm0, %v4904_v11 }
0x18d5   :  { %v3199_v49 = vpop.f32.mrb[32].mxu1 }
0x18d6   :  { %v3206_v50 = vrot.slane %v3199_v49, 4  ;;  %v3201_v23 = vpop.f32.mrb[33].mxu1 }
0x18d7   :  { %v3207_v8 = vrot.slane %v3201_v23, 4 }
0x18d8   :  { %v3210_v52 = vadd.f32 %v3206_v50, %v3125_v51 }
0x18d9   :  { %v3211_v55 = vadd.f32 %v3207_v8, %v3126_v54  ;;  %v3465_v8 = vld [vmem:[%s6524_s20 + $0x10] sm:$0xff] }
0x18da   :  { %v3614_v53 = vmul.f32 -1.442695, %v3210_v52  ;;  %v3463_v52 = vld [vmem:[%s6524_s20] sm:$0xff] }
0x18db   :  { %v3615_v12 = vmul.f32 -1.442695, %v3211_v55 }
0x18dc   :  { %4854 = vpow2.f32 %v3614_v53  ;;  %v3464_v53 = vld [vmem:[%s6524_s20 + $0x8] sm:$0xff] }
0x18dd   :  { %4856 = vtanh.f32 %v3211_v55  ;;  %v4775_v54 = vpack.c.bf16 %v3464_v53, %v3463_v52  ;;  %v3466_v55 = vld [vmem:[%s6524_s20 + $0x18] sm:$0xff] }
0x18e6   :  { %v4855_v57 = vpop.eup %4854 }
0x18e7   :  { %v3215_v1 = vadd.f32 1.0, %v4855_v57  ;;  %v4857_v61 = vpop.eup %4856 }
0x18e9   :  { %4858 = vrcp.f32 %v3215_v1  ;;  %v4778_v1 = vpack.c.bf16 %v3466_v55, %v3465_v8 }
0x18ea   :  { %4860 = vpow2.f32 %v3615_v12 }
0x18f3   :  { %v4859_v63 = vpop.eup %4858 }
0x18f4   :  { %v3229_v56 = vmul.f32 %v4859_v63, %v4857_v61  ;;  %v3228_v60 = vmul.f32 %v4859_v63, %v3226_v13  ;;  %v4861_v62 = vpop.eup %4860  ;;  %v3467_v13 = vld [vmem:[%s6524_s20 + $0x20] sm:$0xff]  ;;  %v3468_v63 = vld [vmem:[%s6524_s20 + $0x28] sm:$0xff] }
0x18f5   :  { %v3222_v16 = vadd.f32 1.0, %v4861_v62  ;;  %v4781_v12 = vpack.c.bf16 %v3468_v63, %v3467_v13 }
0x18f6   :  { %3231 = vrot.lane.b32.xlu0 %v3229_v56, %s4905_s0 }
0x18f7   :  { %4862 = vrcp.f32 %v3222_v16 }
0x1901   :  { %v4863_v5 = vpop.eup %4862 }
0x1968   :  { %v3232_v19 = vpop.permute.xlu0 %3231 }
0x1969   :  { %v3234_v0 = vadd.f32 %v3232_v19, %v3228_v60 }
0x196b   :  { %4864 = vtanh.f32 %v3234_v0  ;;  %v3338_v25 = vrot.slane %v3234_v0, 6 }
0x1975   :  { %v4865_v6 = vpop.eup %4864 }
0x1976   :  { %v3236_v2 = vmul.f32 %v4865_v6, %v4863_v5  ;;  %v3469_v6 = vld [vmem:[%s6524_s20 + $0x30] sm:$0xff] }
0x1978   :  { %v3240_v9 = vrot.slane %v3236_v2, 4  ;;  %v6401_v10 = vsel %vm3357_vm6, %v3356_v7, %v3236_v2  ;;  %v3619_v7 = vld [vmem:[%s6523_s19] ss:$0 sm:$0xff] }
0x197a   :  { %3241 = vrot.lane.b32.xlu1 %v3240_v9, %s4905_s0 }
0x19ec   :  { %v3242_v14 = vpop.permute.xlu1 %3241 }
0x19ed   :  { %3616 = vmatmul.mubr.msk.f32.vlgmr.msra.gmra.mrb[34].mxu0 %vm102_vm1, %v3242_v14 }
0x19ee   :  { %4255 = vmatprep.mubr.msk.f32.mxu0 %vm4903_vm0, %v4904_v11  ;;  %v3369_v11 = vld [vmem:[%s6522_s18] sm:$0xff]  ;;  %4776 = vmatpush3.bf16.msra.mxu0 %v4775_v54 }
0x19ef   :  { %v4757_v31 = vpack.c.bf16 %v3370_v34, %v3369_v11  ;;  %4777 = vmatprep.subr.bf16.mxu0 %v4902_v3 }
0x19f1   :  { %4758 = vmatpush3.bf16.msra.mxu1 %v4757_v31 }
0x19f2   :  { %4759 = vmatprep.subr.bf16.mxu1 %v4902_v3  ;;  %4779 = vmatpush3.bf16.msra.mxu0 %v4778_v1 }
0x19f3   :  { %4780 = vmatprep.subr.bf16.mxu0 %v4902_v3 }
0x19f5   :  { %4761 = vmatpush3.bf16.msra.mxu1 %v4760_v36 }
0x19f6   :  { %4762 = vmatprep.subr.bf16.mxu1 %v4902_v3  ;;  %4782 = vmatpush3.bf16.msra.mxu0 %v4781_v12 }
0x19f7   :  { %4783 = vmatprep.subr.bf16.mxu0 %v4902_v3 }
0x1ac0   :  { %v3311_v15 = vpop.f32.mrb[34].mxu0 }
0x1ac1   :  { %v3318_v58 = vrot.slane %v3311_v15, 2  ;;  %v3313_v17 = vpop.f32.mrb[35].mxu0 }
0x1ac2   :  { %v3319_v26 = vrot.slane %v3313_v17, 2 }
0x1ac3   :  { %v3322_v20 = vadd.f32 %v3318_v58, %v3237_v18  ;;  %v3621_v58 = vld [vmem:[%s6525_s21] ss:$0 sm:$0xff] }
0x1ac4   :  { %v3323_v28 = vadd.f32 %v3319_v26, %v3238_v22 }
0x1ac5   :  { %v3617_v24 = vmul.f32 -1.442695, %v3322_v20 }
0x1ac6   :  { %v3618_v48 = vmul.f32 -1.442695, %v3323_v28 }
0x1ac7   :  { %4866 = vpow2.f32 %v3617_v24 }
0x1ac8   :  { %4868 = vtanh.f32 %v3323_v28 }
0x1ad1   :  { %v4867_v59 = vpop.eup %4866 }
0x1ad2   :  { %v3327_v27 = vadd.f32 1.0, %v4867_v59  ;;  %v4869_v30 = vpop.eup %4868 }
0x1ad4   :  { %4870 = vrcp.f32 %v3327_v27 }
0x1ad5   :  { %4872 = vpow2.f32 %v3618_v48 }
0x1ade   :  { %v4871_v32 = vpop.eup %4870 }
0x1adf   :  { %v3341_v33 = vmul.f32 %v4871_v32, %v4869_v30  ;;  %v3340_v21 = vmul.f32 %v4871_v32, %v3338_v25  ;;  %v4873_v49 = vpop.eup %4872 }
0x1ae0   :  { %v3334_v50 = vadd.f32 1.0, %v4873_v49 }
0x1ae1   :  { %3343 = vrot.lane.b32.xlu0 %v3341_v33, %s4905_s0 }
0x1ae2   :  { %4874 = vrcp.f32 %v3334_v50 }
0x1ae5   :  { %3365 = vrot.lane.b32.xlu0 %v5267_v46, %s4908_s17  ;;  %v3373_v46 = vld [vmem:[%s6522_s18 + $0x20] sm:$0xff] }
0x1ae6   :  { %v4763_v38 = vpack.c.bf16 %v3374_v37, %v3373_v46 }
0x1ae8   :  { %4764 = vmatpush3.bf16.msra.mxu1 %v4763_v38 }
0x1ae9   :  { %4765 = vmatprep.subr.bf16.mxu1 %v4902_v3 }
0x1aec   :  { %4767 = vmatpush3.bf16.msra.mxu1 %v4766_v41  ;;  %v4875_v57 = vpop.eup %4874 }
0x1aed   :  { %4768 = vmatprep.subr.bf16.mxu1 %v4902_v3 }
0x1af0   :  { %4770 = vmatpush3.bf16.msra.mxu1 %v4769_v44 }
0x1af1   :  { %4771 = vmatprep.subr.bf16.mxu1 %v4902_v3  ;;  %v3470_v3 = vld [vmem:[%s6524_s20 + $0x38] sm:$0xff]  ;;  %s4878_s20 = scalar_lea.vmem %s3560_s16, 128 }
0x1af2   :  { %v4784_v2 = vpack.c.bf16 %v3470_v3, %v3469_v6  ;;  %p4879_p0 = scmp.ne.s32.totalorder %s3560_s16, %s4878_s20  ;;  %p4884_p2 = scmp.lt.s32.totalorder %s4878_s20, %s4878_s20 }
0x1af4   :  { %4773 = vmatpush3.bf16.msra.mxu1 %v4772_v47  ;;  %4785 = vmatpush3.bf16.msra.mxu0 %v4784_v2  ;;  %p4885_p3 = por %p4884_p2, %p4883_p1 }
0x1af6   :  { %p4886_p4 = pnand %p4885_p3, %p4879_p0 }
0x1b53   :  { %v3344_v23 = vpop.permute.xlu0 %3343 }
0x1b54   :  { %v3346_v51 = vadd.f32 %v3344_v23, %v3340_v21 }
0x1b56   :  { %4876 = vtanh.f32 %v3346_v51 }
0x1b57   :  { %v3366_v62 = vpop.permute.xlu0 %3365 }
0x1b60   :  { %v4877_v61 = vpop.eup %4876 }
0x1b61   :  { %v3348_v56 = vmul.f32 %v4877_v61, %v4875_v57 }
0x1b63   :  { %v3360_v60 = vsel %vm3359_vm7, %v6401_v10, %v3348_v56 }
0x1b64   :  { %3362 = vrot.lane.b32.xlu1 %v3360_v60, %s4905_s0 }
0x1b68   :  { %3350 = vrot.lane.b32.xlu1 %v3348_v56, %s4905_s0 }
0x1bd6   :  { %v3363_v16 = vpop.permute.xlu1 %3362 }
0x1bd7   :  { %v3368_v19 = vsel %vm102_vm1, %v3363_v16, %v3366_v62 }
0x1bd8   :  { %4237 = vmatmul.mubr.msk.f32.vlgmr.msra.gmra.mrb[34].mxu1 %vm3388_vm8, %v3368_v19 }
0x1bda   :  { %v3351_v0 = vpop.permute.xlu1 %3350 }
0x1bdb   :  { %v3353_v5 = vsel %vm102_vm1, %v3351_v0, %v3346_v51 }
0x1bdc   :  { %3354 = vst [vmem:[%s6527_s23 - $0x6] sm:$0xc0] %v3353_v5 }
0x1cab   :  { %v3458_v9 = vpop.f32.mrb[34].mxu1 }
0x1cac   :  { %v3459_v10 = vadd.f32 %v3619_v7, %v3458_v9  ;;  %v4238_v14 = vpop.f32.mrb[35].mxu1 }
0x1cae   :  { %v3462_v15 = vmax.f32 %v3459_v10, 0.0 }
0x1cb0   :  { %4256 = vmatmul.mubr.msk.f32.vlgmr.msra.gmra.mrb[36].mxu0 %vm102_vm1, %v3462_v15 }
0x1d83   :  { %v3547_v17 = vpop.f32.mrb[36].mxu0 }
0x1d84   :  { %v3548_v18 = vadd.f32 %v3621_v58, %v3547_v17  ;;  %v4257_v20 = vpop.f32.mrb[37].mxu0 }
0x1d86   :  { %3552 = vst.msk [vmem:[#allocation3] sm:$0xff] %vm3551_vm9, %v3548_v18 }
0x1d87   :  { %4889 = shalt.err (!%p4886_p4)
}
0x1d88   :  { %s4890_s3 = scalar_lea.hbm %s6526_s22, 128 }
0x1d89   :  { %p4891_p5 = scmp.ne.s32.totalorder %s6526_s22, %s4890_s3  ;;  %p4894_p6 = scmp.lt.u32.totalorder %s4890_s3, %s6526_s22 }
0x1d8b   :  { %p4896_p7 = pnand %p4894_p6, %p4891_p5 }
0x1d8d   :  { %4899 = shalt.err (!%p4896_p7)
}
0x1d8e   :  { %3562 = dma.vmem_to_hbm [thread:$0]  %s3560_s16, 128, %s6526_s22, [#allocation4]  }
0x1d8f   :  { %4900 = dma.done.wait [#allocation4], 128  }
0x1d90   :  { %4901 = vsyncadd [#allocation4], 4294967168 }
0x1d91   :  { %3570 = vsyncpa [#allocation4], 1 }

</bundles_post_ra>
